<compile_context>
chip_gen: v7x
topology: tpu7x:2x2x1
jax: 0.10.0
libtpu: 0.0.40
codegen_flags: <defaults>
</compile_context>

<pallas_src>
import functools
import math

import jax
import jax.numpy as jnp
import numpy as np
from jax.experimental import pallas as pl
from jax.experimental.pallas import tpu as pltpu


# ----------------------------------------------------------------------------
# Shared forward math (used INSIDE the Pallas kernel and as the dtype-matched
# host reference).  Transposed layout: activations are [feat, node], node dim
# (multiple of 128) on lanes.
# ----------------------------------------------------------------------------
def _forward_math(xT, aT, nefT, degT, maskn,
                  ew_all, eb_all, w1, bnw, bnb, w2, b2,
                  *, num_layers, emb_dim, mxu_dtype):
    f32 = jnp.float32
    mx = lambda v: v.astype(mxu_dtype)
    D = emb_dim

    # Hoisted, layer-invariant edge work (reassociated scatter), all L layers in
    # one [L*D, Fe] @ [Fe, N] matmul.  deg includes the self loop, so the edge
    # bias is scaled correctly per node.
    edge_agg_T = (jnp.dot(ew_all, mx(nefT), preferred_element_type=f32)
                  + eb_all * degT)                                    # [L*D, N]

    for l in range(num_layers):
        # propagate (aggr='add', self loops are in A):  agg = A @ x + edge_agg_l
        # (transposed:  x^T @ A^T)
        aggT = (jnp.dot(mx(xT), aT, preferred_element_type=f32)
                + edge_agg_T[l * D:(l + 1) * D, :])                   # [D, N]

        # first linear.  b1 omitted: a per-feature constant bias cancels exactly
        # under training-mode batch norm (only valid with batch statistics).
        hT = jnp.dot(w1[l], mx(aggT), preferred_element_type=f32)     # [2D, N]

        # training-mode batch norm over REAL nodes only (maskn = mask / n_real),
        # centered two-pass biased variance, eps=1e-5, folded with ReLU.
        mean = jnp.sum(hT * maskn, axis=1, keepdims=True)             # [2D, 1]
        c = hT - mean
        var = jnp.sum(c * c * maskn, axis=1, keepdims=True)
        scale = bnw[l] * jax.lax.rsqrt(var + 1e-5)                    # EUP rsqrt
        hT = jnp.maximum(c * scale + bnb[l], 0.0)                     # BN + ReLU

        # second linear
        yT = jnp.dot(w2[l], mx(hT), preferred_element_type=f32) + b2[l]  # [D, N]

        if l < num_layers - 1:            # outer F.relu for conv1..conv4
            yT = jnp.maximum(yT, 0.0)
        xT = yT

    return xT


def meta_gin_kernel(xT_ref, aT_ref, nefT_ref, degT_ref, maskn_ref,
                    ew_ref, eb_ref, w1_ref, bnw_ref, bnb_ref, w2_ref, b2_ref,
                    out_ref, *, num_layers, emb_dim, mxu_dtype):
    out_ref[...] = _forward_math(
        xT_ref[...], aT_ref[...], nefT_ref[...], degT_ref[...], maskn_ref[...],
        ew_ref[...], eb_ref[...], w1_ref[...], bnw_ref[...], bnb_ref[...],
        w2_ref[...], b2_ref[...],
        num_layers=num_layers, emb_dim=emb_dim, mxu_dtype=mxu_dtype,
    ).astype(out_ref.dtype)


# ----------------------------------------------------------------------------
# Parameter stacking (b1 intentionally dropped: exact no-op under training BN)
# ----------------------------------------------------------------------------
def stack_layer_params(layer_params, mxu_dtype):
    mx = lambda a: a.astype(mxu_dtype)
    f32 = lambda a: a.astype(jnp.float32)
    return dict(
        ew=mx(jnp.concatenate([p["edge_w"] for p in layer_params], axis=0)),      # [L*D, Fe]
        eb=f32(jnp.concatenate([p["edge_b"] for p in layer_params], axis=0))[:, None],  # [L*D, 1]
        w1=mx(jnp.stack([p["w1"] for p in layer_params])),                        # [L, 2D, D]
        bnw=f32(jnp.stack([p["bn_w"] for p in layer_params]))[:, :, None],        # [L, 2D, 1]
        bnb=f32(jnp.stack([p["bn_b"] for p in layer_params]))[:, :, None],        # [L, 2D, 1]
        w2=mx(jnp.stack([p["w2"] for p in layer_params])),                        # [L, D, 2D]
        b2=f32(jnp.stack([p["b2"] for p in layer_params]))[:, :, None],           # [L, D, 1]
    )


# ----------------------------------------------------------------------------
# Wrapper: one pallas_call for all 5 layers, transposed lane-dense layout
# ----------------------------------------------------------------------------
def meta_gin_forward(xT, A_T, nefT, degT, maskn, layer_params,
                     mxu_dtype=jnp.bfloat16, out_dtype=jnp.float32):
    D, Np = xT.shape
    L = len(layer_params)
    Fe = nefT.shape[0]
    stacked = stack_layer_params(layer_params, mxu_dtype)

    # TODO(synk): on v7x, feed A_T to the MXU as fp8 e4m3 (adjacency counts are
    # small integers, exact) to halve the O(N^2) VMEM again; keep bf16 on
    # v5e/v6e (no fp8 MXU there).
    operands = (
        xT.astype(jnp.float32),
        A_T.astype(mxu_dtype),              # bf16 halves the O(N^2) VMEM of A
        nefT.astype(jnp.float32),
        degT.astype(jnp.float32),
        maskn.astype(jnp.float32),
        stacked["ew"], stacked["eb"],
        stacked["w1"], stacked["bnw"], stacked["bnb"],
        stacked["w2"], stacked["b2"],
    )

    in_bytes = sum(int(np.prod(a.shape)) * a.dtype.itemsize for a in operands)
    out_bytes = D * Np * jnp.dtype(out_dtype).itemsize
    # live f32 temporaries: edge_agg_T [L*D,N], hT/centered [2D,N], aggT/yT [D,N]
    temp_bytes = 4 * Np * (L * D + 2 * (2 * D) + 2 * D)
    vmem_limit = int(min(max(2 * (in_bytes + out_bytes + temp_bytes), 16 << 20),
                         40 << 20))          # keep headroom on v7x's 64 MiB VMEM

    flops = (L * (2 * Np * Np * D            # A @ x
                  + 2 * (2 * D) * D * Np     # w1 @ agg
                  + 2 * D * (2 * D) * Np)    # w2 @ h
             + 2 * (L * D) * Fe * Np)        # hoisted edge matmul
    cost = pl.CostEstimate(flops=int(flops), transcendentals=int(L * 2 * D),
                           bytes_accessed=int(in_bytes + out_bytes))

    kernel = functools.partial(meta_gin_kernel, num_layers=L, emb_dim=D,
                               mxu_dtype=mxu_dtype)
    vmem = pl.BlockSpec(memory_space=pltpu.MemorySpace.VMEM)

    # TODO(synk): for much larger node batches, add a node-tile grid with
    # dimension_semantics=("parallel",) so both v7x TensorCores get work
    # (two-pass BN stats via shared scratch + core barrier) and row-tile A_T
    # (pl.Buffered(2)) to stay inside v7x's 64 MiB VMEM.
    return pl.pallas_call(
        kernel,
        out_shape=jax.ShapeDtypeStruct((D, Np), out_dtype),
        in_specs=[vmem] * len(operands),
        out_specs=vmem,
        compiler_params=pltpu.CompilerParams(vmem_limit_bytes=vmem_limit),
        cost_estimate=cost,
    )(*operands)


def meta_gin_apply(x, edge_index, edge_attr, layer_params, edge_fea_dim,
                   mxu_dtype=jnp.bfloat16, out_dtype=jnp.float32):
    """End-to-end: build operators, run the fused kernel, return [N_real, D]."""
    xT, A_T, nefT, degT, maskn, n_real = prepare_graph_operators(
        x, edge_index, edge_attr, edge_fea_dim)
    outT = meta_gin_forward(xT, A_T, nefT, degT, maskn, layer_params,
                            mxu_dtype=mxu_dtype, out_dtype=out_dtype)
    return outT[:, :n_real].T


# ----------------------------------------------------------------------------
# Glue: operators (add_self_loops, reassociated scatter, padding), batching,
# parameter init
# ----------------------------------------------------------------------------
def prepare_graph_operators(x, edge_index, edge_attr, edge_fea_dim,
                            node_pad_multiple=128):
    """add_self_loops + self_loop_attr, dense A^T, reassociated edge scatter,
    lane-dense node padding + BN mask."""
    N, D = x.shape
    Np = ((N + node_pad_multiple - 1) // node_pad_multiple) * node_pad_multiple
    Np = max(Np, node_pad_multiple)

    src = jnp.concatenate([edge_index[0].astype(jnp.int32),
                           jnp.arange(N, dtype=jnp.int32)])
    dst = jnp.concatenate([edge_index[1].astype(jnp.int32),
                           jnp.arange(N, dtype=jnp.int32)])

    self_loop_attr = jnp.zeros((N, edge_fea_dim), jnp.float32).at[:, 0].set(4.0)
    ea_full = jnp.concatenate([edge_attr.astype(jnp.float32), self_loop_attr], axis=0)

    # A^T[j, i] = #edges j -> i  (so agg = A @ x becomes x^T @ A^T), pad rows/cols = 0
    A_T = jnp.zeros((Np, Np), jnp.float32).at[src, dst].add(1.0)
    # reassociated scatter (replaces the [N, E] S operand):
    #   node_edge_feat = S @ edge_attr_full, deg = rowsum(S) (incl. self loop)
    nef = jnp.zeros((Np, edge_fea_dim), jnp.float32).at[dst].add(ea_full)
    deg = jnp.zeros((Np,), jnp.float32).at[dst].add(1.0)

    mask_over_n = (jnp.arange(Np) < N).astype(jnp.float32)[None, :] / float(N)
    xT = jnp.zeros((D, Np), jnp.float32).at[:, :N].set(x.astype(jnp.float32).T)

    # bf16 represents integer counts exactly up to 256 (8 mantissa bits)
    assert float(jnp.max(A_T)) <= 256.0, "multi-edge count too large for bf16 A"
    return xT, A_T, nef.T, deg[None, :], mask_over_n, N


def batch_graphs(graphs):
    """PyG-style block-diagonal batching so one kernel call processes many graphs."""
    xs, eis, eas, off = [], [], [], 0
    for (x, ei, ea) in graphs:
        xs.append(x)
        eis.append(ei + off)
        eas.append(ea)
        off += x.shape[0]
    return (jnp.concatenate(xs, axis=0),
            jnp.concatenate(eis, axis=1),
            jnp.concatenate(eas, axis=0))


def glorot(key, shape):
    fan_out, fan_in = shape
    stdv = math.sqrt(6.0 / (fan_in + fan_out))
    return jax.random.uniform(key, shape, jnp.float32, minval=-stdv, maxval=stdv)


def init_layer_params(key, emb_dim, edge_fea_dim):
    """PyTorch-shaped parameters; biases nonzero so the b1-cancellation and
    edge-bias reassociation paths are actually exercised by the tests."""
    ks = jax.random.split(key, 8)
    D = emb_dim
    return {
        "w1": glorot(ks[0], (2 * D, D)),                                  # [out, in]
        "b1": 0.1 * jax.random.normal(ks[1], (2 * D,), jnp.float32),      # cancels in BN
        "bn_w": 1.0 + 0.1 * jax.random.normal(ks[2], (2 * D,), jnp.float32),
        "bn_b": 0.1 * jax.random.normal(ks[3], (2 * D,), jnp.float32),
        "w2": glorot(ks[4], (D, 2 * D)),
        "b2": 0.1 * jax.random.normal(ks[5], (D,), jnp.float32),
        "edge_w": glorot(ks[6], (D, edge_fea_dim)),
        "edge_b": 0.1 * jax.random.normal(ks[7], (D,), jnp.float32),
    }


# ----------------------------------------------------------------------------
# References
# ----------------------------------------------------------------------------
def meta_gin_reference(x, edge_index, edge_attr, layer_params, edge_fea_dim):
    """Pure-JAX mirror of the PyTorch forward (b1 kept, per-edge scatter-add)."""
    N = x.shape[0]
    src = jnp.concatenate([edge_index[0], jnp.arange(N, dtype=edge_index.dtype)])
    dst = jnp.concatenate([edge_index[1], jnp.arange(N, dtype=edge_index.dtype)])
    sl = jnp.zeros((N, edge_fea_dim), jnp.float32).at[:, 0].set(4.0)
    ea_full = jnp.concatenate([edge_attr.astype(jnp.float32), sl], axis=0)
    for li, p in enumerate(layer_params):
        edge_emb = ea_full @ p["edge_w"].T + p["edge_b"][None, :]
        msg = x[src] + edge_emb
        agg = jnp.zeros_like(x).at[dst].add(msg)
        h = agg @ p["w1"].T + p["b1"][None, :]
        mean = h.mean(axis=0, keepdims=True)
        var = ((h - mean) ** 2).mean(axis=0, keepdims=True)
        h = (h - mean) * jax.lax.rsqrt(var + 1e-5) * p["bn_w"][None, :] + p["bn_b"][None, :]
        h = jnp.maximum(h, 0.0)
        y = h @ p["w2"].T + p["b2"][None, :]
        if li < len(layer_params) - 1:
            y = jnp.maximum(y, 0.0)
        x = y
    return x


def meta_gin_kernel_math_reference(xT, A_T, nefT, degT, maskn, layer_params,
                                   mxu_dtype, n_real):
    """Same math / dtype casts / layout as the kernel, for tight bf16 checks."""
    stacked = stack_layer_params(layer_params, mxu_dtype)
    D = xT.shape[0]
    outT = _forward_math(xT, A_T.astype(mxu_dtype), nefT, degT, maskn,
                         stacked["ew"], stacked["eb"], stacked["w1"],
                         stacked["bnw"], stacked["bnb"], stacked["w2"],
                         stacked["b2"],
                         num_layers=len(layer_params), emb_dim=D,
                         mxu_dtype=mxu_dtype)
    return outT[:, :n_real].T


# ----------------------------------------------------------------------------
if __name__ == "__main__":
    emb_dim = 32          # node feature / hidden dim
    edge_fea_dim = 8      # raw edge feature dim
    nodes_per_graph = 16
    edges_per_graph = 24
    num_graphs = 12       # 192 real nodes -> padded to 256 (lane-dense, masked BN)

    key = jax.random.PRNGKey(0)
    kg, kp = jax.random.split(key)

    graphs = []
    for gk in jax.random.split(kg, num_graphs):
        kx, ke_idx, ke_attr = jax.random.split(gk, 3)
        x_g = jax.random.normal(kx, (nodes_per_graph, emb_dim), jnp.float32)
        ei_g = jax.random.randint(ke_idx, (2, edges_per_graph), 0, nodes_per_graph,
                                  jnp.int32)
        ea_g = jax.random.normal(ke_attr, (edges_per_graph, edge_fea_dim), jnp.float32)
        graphs.append((x_g, ei_g, ea_g))

    x, edge_index, edge_attr = batch_graphs(graphs)
    layer_params = [init_layer_params(k, emb_dim, edge_fea_dim)
                    for k in jax.random.split(kp, 5)]

    xT, A_T, nefT, degT, maskn, n_real = prepare_graph_operators(
        x, edge_index, edge_attr, edge_fea_dim)

    # exact-math reference mirroring the PyTorch forward (computed at highest
    # host matmul precision so the f32-path check stays tight)
    with jax.default_matmul_precision("highest"):
        ref = meta_gin_reference(x, edge_index, edge_attr, layer_params,
                                 edge_fea_dim)

    # f32-MXU path: validates the algebraic rewrites (b1 drop, edge-scatter
    # reassociation, folded masked BN, transposed layout) against the reference.
    out_f32 = jax.block_until_ready(
        meta_gin_forward(xT, A_T, nefT, degT, maskn, layer_params,
                         mxu_dtype=jnp.float32))[:, :n_real].T
    np.testing.assert_allclose(np.asarray(out_f32), np.asarray(ref),
                               rtol=2e-2, atol=5e-3)

    # bf16-MXU path (perf default): checked against a dtype-matched JAX
    # reference (identical casts & math) so the tolerance stays tight.
    out_bf16 = jax.block_until_ready(
        meta_gin_forward(xT, A_T, nefT, degT, maskn, layer_params,
                         mxu_dtype=jnp.bfloat16))[:, :n_real].T
    with jax.default_matmul_precision("highest"):
        ref_bf16 = meta_gin_kernel_math_reference(
            xT, A_T, nefT, degT, maskn, layer_params, jnp.bfloat16, n_real)
    np.testing.assert_allclose(np.asarray(out_bf16), np.asarray(ref_bf16),
                               rtol=2e-2, atol=2e-2)

    print("KERNEL_OK")
</pallas_src>

<mosaic_0001>
module attributes {stable_mosaic.version = 11 : i64} {
  func.func @meta_gin_kernel(%arg0: memref<32x256xf32, #tpu.memory_space<vmem>>, %arg1: memref<256x256xf32, #tpu.memory_space<vmem>>, %arg2: memref<8x256xf32, #tpu.memory_space<vmem>>, %arg3: memref<1x256xf32, #tpu.memory_space<vmem>>, %arg4: memref<1x256xf32, #tpu.memory_space<vmem>>, %arg5: memref<160x8xf32, #tpu.memory_space<vmem>>, %arg6: memref<160x1xf32, #tpu.memory_space<vmem>>, %arg7: memref<5x64x32xf32, #tpu.memory_space<vmem>>, %arg8: memref<5x64x1xf32, #tpu.memory_space<vmem>>, %arg9: memref<5x64x1xf32, #tpu.memory_space<vmem>>, %arg10: memref<5x32x64xf32, #tpu.memory_space<vmem>>, %arg11: memref<5x32x1xf32, #tpu.memory_space<vmem>>, %arg12: memref<32x256xf32, #tpu.memory_space<vmem>>) attributes {dimension_semantics = [], scalar_prefetch = 0 : i64, scratch_operands = 0 : i64, tpu.core_type = #tpu.core_type<tc>} {
    %c0 = arith.constant 0 : index
    %c0_0 = arith.constant 0 : index
    %0 = vector.load %arg0[%c0, %c0_0] : memref<32x256xf32, #tpu.memory_space<vmem>>, vector<32x256xf32>
    %c0_1 = arith.constant 0 : index
    %c0_2 = arith.constant 0 : index
    %1 = vector.load %arg1[%c0_1, %c0_2] : memref<256x256xf32, #tpu.memory_space<vmem>>, vector<256x256xf32>
    %c0_3 = arith.constant 0 : index
    %c0_4 = arith.constant 0 : index
    %2 = vector.load %arg2[%c0_3, %c0_4] : memref<8x256xf32, #tpu.memory_space<vmem>>, vector<8x256xf32>
    %c0_5 = arith.constant 0 : index
    %c0_6 = arith.constant 0 : index
    %3 = vector.load %arg3[%c0_5, %c0_6] : memref<1x256xf32, #tpu.memory_space<vmem>>, vector<1x256xf32>
    %c0_7 = arith.constant 0 : index
    %c0_8 = arith.constant 0 : index
    %4 = vector.load %arg4[%c0_7, %c0_8] : memref<1x256xf32, #tpu.memory_space<vmem>>, vector<1x256xf32>
    %c0_9 = arith.constant 0 : index
    %c0_10 = arith.constant 0 : index
    %5 = vector.load %arg5[%c0_9, %c0_10] : memref<160x8xf32, #tpu.memory_space<vmem>>, vector<160x8xf32>
    %c0_11 = arith.constant 0 : index
    %c0_12 = arith.constant 0 : index
    %6 = vector.load %arg6[%c0_11, %c0_12] : memref<160x1xf32, #tpu.memory_space<vmem>>, vector<160x1xf32>
    %c0_13 = arith.constant 0 : index
    %c0_14 = arith.constant 0 : index
    %c0_15 = arith.constant 0 : index
    %7 = vector.load %arg7[%c0_13, %c0_14, %c0_15] : memref<5x64x32xf32, #tpu.memory_space<vmem>>, vector<5x64x32xf32>
    %c0_16 = arith.constant 0 : index
    %c0_17 = arith.constant 0 : index
    %c0_18 = arith.constant 0 : index
    %8 = vector.load %arg8[%c0_16, %c0_17, %c0_18] : memref<5x64x1xf32, #tpu.memory_space<vmem>>, vector<5x64x1xf32>
    %c0_19 = arith.constant 0 : index
    %c0_20 = arith.constant 0 : index
    %c0_21 = arith.constant 0 : index
    %9 = vector.load %arg9[%c0_19, %c0_20, %c0_21] : memref<5x64x1xf32, #tpu.memory_space<vmem>>, vector<5x64x1xf32>
    %c0_22 = arith.constant 0 : index
    %c0_23 = arith.constant 0 : index
    %c0_24 = arith.constant 0 : index
    %10 = vector.load %arg10[%c0_22, %c0_23, %c0_24] : memref<5x32x64xf32, #tpu.memory_space<vmem>>, vector<5x32x64xf32>
    %c0_25 = arith.constant 0 : index
    %c0_26 = arith.constant 0 : index
    %c0_27 = arith.constant 0 : index
    %11 = vector.load %arg11[%c0_25, %c0_26, %c0_27] : memref<5x32x1xf32, #tpu.memory_space<vmem>>, vector<5x32x1xf32>
    %cst = arith.constant dense<0.000000e+00> : vector<160x256xf32>
    %12 = tpu.matmul %5, %2, %cst {dimension_numbers = #tpu.dot_dimension_numbers<[1], [0], [0], [1], [0, 0, 1, 1], [], []>} : vector<160x8xf32>, vector<8x256xf32>, vector<160x256xf32> -> vector<160x256xf32>
    %13 = vector.broadcast %6 : vector<160x1xf32> to vector<160x256xf32>
    %14 = vector.broadcast %3 : vector<1x256xf32> to vector<160x256xf32>
    %15 = arith.mulf %13, %14 : vector<160x256xf32>
    %16 = arith.addf %12, %15 : vector<160x256xf32>
    %cst_28 = arith.constant dense<0.000000e+00> : vector<32x256xf32>
    %17 = tpu.matmul %0, %1, %cst_28 {dimension_numbers = #tpu.dot_dimension_numbers<[1], [0], [0], [1], [0, 0, 1, 1], [], []>} : vector<32x256xf32>, vector<256x256xf32>, vector<32x256xf32> -> vector<32x256xf32>
    %18 = vector.extract_strided_slice %16 {offsets = [0, 0], sizes = [32, 256], strides = [1, 1]} : vector<160x256xf32> to vector<32x256xf32>
    %19 = arith.addf %17, %18 : vector<32x256xf32>
    %20 = vector.extract_strided_slice %7 {offsets = [0, 0, 0], sizes = [1, 64, 32], strides = [1, 1, 1]} : vector<5x64x32xf32> to vector<1x64x32xf32>
    %21 = vector.shape_cast %20 : vector<1x64x32xf32> to vector<64x32xf32>
    %cst_29 = arith.constant dense<0.000000e+00> : vector<64x256xf32>
    %22 = tpu.matmul %21, %19, %cst_29 {dimension_numbers = #tpu.dot_dimension_numbers<[1], [0], [0], [1], [0, 0, 1, 1], [], []>} : vector<64x32xf32>, vector<32x256xf32>, vector<64x256xf32> -> vector<64x256xf32>
    %23 = vector.broadcast %4 : vector<1x256xf32> to vector<64x256xf32>
    %24 = arith.mulf %22, %23 : vector<64x256xf32>
    %cst_30 = arith.constant dense<0.000000e+00> : vector<64xf32>
    %25 = vector.multi_reduction <add>, %24, %cst_30 [1] : vector<64x256xf32> to vector<64xf32>
    %26 = vector.shape_cast %25 : vector<64xf32> to vector<64x1xf32>
    %27 = vector.broadcast %26 : vector<64x1xf32> to vector<64x256xf32>
    %28 = arith.subf %22, %27 : vector<64x256xf32>
    %29 = arith.mulf %28, %28 : vector<64x256xf32>
    %30 = vector.broadcast %4 : vector<1x256xf32> to vector<64x256xf32>
    %31 = arith.mulf %29, %30 : vector<64x256xf32>
    %cst_31 = arith.constant dense<0.000000e+00> : vector<64xf32>
    %32 = vector.multi_reduction <add>, %31, %cst_31 [1] : vector<64x256xf32> to vector<64xf32>
    %33 = vector.shape_cast %32 : vector<64xf32> to vector<64x1xf32>
    %34 = vector.extract_strided_slice %8 {offsets = [0, 0, 0], sizes = [1, 64, 1], strides = [1, 1, 1]} : vector<5x64x1xf32> to vector<1x64x1xf32>
    %35 = vector.shape_cast %34 : vector<1x64x1xf32> to vector<64x1xf32>
    %cst_32 = arith.constant 9.99999974E-6 : f32
    %36 = vector.broadcast %cst_32 : f32 to vector<64x1xf32>
    %37 = arith.addf %33, %36 : vector<64x1xf32>
    %38 = math.rsqrt %37 : vector<64x1xf32>
    %39 = arith.mulf %35, %38 : vector<64x1xf32>
    %40 = vector.broadcast %39 : vector<64x1xf32> to vector<64x256xf32>
    %41 = arith.mulf %28, %40 : vector<64x256xf32>
    %42 = vector.extract_strided_slice %9 {offsets = [0, 0, 0], sizes = [1, 64, 1], strides = [1, 1, 1]} : vector<5x64x1xf32> to vector<1x64x1xf32>
    %43 = vector.shape_cast %42 : vector<1x64x1xf32> to vector<64x1xf32>
    %44 = vector.broadcast %43 : vector<64x1xf32> to vector<64x256xf32>
    %45 = arith.addf %41, %44 : vector<64x256xf32>
    %cst_33 = arith.constant 0.000000e+00 : f32
    %46 = vector.broadcast %cst_33 : f32 to vector<64x256xf32>
    %47 = arith.maximumf %45, %46 : vector<64x256xf32>
    %48 = vector.extract_strided_slice %10 {offsets = [0, 0, 0], sizes = [1, 32, 64], strides = [1, 1, 1]} : vector<5x32x64xf32> to vector<1x32x64xf32>
    %49 = vector.shape_cast %48 : vector<1x32x64xf32> to vector<32x64xf32>
    %cst_34 = arith.constant dense<0.000000e+00> : vector<32x256xf32>
    %50 = tpu.matmul %49, %47, %cst_34 {dimension_numbers = #tpu.dot_dimension_numbers<[1], [0], [0], [1], [0, 0, 1, 1], [], []>} : vector<32x64xf32>, vector<64x256xf32>, vector<32x256xf32> -> vector<32x256xf32>
    %51 = vector.extract_strided_slice %11 {offsets = [0, 0, 0], sizes = [1, 32, 1], strides = [1, 1, 1]} : vector<5x32x1xf32> to vector<1x32x1xf32>
    %52 = vector.shape_cast %51 : vector<1x32x1xf32> to vector<32x1xf32>
    %53 = vector.broadcast %52 : vector<32x1xf32> to vector<32x256xf32>
    %54 = arith.addf %50, %53 : vector<32x256xf32>
    %cst_35 = arith.constant 0.000000e+00 : f32
    %55 = vector.broadcast %cst_35 : f32 to vector<32x256xf32>
    %56 = arith.maximumf %54, %55 : vector<32x256xf32>
    %cst_36 = arith.constant dense<0.000000e+00> : vector<32x256xf32>
    %57 = tpu.matmul %56, %1, %cst_36 {dimension_numbers = #tpu.dot_dimension_numbers<[1], [0], [0], [1], [0, 0, 1, 1], [], []>} : vector<32x256xf32>, vector<256x256xf32>, vector<32x256xf32> -> vector<32x256xf32>
    %58 = vector.extract_strided_slice %16 {offsets = [32, 0], sizes = [32, 256], strides = [1, 1]} : vector<160x256xf32> to vector<32x256xf32>
    %59 = arith.addf %57, %58 : vector<32x256xf32>
    %60 = vector.extract_strided_slice %7 {offsets = [1, 0, 0], sizes = [1, 64, 32], strides = [1, 1, 1]} : vector<5x64x32xf32> to vector<1x64x32xf32>
    %61 = vector.shape_cast %60 : vector<1x64x32xf32> to vector<64x32xf32>
    %cst_37 = arith.constant dense<0.000000e+00> : vector<64x256xf32>
    %62 = tpu.matmul %61, %59, %cst_37 {dimension_numbers = #tpu.dot_dimension_numbers<[1], [0], [0], [1], [0, 0, 1, 1], [], []>} : vector<64x32xf32>, vector<32x256xf32>, vector<64x256xf32> -> vector<64x256xf32>
    %63 = vector.broadcast %4 : vector<1x256xf32> to vector<64x256xf32>
    %64 = arith.mulf %62, %63 : vector<64x256xf32>
    %cst_38 = arith.constant dense<0.000000e+00> : vector<64xf32>
    %65 = vector.multi_reduction <add>, %64, %cst_38 [1] : vector<64x256xf32> to vector<64xf32>
    %66 = vector.shape_cast %65 : vector<64xf32> to vector<64x1xf32>
    %67 = vector.broadcast %66 : vector<64x1xf32> to vector<64x256xf32>
    %68 = arith.subf %62, %67 : vector<64x256xf32>
    %69 = arith.mulf %68, %68 : vector<64x256xf32>
    %70 = vector.broadcast %4 : vector<1x256xf32> to vector<64x256xf32>
    %71 = arith.mulf %69, %70 : vector<64x256xf32>
    %cst_39 = arith.constant dense<0.000000e+00> : vector<64xf32>
    %72 = vector.multi_reduction <add>, %71, %cst_39 [1] : vector<64x256xf32> to vector<64xf32>
    %73 = vector.shape_cast %72 : vector<64xf32> to vector<64x1xf32>
    %74 = vector.extract_strided_slice %8 {offsets = [1, 0, 0], sizes = [1, 64, 1], strides = [1, 1, 1]} : vector<5x64x1xf32> to vector<1x64x1xf32>
    %75 = vector.shape_cast %74 : vector<1x64x1xf32> to vector<64x1xf32>
    %cst_40 = arith.constant 9.99999974E-6 : f32
    %76 = vector.broadcast %cst_40 : f32 to vector<64x1xf32>
    %77 = arith.addf %73, %76 : vector<64x1xf32>
    %78 = math.rsqrt %77 : vector<64x1xf32>
    %79 = arith.mulf %75, %78 : vector<64x1xf32>
    %80 = vector.broadcast %79 : vector<64x1xf32> to vector<64x256xf32>
    %81 = arith.mulf %68, %80 : vector<64x256xf32>
    %82 = vector.extract_strided_slice %9 {offsets = [1, 0, 0], sizes = [1, 64, 1], strides = [1, 1, 1]} : vector<5x64x1xf32> to vector<1x64x1xf32>
    %83 = vector.shape_cast %82 : vector<1x64x1xf32> to vector<64x1xf32>
    %84 = vector.broadcast %83 : vector<64x1xf32> to vector<64x256xf32>
    %85 = arith.addf %81, %84 : vector<64x256xf32>
    %cst_41 = arith.constant 0.000000e+00 : f32
    %86 = vector.broadcast %cst_41 : f32 to vector<64x256xf32>
    %87 = arith.maximumf %85, %86 : vector<64x256xf32>
    %88 = vector.extract_strided_slice %10 {offsets = [1, 0, 0], sizes = [1, 32, 64], strides = [1, 1, 1]} : vector<5x32x64xf32> to vector<1x32x64xf32>
    %89 = vector.shape_cast %88 : vector<1x32x64xf32> to vector<32x64xf32>
    %cst_42 = arith.constant dense<0.000000e+00> : vector<32x256xf32>
    %90 = tpu.matmul %89, %87, %cst_42 {dimension_numbers = #tpu.dot_dimension_numbers<[1], [0], [0], [1], [0, 0, 1, 1], [], []>} : vector<32x64xf32>, vector<64x256xf32>, vector<32x256xf32> -> vector<32x256xf32>
    %91 = vector.extract_strided_slice %11 {offsets = [1, 0, 0], sizes = [1, 32, 1], strides = [1, 1, 1]} : vector<5x32x1xf32> to vector<1x32x1xf32>
    %92 = vector.shape_cast %91 : vector<1x32x1xf32> to vector<32x1xf32>
    %93 = vector.broadcast %92 : vector<32x1xf32> to vector<32x256xf32>
    %94 = arith.addf %90, %93 : vector<32x256xf32>
    %cst_43 = arith.constant 0.000000e+00 : f32
    %95 = vector.broadcast %cst_43 : f32 to vector<32x256xf32>
    %96 = arith.maximumf %94, %95 : vector<32x256xf32>
    %cst_44 = arith.constant dense<0.000000e+00> : vector<32x256xf32>
    %97 = tpu.matmul %96, %1, %cst_44 {dimension_numbers = #tpu.dot_dimension_numbers<[1], [0], [0], [1], [0, 0, 1, 1], [], []>} : vector<32x256xf32>, vector<256x256xf32>, vector<32x256xf32> -> vector<32x256xf32>
    %98 = vector.extract_strided_slice %16 {offsets = [64, 0], sizes = [32, 256], strides = [1, 1]} : vector<160x256xf32> to vector<32x256xf32>
    %99 = arith.addf %97, %98 : vector<32x256xf32>
    %100 = vector.extract_strided_slice %7 {offsets = [2, 0, 0], sizes = [1, 64, 32], strides = [1, 1, 1]} : vector<5x64x32xf32> to vector<1x64x32xf32>
    %101 = vector.shape_cast %100 : vector<1x64x32xf32> to vector<64x32xf32>
    %cst_45 = arith.constant dense<0.000000e+00> : vector<64x256xf32>
    %102 = tpu.matmul %101, %99, %cst_45 {dimension_numbers = #tpu.dot_dimension_numbers<[1], [0], [0], [1], [0, 0, 1, 1], [], []>} : vector<64x32xf32>, vector<32x256xf32>, vector<64x256xf32> -> vector<64x256xf32>
    %103 = vector.broadcast %4 : vector<1x256xf32> to vector<64x256xf32>
    %104 = arith.mulf %102, %103 : vector<64x256xf32>
    %cst_46 = arith.constant dense<0.000000e+00> : vector<64xf32>
    %105 = vector.multi_reduction <add>, %104, %cst_46 [1] : vector<64x256xf32> to vector<64xf32>
    %106 = vector.shape_cast %105 : vector<64xf32> to vector<64x1xf32>
    %107 = vector.broadcast %106 : vector<64x1xf32> to vector<64x256xf32>
    %108 = arith.subf %102, %107 : vector<64x256xf32>
    %109 = arith.mulf %108, %108 : vector<64x256xf32>
    %110 = vector.broadcast %4 : vector<1x256xf32> to vector<64x256xf32>
    %111 = arith.mulf %109, %110 : vector<64x256xf32>
    %cst_47 = arith.constant dense<0.000000e+00> : vector<64xf32>
    %112 = vector.multi_reduction <add>, %111, %cst_47 [1] : vector<64x256xf32> to vector<64xf32>
    %113 = vector.shape_cast %112 : vector<64xf32> to vector<64x1xf32>
    %114 = vector.extract_strided_slice %8 {offsets = [2, 0, 0], sizes = [1, 64, 1], strides = [1, 1, 1]} : vector<5x64x1xf32> to vector<1x64x1xf32>
    %115 = vector.shape_cast %114 : vector<1x64x1xf32> to vector<64x1xf32>
    %cst_48 = arith.constant 9.99999974E-6 : f32
    %116 = vector.broadcast %cst_48 : f32 to vector<64x1xf32>
    %117 = arith.addf %113, %116 : vector<64x1xf32>
    %118 = math.rsqrt %117 : vector<64x1xf32>
    %119 = arith.mulf %115, %118 : vector<64x1xf32>
    %120 = vector.broadcast %119 : vector<64x1xf32> to vector<64x256xf32>
    %121 = arith.mulf %108, %120 : vector<64x256xf32>
    %122 = vector.extract_strided_slice %9 {offsets = [2, 0, 0], sizes = [1, 64, 1], strides = [1, 1, 1]} : vector<5x64x1xf32> to vector<1x64x1xf32>
    %123 = vector.shape_cast %122 : vector<1x64x1xf32> to vector<64x1xf32>
    %124 = vector.broadcast %123 : vector<64x1xf32> to vector<64x256xf32>
    %125 = arith.addf %121, %124 : vector<64x256xf32>
    %cst_49 = arith.constant 0.000000e+00 : f32
    %126 = vector.broadcast %cst_49 : f32 to vector<64x256xf32>
    %127 = arith.maximumf %125, %126 : vector<64x256xf32>
    %128 = vector.extract_strided_slice %10 {offsets = [2, 0, 0], sizes = [1, 32, 64], strides = [1, 1, 1]} : vector<5x32x64xf32> to vector<1x32x64xf32>
    %129 = vector.shape_cast %128 : vector<1x32x64xf32> to vector<32x64xf32>
    %cst_50 = arith.constant dense<0.000000e+00> : vector<32x256xf32>
    %130 = tpu.matmul %129, %127, %cst_50 {dimension_numbers = #tpu.dot_dimension_numbers<[1], [0], [0], [1], [0, 0, 1, 1], [], []>} : vector<32x64xf32>, vector<64x256xf32>, vector<32x256xf32> -> vector<32x256xf32>
    %131 = vector.extract_strided_slice %11 {offsets = [2, 0, 0], sizes = [1, 32, 1], strides = [1, 1, 1]} : vector<5x32x1xf32> to vector<1x32x1xf32>
    %132 = vector.shape_cast %131 : vector<1x32x1xf32> to vector<32x1xf32>
    %133 = vector.broadcast %132 : vector<32x1xf32> to vector<32x256xf32>
    %134 = arith.addf %130, %133 : vector<32x256xf32>
    %cst_51 = arith.constant 0.000000e+00 : f32
    %135 = vector.broadcast %cst_51 : f32 to vector<32x256xf32>
    %136 = arith.maximumf %134, %135 : vector<32x256xf32>
    %cst_52 = arith.constant dense<0.000000e+00> : vector<32x256xf32>
    %137 = tpu.matmul %136, %1, %cst_52 {dimension_numbers = #tpu.dot_dimension_numbers<[1], [0], [0], [1], [0, 0, 1, 1], [], []>} : vector<32x256xf32>, vector<256x256xf32>, vector<32x256xf32> -> vector<32x256xf32>
    %138 = vector.extract_strided_slice %16 {offsets = [96, 0], sizes = [32, 256], strides = [1, 1]} : vector<160x256xf32> to vector<32x256xf32>
    %139 = arith.addf %137, %138 : vector<32x256xf32>
    %140 = vector.extract_strided_slice %7 {offsets = [3, 0, 0], sizes = [1, 64, 32], strides = [1, 1, 1]} : vector<5x64x32xf32> to vector<1x64x32xf32>
    %141 = vector.shape_cast %140 : vector<1x64x32xf32> to vector<64x32xf32>
    %cst_53 = arith.constant dense<0.000000e+00> : vector<64x256xf32>
    %142 = tpu.matmul %141, %139, %cst_53 {dimension_numbers = #tpu.dot_dimension_numbers<[1], [0], [0], [1], [0, 0, 1, 1], [], []>} : vector<64x32xf32>, vector<32x256xf32>, vector<64x256xf32> -> vector<64x256xf32>
    %143 = vector.broadcast %4 : vector<1x256xf32> to vector<64x256xf32>
    %144 = arith.mulf %142, %143 : vector<64x256xf32>
    %cst_54 = arith.constant dense<0.000000e+00> : vector<64xf32>
    %145 = vector.multi_reduction <add>, %144, %cst_54 [1] : vector<64x256xf32> to vector<64xf32>
    %146 = vector.shape_cast %145 : vector<64xf32> to vector<64x1xf32>
    %147 = vector.broadcast %146 : vector<64x1xf32> to vector<64x256xf32>
    %148 = arith.subf %142, %147 : vector<64x256xf32>
    %149 = arith.mulf %148, %148 : vector<64x256xf32>
    %150 = vector.broadcast %4 : vector<1x256xf32> to vector<64x256xf32>
    %151 = arith.mulf %149, %150 : vector<64x256xf32>
    %cst_55 = arith.constant dense<0.000000e+00> : vector<64xf32>
    %152 = vector.multi_reduction <add>, %151, %cst_55 [1] : vector<64x256xf32> to vector<64xf32>
    %153 = vector.shape_cast %152 : vector<64xf32> to vector<64x1xf32>
    %154 = vector.extract_strided_slice %8 {offsets = [3, 0, 0], sizes = [1, 64, 1], strides = [1, 1, 1]} : vector<5x64x1xf32> to vector<1x64x1xf32>
    %155 = vector.shape_cast %154 : vector<1x64x1xf32> to vector<64x1xf32>
    %cst_56 = arith.constant 9.99999974E-6 : f32
    %156 = vector.broadcast %cst_56 : f32 to vector<64x1xf32>
    %157 = arith.addf %153, %156 : vector<64x1xf32>
    %158 = math.rsqrt %157 : vector<64x1xf32>
    %159 = arith.mulf %155, %158 : vector<64x1xf32>
    %160 = vector.broadcast %159 : vector<64x1xf32> to vector<64x256xf32>
    %161 = arith.mulf %148, %160 : vector<64x256xf32>
    %162 = vector.extract_strided_slice %9 {offsets = [3, 0, 0], sizes = [1, 64, 1], strides = [1, 1, 1]} : vector<5x64x1xf32> to vector<1x64x1xf32>
    %163 = vector.shape_cast %162 : vector<1x64x1xf32> to vector<64x1xf32>
    %164 = vector.broadcast %163 : vector<64x1xf32> to vector<64x256xf32>
    %165 = arith.addf %161, %164 : vector<64x256xf32>
    %cst_57 = arith.constant 0.000000e+00 : f32
    %166 = vector.broadcast %cst_57 : f32 to vector<64x256xf32>
    %167 = arith.maximumf %165, %166 : vector<64x256xf32>
    %168 = vector.extract_strided_slice %10 {offsets = [3, 0, 0], sizes = [1, 32, 64], strides = [1, 1, 1]} : vector<5x32x64xf32> to vector<1x32x64xf32>
    %169 = vector.shape_cast %168 : vector<1x32x64xf32> to vector<32x64xf32>
    %cst_58 = arith.constant dense<0.000000e+00> : vector<32x256xf32>
    %170 = tpu.matmul %169, %167, %cst_58 {dimension_numbers = #tpu.dot_dimension_numbers<[1], [0], [0], [1], [0, 0, 1, 1], [], []>} : vector<32x64xf32>, vector<64x256xf32>, vector<32x256xf32> -> vector<32x256xf32>
    %171 = vector.extract_strided_slice %11 {offsets = [3, 0, 0], sizes = [1, 32, 1], strides = [1, 1, 1]} : vector<5x32x1xf32> to vector<1x32x1xf32>
    %172 = vector.shape_cast %171 : vector<1x32x1xf32> to vector<32x1xf32>
    %173 = vector.broadcast %172 : vector<32x1xf32> to vector<32x256xf32>
    %174 = arith.addf %170, %173 : vector<32x256xf32>
    %cst_59 = arith.constant 0.000000e+00 : f32
    %175 = vector.broadcast %cst_59 : f32 to vector<32x256xf32>
    %176 = arith.maximumf %174, %175 : vector<32x256xf32>
    %cst_60 = arith.constant dense<0.000000e+00> : vector<32x256xf32>
    %177 = tpu.matmul %176, %1, %cst_60 {dimension_numbers = #tpu.dot_dimension_numbers<[1], [0], [0], [1], [0, 0, 1, 1], [], []>} : vector<32x256xf32>, vector<256x256xf32>, vector<32x256xf32> -> vector<32x256xf32>
    %178 = vector.extract_strided_slice %16 {offsets = [128, 0], sizes = [32, 256], strides = [1, 1]} : vector<160x256xf32> to vector<32x256xf32>
    %179 = arith.addf %177, %178 : vector<32x256xf32>
    %180 = vector.extract_strided_slice %7 {offsets = [4, 0, 0], sizes = [1, 64, 32], strides = [1, 1, 1]} : vector<5x64x32xf32> to vector<1x64x32xf32>
    %181 = vector.shape_cast %180 : vector<1x64x32xf32> to vector<64x32xf32>
    %cst_61 = arith.constant dense<0.000000e+00> : vector<64x256xf32>
    %182 = tpu.matmul %181, %179, %cst_61 {dimension_numbers = #tpu.dot_dimension_numbers<[1], [0], [0], [1], [0, 0, 1, 1], [], []>} : vector<64x32xf32>, vector<32x256xf32>, vector<64x256xf32> -> vector<64x256xf32>
    %183 = vector.broadcast %4 : vector<1x256xf32> to vector<64x256xf32>
    %184 = arith.mulf %182, %183 : vector<64x256xf32>
    %cst_62 = arith.constant dense<0.000000e+00> : vector<64xf32>
    %185 = vector.multi_reduction <add>, %184, %cst_62 [1] : vector<64x256xf32> to vector<64xf32>
    %186 = vector.shape_cast %185 : vector<64xf32> to vector<64x1xf32>
    %187 = vector.broadcast %186 : vector<64x1xf32> to vector<64x256xf32>
    %188 = arith.subf %182, %187 : vector<64x256xf32>
    %189 = arith.mulf %188, %188 : vector<64x256xf32>
    %190 = vector.broadcast %4 : vector<1x256xf32> to vector<64x256xf32>
    %191 = arith.mulf %189, %190 : vector<64x256xf32>
    %cst_63 = arith.constant dense<0.000000e+00> : vector<64xf32>
    %192 = vector.multi_reduction <add>, %191, %cst_63 [1] : vector<64x256xf32> to vector<64xf32>
    %193 = vector.shape_cast %192 : vector<64xf32> to vector<64x1xf32>
    %194 = vector.extract_strided_slice %8 {offsets = [4, 0, 0], sizes = [1, 64, 1], strides = [1, 1, 1]} : vector<5x64x1xf32> to vector<1x64x1xf32>
    %195 = vector.shape_cast %194 : vector<1x64x1xf32> to vector<64x1xf32>
    %cst_64 = arith.constant 9.99999974E-6 : f32
    %196 = vector.broadcast %cst_64 : f32 to vector<64x1xf32>
    %197 = arith.addf %193, %196 : vector<64x1xf32>
    %198 = math.rsqrt %197 : vector<64x1xf32>
    %199 = arith.mulf %195, %198 : vector<64x1xf32>
    %200 = vector.broadcast %199 : vector<64x1xf32> to vector<64x256xf32>
    %201 = arith.mulf %188, %200 : vector<64x256xf32>
    %202 = vector.extract_strided_slice %9 {offsets = [4, 0, 0], sizes = [1, 64, 1], strides = [1, 1, 1]} : vector<5x64x1xf32> to vector<1x64x1xf32>
    %203 = vector.shape_cast %202 : vector<1x64x1xf32> to vector<64x1xf32>
    %204 = vector.broadcast %203 : vector<64x1xf32> to vector<64x256xf32>
    %205 = arith.addf %201, %204 : vector<64x256xf32>
    %cst_65 = arith.constant 0.000000e+00 : f32
    %206 = vector.broadcast %cst_65 : f32 to vector<64x256xf32>
    %207 = arith.maximumf %205, %206 : vector<64x256xf32>
    %208 = vector.extract_strided_slice %10 {offsets = [4, 0, 0], sizes = [1, 32, 64], strides = [1, 1, 1]} : vector<5x32x64xf32> to vector<1x32x64xf32>
    %209 = vector.shape_cast %208 : vector<1x32x64xf32> to vector<32x64xf32>
    %cst_66 = arith.constant dense<0.000000e+00> : vector<32x256xf32>
    %210 = tpu.matmul %209, %207, %cst_66 {dimension_numbers = #tpu.dot_dimension_numbers<[1], [0], [0], [1], [0, 0, 1, 1], [], []>} : vector<32x64xf32>, vector<64x256xf32>, vector<32x256xf32> -> vector<32x256xf32>
    %211 = vector.extract_strided_slice %11 {offsets = [4, 0, 0], sizes = [1, 32, 1], strides = [1, 1, 1]} : vector<5x32x1xf32> to vector<1x32x1xf32>
    %212 = vector.shape_cast %211 : vector<1x32x1xf32> to vector<32x1xf32>
    %213 = vector.broadcast %212 : vector<32x1xf32> to vector<32x256xf32>
    %214 = arith.addf %210, %213 : vector<32x256xf32>
    %c0_67 = arith.constant 0 : index
    %c0_68 = arith.constant 0 : index
    %215 = vector.load %arg12[%c0_67, %c0_68] : memref<32x256xf32, #tpu.memory_space<vmem>>, vector<32x256xf32>
    tpu.vector_store %arg12[%c0_67, %c0_68], %214 {strides = array<i32>} : memref<32x256xf32, #tpu.memory_space<vmem>>, vector<32x256xf32>,
    return
  }
}

</mosaic_0001>

<bundles_post_ra>
// kernel: tpu_custom_call.1
= control target key start
LH: loop header
LB: loop body
LE: loop exit
PB: predicated region body
PF: predicated region fallthrough
CT: control target
= control target key end

     0   :  { %vm469_vm0 = vcmask 64512   ;;  %v6579_v3 = vmov 0.0   ;;  %v4559_v9 = vmov 0   ;;  %s6564_s0 = inlined_call_operand.vmem [shape: f32[32,256], index: 0, kind: input, shape index: {}]   ;;  %s6565_s1 = inlined_call_operand.vmem [shape: f32[256,256], index: 1, kind: input, shape index: {}]   ;;  %s6566_s2 = inlined_call_operand.vmem [shape: f32[8,256], index: 2, kind: input, shape index: {}]   ;;  %s6567_s3 = inlined_call_operand.vmem [shape: f32[1,256], index: 3, kind: input, shape index: {}]   ;;  %s6568_s4 = inlined_call_operand.vmem [shape: f32[1,256], index: 4, kind: input, shape index: {}]   ;;  %s6569_s5 = inlined_call_operand.vmem [shape: f32[160,8], index: 5, kind: input, shape index: {}]   ;;  %s6570_s6 = inlined_call_operand.vmem [shape: f32[160,1], index: 6, kind: input, shape index: {}]   ;;  %s6571_s7 = inlined_call_operand.vmem [shape: f32[5,64,32], index: 7, kind: input, shape index: {}]   ;;  %s6572_s8 = inlined_call_operand.vmem [shape: f32[5,64,1], index: 8, kind: input, shape index: {}]   ;;  %s6573_s9 = inlined_call_operand.vmem [shape: f32[5,64,1], index: 9, kind: input, shape index: {}]   ;;  %s6574_s10 = inlined_call_operand.vmem [shape: f32[5,32,64], index: 10, kind: input, shape index: {}]   ;;  %s6575_s11 = inlined_call_operand.vmem [shape: f32[5,32,1], index: 11, kind: input, shape index: {}]   ;;  %s6576_s12 = inlined_call_operand.hbm [shape: f32[32,256], index: 12, kind: output, shape index: {}]  }
   0x1   :  { %v115_v0 = vld [vmem:[%s6566_s2 + $0x8] sm:$0xff]  ;;  %v114_v1 = vld [vmem:[%s6566_s2] sm:$0xff]  ;;  %594 = vmatprep.mubr.f32.mxu0 %v6579_v3  ;;  %v53_v5 = vld [vmem:[%s6565_s1 + $0x18] sm:$0xff]  ;;  %4452 = vset.pattern.permute.xlu0 %v4559_v9 }
   0x2   :  { %v118_v2 = vld [vmem:[%s6569_s5] sm:$0xff]  ;;  %530 = vmatprep.subr.mxu0 %v115_v0  ;;  %v51_v4 = vld [vmem:[%s6565_s1 + $0x8] sm:$0xff]  ;;  %v52_v8 = vld [vmem:[%s6565_s1 + $0x10] sm:$0xff]  ;;  %4453 = vset.pattern.permute.xlu1 %v4559_v9 }
   0x3   :  { %531 = vmatpush1.msra.mxu0 %v114_v1  ;;  %v4644_v6 = vpack.c.bf16 %v53_v5, %v51_v4  ;;  %v50_v7 = vld [vmem:[%s6565_s1] sm:$0xff]  ;;  %v55_v11 = vld [vmem:[%s6565_s1 + $0x28] sm:$0xff]  ;;  %v57_v12 = vld [vmem:[%s6565_s1 + $0x38] sm:$0xff]  ;;  %893 = vmatprep.mubr.f32.mxu1 %v6579_v3 }
   0x4   :  { %3839 = vmatmul.mubr.msk.f32.vlgmr.msra.gmra.mrb[0].mxu0 %vm469_vm0, %v118_v2  ;;  %v4653_v10 = vpack.c.bf16 %v52_v8, %v50_v7  ;;  %v54_v13 = vld [vmem:[%s6565_s1 + $0x20] sm:$0xff]  ;;  %v119_v14 = vld [vmem:[%s6569_s5 + $0x8] sm:$0xff]  ;;  %v4669_v15 = vpack.c.bf16 %v57_v12, %v55_v11  ;;  %v56_v16 = vld [vmem:[%s6565_s1 + $0x30] sm:$0xff] }
   0x5   :  { %6614 = vst [vmem:[#allocation5_spill] sm:$0xff] %v4644_v6  ;;  %600 = vmatprep.mubr.f32.mxu0 %v6579_v3  ;;  %3920 = vmatprep.subr.bf16.mxu0 %v4644_v6  ;;  %v59_v17 = vld [vmem:[%s6565_s1 + $0x48] sm:$0xff]  ;;  %v4678_v18 = vpack.c.bf16 %v56_v16, %v54_v13  ;;  %v61_v19 = vld [vmem:[%s6565_s1 + $0x58] sm:$0xff]  ;;  %v58_v21 = vld [vmem:[%s6565_s1 + $0x40] sm:$0xff] }
   0x6   :  { %3922 = vmatpush1.bf16.msra.mxu0 %v4653_v10  ;;  %v4685_v20 = vpack.c.bf16 %v61_v19, %v59_v17  ;;  %v60_v22 = vld [vmem:[%s6565_s1 + $0x50] sm:$0xff]  ;;  %v63_v23 = vld [vmem:[%s6565_s1 + $0x68] sm:$0xff]  ;;  %v65_v24 = vld [vmem:[%s6565_s1 + $0x78] sm:$0xff] }
   0x7   :  { %3924 = vmatprep.subr.bf16.mxu0 %v4669_v15  ;;  %v120_v25 = vld [vmem:[%s6569_s5 + $0x10] sm:$0xff]  ;;  %v4705_v26 = vpack.c.bf16 %v60_v22, %v58_v21  ;;  %v4708_v27 = vpack.c.bf16 %v65_v24, %v63_v23  ;;  %v62_v28 = vld [vmem:[%s6565_s1 + $0x60] sm:$0xff]  ;;  %v67_v30 = vld [vmem:[%s6565_s1 + $0x88] sm:$0xff] }
   0x8   :  { %3840 = vmatmul.mubr.msk.f32.gmra.mrb[2].mxu0 %vm469_vm0, %v119_v14  ;;  %v64_v29 = vld [vmem:[%s6565_s1 + $0x70] sm:$0xff]  ;;  %v69_v31 = vld [vmem:[%s6565_s1 + $0x98] sm:$0xff]  ;;  %v66_v35 = vld [vmem:[%s6565_s1 + $0x80] sm:$0xff] }
   0x9   :  { %606 = vmatprep.mubr.f32.mxu0 %v6579_v3  ;;  %v121_v32 = vld [vmem:[%s6569_s5 + $0x18] sm:$0xff]  ;;  %v4728_v33 = vpack.c.bf16 %v64_v29, %v62_v28  ;;  %v4731_v34 = vpack.c.bf16 %v69_v31, %v67_v30  ;;  %v68_v36 = vld [vmem:[%s6565_s1 + $0x90] sm:$0xff]  ;;  %v71_v37 = vld [vmem:[%s6565_s1 + $0xa8] sm:$0xff] }
   0xa   :  { %3926 = vmatpush1.bf16.msra.mxu0 %v4678_v18  ;;  %v73_v38 = vld [vmem:[%s6565_s1 + $0xb8] sm:$0xff]  ;;  %v122_v39 = vld [vmem:[%s6569_s5 + $0x20] sm:$0xff]  ;;  %v4751_v40 = vpack.c.bf16 %v68_v36, %v66_v35  ;;  %v72_v43 = vld [vmem:[%s6565_s1 + $0xb0] sm:$0xff] }
   0xb   :  { %3928 = vmatprep.subr.bf16.mxu0 %v4685_v20  ;;  %v4754_v41 = vpack.c.bf16 %v73_v38, %v71_v37  ;;  %v70_v42 = vld [vmem:[%s6565_s1 + $0xa0] sm:$0xff]  ;;  %v75_v44 = vld [vmem:[%s6565_s1 + $0xc8] sm:$0xff]  ;;  %v77_v45 = vld [vmem:[%s6565_s1 + $0xd8] sm:$0xff] }
   0xc   :  { %3841 = vmatmul.mubr.msk.f32.gmra.mrb[4].mxu0 %vm469_vm0, %v120_v25  ;;  %v123_v46 = vld [vmem:[%s6569_s5 + $0x28] sm:$0xff]  ;;  %v4774_v47 = vpack.c.bf16 %v72_v43, %v70_v42  ;;  %v4777_v48 = vpack.c.bf16 %v77_v45, %v75_v44  ;;  %v74_v49 = vld [vmem:[%s6565_s1 + $0xc0] sm:$0xff]  ;;  %v76_v50 = vld [vmem:[%s6565_s1 + $0xd0] sm:$0xff] }
   0xd   :  { %612 = vmatprep.mubr.f32.mxu0 %v6579_v3  ;;  %v79_v51 = vld [vmem:[%s6565_s1 + $0xe8] sm:$0xff]  ;;  %v81_v52 = vld [vmem:[%s6565_s1 + $0xf8] sm:$0xff]  ;;  %v124_v53 = vld [vmem:[%s6569_s5 + $0x30] sm:$0xff]  ;;  %v4797_v54 = vpack.c.bf16 %v76_v50, %v74_v49 }
   0xe   :  { %3930 = vmatpush1.bf16.msra.mxu0 %v4705_v26  ;;  %v4800_v55 = vpack.c.bf16 %v81_v52, %v79_v51  ;;  %v78_v56 = vld [vmem:[%s6565_s1 + $0xe0] sm:$0xff]  ;;  %v80_v57 = vld [vmem:[%s6565_s1 + $0xf0] sm:$0xff]  ;;  %v83_v58 = vld [vmem:[%s6565_s1 + $0x108] sm:$0xff] }
   0xf   :  { %3932 = vmatprep.subr.bf16.mxu0 %v4708_v27  ;;  %v85_v59 = vld [vmem:[%s6565_s1 + $0x118] sm:$0xff]  ;;  %v4820_v61 = vpack.c.bf16 %v80_v57, %v78_v56  ;;  %v82_v63 = vld [vmem:[%s6565_s1 + $0x100] sm:$0xff]  ;;  %v84_v0 = vld [vmem:[%s6565_s1 + $0x110] sm:$0xff] }
  0x10   :  { %3842 = vmatmul.mubr.msk.f32.gmra.mrb[6].mxu0 %vm469_vm0, %v121_v32  ;;  %v125_v60 = vld [vmem:[%s6569_s5 + $0x38] sm:$0xff]  ;;  %v4823_v62 = vpack.c.bf16 %v85_v59, %v83_v58  ;;  %v87_v1 = vld [vmem:[%s6565_s1 + $0x128] sm:$0xff]  ;;  %v138_v4 = vld [vmem:[%s6570_s6] sm:$0xff] }
  0x11   :  { %618 = vmatprep.mubr.f32.mxu0 %v6579_v3  ;;  %v89_v2 = vld [vmem:[%s6565_s1 + $0x138] sm:$0xff]  ;;  %v126_v5 = vld [vmem:[%s6569_s5 + $0x40] sm:$0xff]  ;;  %320 = vperm.xlu0 %4452, %v138_v4   ;;  %v140_v7 = vld [vmem:[%s6570_s6 + $0x10] sm:$0xff] }
  0x12   :  { %3934 = vmatpush1.bf16.msra.mxu0 %v4728_v33 }
  0x13   :  { %3936 = vmatprep.subr.bf16.mxu0 %v4731_v34 }
  0x14   :  { %3843 = vmatmul.mubr.msk.f32.gmra.mrb[8].mxu0 %vm469_vm0, %v122_v39 }
  0x15   :  { %624 = vmatprep.mubr.f32.mxu0 %v6579_v3 }
  0x16   :  { %3938 = vmatpush1.bf16.msra.mxu0 %v4751_v40 }
  0x17   :  { %3940 = vmatprep.subr.bf16.mxu0 %v4754_v41 }
  0x18   :  { %3844 = vmatmul.mubr.msk.f32.gmra.mrb[10].mxu0 %vm469_vm0, %v123_v46 }
  0x19   :  { %630 = vmatprep.mubr.f32.mxu0 %v6579_v3 }
  0x1a   :  { %3942 = vmatpush1.bf16.msra.mxu0 %v4774_v47 }
  0x1b   :  { %3944 = vmatprep.subr.bf16.mxu0 %v4777_v48 }
  0x1c   :  { %3845 = vmatmul.mubr.msk.f32.gmra.mrb[12].mxu0 %vm469_vm0, %v124_v53 }
  0x1d   :  { %636 = vmatprep.mubr.f32.mxu0 %v6579_v3 }
  0x1e   :  { %3946 = vmatpush1.bf16.msra.mxu0 %v4797_v54 }
  0x1f   :  { %3948 = vmatprep.subr.bf16.mxu0 %v4800_v55 }
  0x20   :  { %3846 = vmatmul.mubr.msk.f32.gmra.mrb[14].mxu0 %vm469_vm0, %v125_v60 }
  0x21   :  { %642 = vmatprep.mubr.f32.mxu0 %v6579_v3 }
  0x22   :  { %17 = vsyncpa [#allocation3], 0  ;;  %3950 = vmatpush1.bf16.msra.mxu0 %v4820_v61  ;;  %v4849_v8 = vpack.c.bf16 %v84_v0, %v82_v63  ;;  %v139_v9 = vld [vmem:[%s6570_s6 + $0x8] sm:$0xff]  ;;  %330 = vperm.xlu1 %4453, %v140_v7   ;;  %v4855_v11 = vpack.c.bf16 %v89_v2, %v87_v1  ;;  %v86_v12 = vld [vmem:[%s6565_s1 + $0x120] sm:$0xff]  ;;  %vm804_vm1 = vcmask 261120   ;;  %vm1237_vm2 = vcmask 523264  }
  0x23   :  { %3952 = vmatprep.subr.bf16.mxu0 %v4823_v62  ;;  %v88_v13 = vld [vmem:[%s6565_s1 + $0x130] sm:$0xff]  ;;  %v141_v14 = vld [vmem:[%s6570_s6 + $0x18] sm:$0xff]  ;;  %v91_v16 = vld [vmem:[%s6565_s1 + $0x148] sm:$0xff]  ;;  %325 = vperm.xlu0 %4452, %v139_v9  }
  0x24   :  { %3847 = vmatmul.mubr.msk.f32.gmra.mrb[16].mxu0 %vm469_vm0, %v126_v5  ;;  %v93_v17 = vld [vmem:[%s6565_s1 + $0x158] sm:$0xff]  ;;  %v127_v19 = vld [vmem:[%s6569_s5 + $0x48] sm:$0xff]  ;;  %v4878_v21 = vpack.c.bf16 %v88_v13, %v86_v12  ;;  %v90_v23 = vld [vmem:[%s6565_s1 + $0x140] sm:$0xff] }
  0x25   :  { %648 = vmatprep.mubr.f32.mxu0 %v6579_v3  ;;  %v4881_v22 = vpack.c.bf16 %v93_v17, %v91_v16  ;;  %v92_v24 = vld [vmem:[%s6565_s1 + $0x150] sm:$0xff]  ;;  %v95_v25 = vld [vmem:[%s6565_s1 + $0x168] sm:$0xff]  ;;  %v97_v28 = vld [vmem:[%s6565_s1 + $0x178] sm:$0xff] }
  0x26   :  { %3954 = vmatpush1.bf16.msra.mxu0 %v4849_v8  ;;  %335 = vperm.xlu1 %4453, %v141_v14   ;;  %v128_v29 = vld [vmem:[%s6569_s5 + $0x50] sm:$0xff]  ;;  %v4901_v30 = vpack.c.bf16 %v92_v24, %v90_v23  ;;  %v4904_v31 = vpack.c.bf16 %v97_v28, %v95_v25  ;;  %v94_v32 = vld [vmem:[%s6565_s1 + $0x160] sm:$0xff]  ;;  %v99_v36 = vld [vmem:[%s6565_s1 + $0x188] sm:$0xff] }
  0x27   :  { %3956 = vmatprep.subr.bf16.mxu0 %v4855_v11  ;;  %v96_v35 = vld [vmem:[%s6565_s1 + $0x170] sm:$0xff]  ;;  %v101_v37 = vld [vmem:[%s6565_s1 + $0x198] sm:$0xff]  ;;  %v98_v43 = vld [vmem:[%s6565_s1 + $0x180] sm:$0xff] }
  0x28   :  { %3848 = vmatmul.mubr.msk.f32.gmra.mrb[18].mxu0 %vm469_vm0, %v127_v19  ;;  %v129_v38 = vld [vmem:[%s6569_s5 + $0x58] sm:$0xff]  ;;  %v4924_v39 = vpack.c.bf16 %v96_v35, %v94_v32  ;;  %v4927_v42 = vpack.c.bf16 %v101_v37, %v99_v36  ;;  %v100_v44 = vld [vmem:[%s6565_s1 + $0x190] sm:$0xff]  ;;  %v103_v45 = vld [vmem:[%s6565_s1 + $0x1a8] sm:$0xff] }
  0x29   :  { %654 = vmatprep.mubr.f32.mxu0 %v6579_v3  ;;  %v105_v46 = vld [vmem:[%s6565_s1 + $0x1b8] sm:$0xff]  ;;  %v130_v49 = vld [vmem:[%s6569_s5 + $0x60] sm:$0xff]  ;;  %v4947_v50 = vpack.c.bf16 %v100_v44, %v98_v43  ;;  %v104_v53 = vld [vmem:[%s6565_s1 + $0x1b0] sm:$0xff] }
  0x2a   :  { %3958 = vmatpush1.bf16.msra.mxu0 %v4878_v21  ;;  %6615 = vst [vmem:[#allocation6_spill] sm:$0xff] %v4927_v42  ;;  %v4950_v51 = vpack.c.bf16 %v105_v46, %v103_v45  ;;  %v102_v52 = vld [vmem:[%s6565_s1 + $0x1a0] sm:$0xff]  ;;  %v107_v56 = vld [vmem:[%s6565_s1 + $0x1c8] sm:$0xff]  ;;  %v109_v57 = vld [vmem:[%s6565_s1 + $0x1d8] sm:$0xff] }
  0x2b   :  { %3960 = vmatprep.subr.bf16.mxu0 %v4881_v22  ;;  %6616 = vst [vmem:[#allocation7_spill] sm:$0xff] %v4947_v50  ;;  %v131_v58 = vld [vmem:[%s6569_s5 + $0x68] sm:$0xff]  ;;  %v4970_v59 = vpack.c.bf16 %v104_v53, %v102_v52  ;;  %v4973_v60 = vpack.c.bf16 %v109_v57, %v107_v56  ;;  %v106_v63 = vld [vmem:[%s6565_s1 + $0x1c0] sm:$0xff]  ;;  %v108_v0 = vld [vmem:[%s6565_s1 + $0x1d0] sm:$0xff]  ;;  %v419_v56 = vlaneseq }
  0x2c   :  { %3849 = vmatmul.mubr.msk.f32.gmra.mrb[20].mxu0 %vm469_vm0, %v128_v29  ;;  %6617 = vst [vmem:[#allocation8_spill] sm:$0xff] %v4950_v51  ;;  %v111_v1 = vld [vmem:[%s6565_s1 + $0x1e8] sm:$0xff]  ;;  %v113_v2 = vld [vmem:[%s6565_s1 + $0x1f8] sm:$0xff]  ;;  %v132_v4 = vld [vmem:[%s6569_s5 + $0x70] sm:$0xff]  ;;  %v4993_v5 = vpack.c.bf16 %v108_v0, %v106_v63 }
  0x2d   :  { %660 = vmatprep.mubr.f32.mxu0 %v6579_v3  ;;  %6618 = vst [vmem:[#allocation9_spill] sm:$0xff] %v4970_v59  ;;  %6619 = vst [vmem:[#allocation10_spill] sm:$0xff] %v4973_v60  ;;  %v4996_v7 = vpack.c.bf16 %v113_v2, %v111_v1  ;;  %v110_v9 = vld [vmem:[%s6565_s1 + $0x1e0] sm:$0xff]  ;;  %v112_v12 = vld [vmem:[%s6565_s1 + $0x1f0] sm:$0xff]  ;;  %v5108_v57 = vshrl.u32 %v419_v56, 7 }
  0x2e   :  { %3962 = vmatpush1.bf16.msra.mxu0 %v4901_v30  ;;  %6620 = vst [vmem:[#allocation11_spill] sm:$0xff] %v4993_v5  ;;  %v133_v13 = vld [vmem:[%s6569_s5 + $0x78] sm:$0xff]  ;;  %v5010_v14 = vpack.c.bf16 %v112_v12, %v110_v9  ;;  %v134_v16 = vld [vmem:[%s6569_s5 + $0x80] sm:$0xff]  ;;  %v135_v17 = vld [vmem:[%s6569_s5 + $0x88] sm:$0xff] }
  0x2f   :  { %3964 = vmatprep.subr.bf16.mxu0 %v4904_v31  ;;  %6621 = vst [vmem:[#allocation12_spill] sm:$0xff] %v4996_v7  ;;  %v136_v19 = vld [vmem:[%s6569_s5 + $0x90] sm:$0xff]  ;;  %v137_v23 = vld [vmem:[%s6569_s5 + $0x98] sm:$0xff]  ;;  %v43_v24 = vld [vmem:[%s6564_s0 + $0x8] sm:$0xff]  ;;  %v6578_v63 = vsub.s32 0, %v5108_v57  ;;  %v6577_v1 = vsub.s32 1, %v5108_v57 }
  0x30   :  { %3850 = vmatmul.mubr.msk.f32.gmra.mrb[22].mxu0 %vm469_vm0, %v129_v38  ;;  %6622 = vst [vmem:[#allocation13_spill] sm:$0xff] %v5010_v14  ;;  %v42_v25 = vld [vmem:[%s6564_s0] sm:$0xff]  ;;  %v45_v28 = vld [vmem:[%s6564_s0 + $0x18] sm:$0xff]  ;;  %v44_v29 = vld [vmem:[%s6564_s0 + $0x10] sm:$0xff] }
  0x31   :  { %666 = vmatprep.mubr.f32.mxu0 %v6579_v3  ;;  %v47_v32 = vld [vmem:[%s6564_s0 + $0x28] sm:$0xff]  ;;  %v46_v35 = vld [vmem:[%s6564_s0 + $0x20] sm:$0xff]  ;;  %v49_v36 = vld [vmem:[%s6564_s0 + $0x38] sm:$0xff] }
  0x32   :  { %3966 = vmatpush1.bf16.msra.mxu0 %v4924_v39  ;;  %v48_v37 = vld [vmem:[%s6564_s0 + $0x30] sm:$0xff]  ;;  %v116_v0 = vld [vmem:[%s6567_s3] sm:$0x3] }
  0x33   :  { %3968 = vmatprep.subr.bf16.mxu0 %v4927_v42  ;;  %v5117_v2 = vrot.slane %v116_v0, %v6578_v63 }
  0x34   :  { %3851 = vmatmul.mubr.msk.f32.gmra.mrb[24].mxu0 %vm469_vm0, %v130_v49 }
  0x35   :  { %672 = vmatprep.mubr.f32.mxu0 %v6579_v3  ;;  %6631 = vst [vmem:[#allocation22_spill] sm:$0xff] %v5117_v2 }
  0x36   :  { %3970 = vmatpush1.bf16.msra.mxu0 %v4947_v50 }
  0x37   :  { %3972 = vmatprep.subr.bf16.mxu0 %v4950_v51 }
  0x38   :  { %3852 = vmatmul.mubr.msk.f32.gmra.mrb[26].mxu0 %vm469_vm0, %v131_v58 }
  0x39   :  { %678 = vmatprep.mubr.f32.mxu0 %v6579_v3 }
  0x3a   :  { %3974 = vmatpush1.bf16.msra.mxu0 %v4970_v59 }
  0x3b   :  { %3976 = vmatprep.subr.bf16.mxu0 %v4973_v60 }
  0x3c   :  { %3853 = vmatmul.mubr.msk.f32.gmra.mrb[28].mxu0 %vm469_vm0, %v132_v4  ;;  %v5121_v4 = vrot.slane %v116_v0, %v6577_v1 }
  0x3d   :  { %684 = vmatprep.mubr.f32.mxu0 %v6579_v3 }
  0x3e   :  { %3978 = vmatpush1.bf16.msra.mxu0 %v4993_v5  ;;  %6632 = vst [vmem:[#allocation23_spill] sm:$0xff] %v5121_v4 }
  0x3f   :  { %3980 = vmatprep.subr.bf16.mxu0 %v4996_v7 }
  0x40   :  { %3854 = vmatmul.mubr.msk.f32.gmra.mrb[30].mxu0 %vm469_vm0, %v133_v13 }
  0x41   :  { %690 = vmatprep.mubr.f32.mxu0 %v6579_v3 }
  0x42   :  { %3982 = vmatpush1.bf16.msra.mxu0 %v5010_v14 }
  0x43   :  { %4096 = vmatprep.subr.bf16.mxu0 %v4644_v6 }
  0x44   :  { %3855 = vmatmul.mubr.msk.f32.gmra.mrb[32].mxu0 %vm469_vm0, %v134_v16 }
  0x45   :  { %696 = vmatprep.mubr.f32.mxu0 %v6579_v3 }
  0x48   :  { %3856 = vmatmul.mubr.msk.f32.gmra.mrb[34].mxu0 %vm469_vm0, %v135_v17 }
  0x49   :  { %702 = vmatprep.mubr.f32.mxu0 %v6579_v3 }
  0x4c   :  { %3857 = vmatmul.mubr.msk.f32.gmra.mrb[36].mxu0 %vm469_vm0, %v136_v19 }
  0x4d   :  { %708 = vmatprep.mubr.f32.mxu0 %v6579_v3 }
  0x50   :  { %3858 = vmatmul.mubr.msk.f32.gmra.mrb[38].mxu0 %vm469_vm0, %v137_v23 }
  0x51   :  { %779 = vmatprep.mubr.f32.mxu0 %v43_v24 }
  0x54   :  { %780 = vmatmul.mubr.f32.vlgmr.msra.gmra.mrb[0].mxu0 %v42_v25 }
  0x55   :  { %785 = vmatprep.mubr.f32.mxu0 %v45_v28  ;;  %4098 = vmatpush1.bf16.msra.mxu0 %v4653_v10 }
  0x56   :  { %4100 = vmatprep.subr.bf16.mxu0 %v4669_v15 }
  0x58   :  { %786 = vmatmul.mubr.f32.gmra.mrb[2].mxu0 %v44_v29 }
  0x59   :  { %791 = vmatprep.mubr.f32.mxu0 %v47_v32  ;;  %4102 = vmatpush1.bf16.msra.mxu0 %v4678_v18 }
  0x5a   :  { %4104 = vmatprep.subr.bf16.mxu0 %v4685_v20 }
  0x5c   :  { %792 = vmatmul.mubr.f32.gmra.mrb[4].mxu0 %v46_v35 }
  0x5d   :  { %797 = vmatprep.mubr.f32.mxu0 %v49_v36  ;;  %4106 = vmatpush1.bf16.msra.mxu0 %v4705_v26 }
  0x5e   :  { %4108 = vmatprep.subr.bf16.mxu0 %v4708_v27 }
  0x60   :  { %798 = vmatmul.mubr.f32.gmra.mrb[6].mxu0 %v48_v37 }
  0x61   :  { %4110 = vmatpush1.bf16.msra.mxu0 %v4728_v33 }
  0x62   :  { %4112 = vmatprep.subr.bf16.mxu0 %v4731_v34 }
  0x65   :  { %4114 = vmatpush1.bf16.msra.mxu0 %v4751_v40 }
  0x66   :  { %4116 = vmatprep.subr.bf16.mxu0 %v4754_v41 }
  0x69   :  { %4118 = vmatpush1.bf16.msra.mxu0 %v4774_v47 }
  0x6a   :  { %4120 = vmatprep.subr.bf16.mxu0 %v4777_v48 }
  0x6d   :  { %4122 = vmatpush1.bf16.msra.mxu0 %v4797_v54 }
  0x6e   :  { %4124 = vmatprep.subr.bf16.mxu0 %v4800_v55 }
  0x71   :  { %4126 = vmatpush1.bf16.msra.mxu0 %v4820_v61 }
  0x72   :  { %4128 = vmatprep.subr.bf16.mxu0 %v4823_v62 }
  0x75   :  { %4130 = vmatpush1.bf16.msra.mxu0 %v4849_v8 }
  0x76   :  { %4132 = vmatprep.subr.bf16.mxu0 %v4855_v11 }
  0x79   :  { %4134 = vmatpush1.bf16.msra.mxu0 %v4878_v21 }
  0x7a   :  { %4136 = vmatprep.subr.bf16.mxu0 %v4881_v22 }
  0x7d   :  { %4138 = vmatpush1.bf16.msra.mxu0 %v4901_v30 }
  0x7e   :  { %4140 = vmatprep.subr.bf16.mxu0 %v4904_v31 }
  0x81   :  { %4142 = vmatpush1.bf16.msra.mxu0 %v4924_v39 }
  0x82   :  { %4144 = vmatprep.subr.bf16.mxu0 %v4927_v42 }
  0x85   :  { %4146 = vmatpush1.bf16.msra.mxu0 %v4947_v50 }
  0x86   :  { %4148 = vmatprep.subr.bf16.mxu0 %v4950_v51 }
  0x89   :  { %4150 = vmatpush1.bf16.msra.mxu0 %v4970_v59 }
  0x8a   :  { %4152 = vmatprep.subr.bf16.mxu0 %v4973_v60 }
  0x8d   :  { %4154 = vmatpush1.bf16.msra.mxu0 %v4993_v5 }
  0x8e   :  { %4156 = vmatprep.subr.bf16.mxu0 %v4996_v7 }
  0x90   :  { %v321_v58 = vpop.permute.xlu0 %320 }
  0x91   :  { %4158 = vmatpush1.bf16.msra.mxu0 %v5010_v14  ;;  %v429_v13 = vmul.f32 %v5117_v2, %v321_v58  ;;  %v430_v19 = vmul.f32 %v5121_v4, %v321_v58 }
  0x92   :  { %4184 = vmatprep.subr.bf16.mxu0 %v4644_v6 }
  0xa1   :  { %v331_v23 = vpop.permute.xlu1 %330 }
  0xa2   :  { %v326_v9 = vpop.permute.xlu0 %325  ;;  %v433_v63 = vmul.f32 %v5117_v2, %v331_v23 }
  0xa3   :  { %v431_v17 = vmul.f32 %v5117_v2, %v326_v9  ;;  %v432_v24 = vmul.f32 %v5121_v4, %v326_v9 }
  0xa5   :  { %v336_v56 = vpop.permute.xlu1 %335 }
  0xa6   :  { %v435_v58 = vmul.f32 %v5117_v2, %v336_v56 }
  0xe7   :  { %v5092_v38 = vpop.f32.mrb[8].mxu0 }
  0xe8   :  { %6623 = vst [vmem:[#allocation14_spill] sm:$0xff] %v5092_v38  ;;  %v5094_v43 = vpop.f32.mrb[9].mxu0 }
  0xe9   :  { %6624 = vst [vmem:[#allocation15_spill] sm:$0xff] %v5094_v43 }
  0xeb   :  { %v5096_v44 = vpop.f32.mrb[10].mxu0 }
  0xec   :  { %6625 = vst [vmem:[#allocation16_spill] sm:$0xff] %v5096_v44  ;;  %v5098_v45 = vpop.f32.mrb[11].mxu0 }
  0xed   :  { %6626 = vst [vmem:[#allocation17_spill] sm:$0xff] %v5098_v45 }
  0xef   :  { %v5100_v46 = vpop.f32.mrb[12].mxu0 }
  0xf0   :  { %6627 = vst [vmem:[#allocation18_spill] sm:$0xff] %v5100_v46  ;;  %v5102_v49 = vpop.f32.mrb[13].mxu0 }
  0xf1   :  { %6628 = vst [vmem:[#allocation19_spill] sm:$0xff] %v5102_v49 }
  0xf3   :  { %v5104_v52 = vpop.f32.mrb[14].mxu0 }
  0xf4   :  { %6629 = vst [vmem:[#allocation20_spill] sm:$0xff] %v5104_v52  ;;  %v5106_v53 = vpop.f32.mrb[15].mxu0 }
  0xf5   :  { %6630 = vst [vmem:[#allocation21_spill] sm:$0xff] %v5106_v53  ;;  %v434_v53 = vmul.f32 %v5121_v4, %v331_v23  ;;  %v158_v23 = vld [vmem:[%s6571_s7] sm:$0xff] }
 0x127   :  { %v781_v12 = vpop.f32.mrb[0].mxu0 }
 0x128   :  { %v783_v16 = vpop.f32.mrb[1].mxu0  ;;  %v4367_v28 = vadd.f32 %v781_v12, %v429_v13  ;;  %v436_v12 = vmul.f32 %v5121_v4, %v336_v56  ;;  %v6634_v56 = vsub.s32 0, %v5108_v57 }
 0x129   :  { %v4368_v35 = vadd.f32 %v783_v16, %v430_v19 }
 0x12b   :  { %v787_v25 = vpop.f32.mrb[2].mxu0 }
 0x12c   :  { %v4369_v29 = vadd.f32 %v787_v25, %v431_v17  ;;  %v789_v32 = vpop.f32.mrb[3].mxu0 }
 0x12d   :  { %v4370_v36 = vadd.f32 %v789_v32, %v432_v24  ;;  %v163_v32 = vld [vmem:[%s6571_s7 + $0x28] sm:$0xff] }
 0x12e   :  { %v3985_v37 = vpack.c.bf16 %v4369_v29, %v4367_v28  ;;  %v162_v29 = vld [vmem:[%s6571_s7 + $0x20] sm:$0xff] }
 0x12f   :  { %v793_v0 = vpop.f32.mrb[4].mxu0  ;;  %v3983_v1 = vpack.c.bf16 %v4370_v36, %v4368_v35  ;;  %v164_v35 = vld [vmem:[%s6571_s7 + $0x30] sm:$0xff]  ;;  %v165_v36 = vld [vmem:[%s6571_s7 + $0x38] sm:$0xff] }
 0x130   :  { %v795_v3 = vpop.f32.mrb[5].mxu0  ;;  %v4371_v13 = vadd.f32 %v793_v0, %v433_v63  ;;  %v159_v63 = vld [vmem:[%s6571_s7 + $0x8] sm:$0xff] }
 0x131   :  { %3984 = vmatprep.subr.bf16.mxu1 %v3983_v1  ;;  %v4372_v19 = vadd.f32 %v795_v3, %v434_v53  ;;  %v6633_v1 = vmov 0.0   ;;  %v160_v3 = vld [vmem:[%s6571_s7 + $0x10] sm:$0xff]  ;;  %v161_v53 = vld [vmem:[%s6571_s7 + $0x18] sm:$0xff] }
 0x132   :  { %3986 = vmatpush1.bf16.msra.mxu1 %v3985_v37  ;;  %v117_v37 = vld [vmem:[%s6568_s4] sm:$0x3] }
 0x133   :  { %v799_v9 = vpop.f32.mrb[6].mxu0  ;;  %v5176_v0 = vrot.slane %v117_v37, %v6634_v56 }
 0x134   :  { %v4373_v17 = vadd.f32 %v799_v9, %v435_v58  ;;  %v801_v16 = vpop.f32.mrb[7].mxu0  ;;  %v6636_v58 = vsub.s32 1, %v5108_v57 }
 0x135   :  { %v4374_v24 = vadd.f32 %v801_v16, %v436_v12  ;;  %6635 = vst [vmem:[#allocation24_spill] sm:$0xff] %v5176_v0 }
 0x136   :  { %v3989_v25 = vpack.c.bf16 %v4373_v17, %v4371_v13  ;;  %v5180_v9 = vrot.slane %v117_v37, %v6636_v58 }
 0x137   :  { %v3987_v28 = vpack.c.bf16 %v4374_v24, %v4372_v19 }
 0x138   :  { %6637 = vst [vmem:[#allocation25_spill] sm:$0xff] %v5180_v9 }
 0x139   :  { %3988 = vmatprep.subr.bf16.mxu1 %v3987_v28 }
 0x13a   :  { %3990 = vmatpush1.bf16.msra.mxu1 %v3989_v25 }
 0x13d   :  { %3859 = vmatmul.mubr.msk.f32.vlgmr.msra.gmra.mrb[0].mxu1 %vm804_vm1, %v158_v23 }
 0x13e   :  { %899 = vmatprep.mubr.f32.mxu1 %v6633_v1 }
 0x141   :  { %3860 = vmatmul.mubr.msk.f32.gmra.mrb[2].mxu1 %vm804_vm1, %v159_v63 }
 0x142   :  { %905 = vmatprep.mubr.f32.mxu1 %v6633_v1 }
 0x145   :  { %3861 = vmatmul.mubr.msk.f32.gmra.mrb[4].mxu1 %vm804_vm1, %v160_v3 }
 0x146   :  { %911 = vmatprep.mubr.f32.mxu1 %v6633_v1 }
 0x149   :  { %3862 = vmatmul.mubr.msk.f32.gmra.mrb[6].mxu1 %vm804_vm1, %v161_v53 }
 0x14a   :  { %917 = vmatprep.mubr.f32.mxu1 %v6633_v1 }
 0x14d   :  { %3863 = vmatmul.mubr.msk.f32.gmra.mrb[8].mxu1 %vm804_vm1, %v162_v29 }
 0x14e   :  { %923 = vmatprep.mubr.f32.mxu1 %v6633_v1 }
 0x151   :  { %3864 = vmatmul.mubr.msk.f32.gmra.mrb[10].mxu1 %vm804_vm1, %v163_v32 }
 0x152   :  { %929 = vmatprep.mubr.f32.mxu1 %v6633_v1 }
 0x155   :  { %3865 = vmatmul.mubr.msk.f32.gmra.mrb[12].mxu1 %vm804_vm1, %v164_v35 }
 0x156   :  { %935 = vmatprep.mubr.f32.mxu1 %v6633_v1 }
 0x159   :  { %3866 = vmatmul.mubr.msk.f32.gmra.mrb[14].mxu1 %vm804_vm1, %v165_v36 }
 0x15a   :  { %1314 = vmatprep.mubr.f32.mxu1 %v6633_v1 }
 0x210   :  { %v895_v12 = vpop.f32.mrb[0].mxu1 }
 0x211   :  { %v953_v13 = vmul.f32 %v5176_v0, %v895_v12  ;;  %v897_v17 = vpop.f32.mrb[1].mxu1 }
 0x212   :  { %v954_v16 = vmul.f32 %v5180_v9, %v897_v17 }
 0x214   :  { %v901_v19 = vpop.f32.mrb[2].mxu1  ;;  %v969_v24 = vadd.f32 %v954_v16, %v953_v13 }
 0x215   :  { %v955_v25 = vmul.f32 %v5176_v0, %v901_v19  ;;  %v903_v28 = vpop.f32.mrb[3].mxu1 }
 0x216   :  { %v956_v23 = vmul.f32 %v5180_v9, %v903_v28  ;;  %970 = vadd.xlane.f32.xlu0 %v969_v24 }
 0x218   :  { %v907_v63 = vpop.f32.mrb[4].mxu1  ;;  %v972_v3 = vadd.f32 %v956_v23, %v955_v25 }
 0x219   :  { %v957_v57 = vmul.f32 %v5176_v0, %v907_v63  ;;  %v909_v53 = vpop.f32.mrb[5].mxu1 }
 0x21a   :  { %v958_v29 = vmul.f32 %v5180_v9, %v909_v53  ;;  %973 = vadd.xlane.f32.xlu1 %v972_v3 }
 0x21c   :  { %v913_v32 = vpop.f32.mrb[6].mxu1  ;;  %v975_v35 = vadd.f32 %v958_v29, %v957_v57 }
 0x21d   :  { %v959_v36 = vmul.f32 %v5176_v0, %v913_v32  ;;  %v915_v37 = vpop.f32.mrb[7].mxu1 }
 0x21e   :  { %v960_v56 = vmul.f32 %v5180_v9, %v915_v37  ;;  %976 = vadd.xlane.f32.xlu0 %v975_v35 }
 0x220   :  { %v919_v58 = vpop.f32.mrb[8].mxu1  ;;  %v978_v13 = vadd.f32 %v960_v56, %v959_v36 }
 0x221   :  { %v961_v16 = vmul.f32 %v5176_v0, %v919_v58  ;;  %v921_v24 = vpop.f32.mrb[9].mxu1 }
 0x222   :  { %v962_v25 = vmul.f32 %v5180_v9, %v921_v24  ;;  %979 = vadd.xlane.f32.xlu0 %v978_v13 }
 0x224   :  { %v925_v23 = vpop.f32.mrb[10].mxu1  ;;  %v981_v52 = vadd.f32 %v962_v25, %v961_v16 }
 0x225   :  { %v963_v3 = vmul.f32 %v5176_v0, %v925_v23  ;;  %v927_v49 = vpop.f32.mrb[11].mxu1 }
 0x226   :  { %v964_v57 = vmul.f32 %v5180_v9, %v927_v49  ;;  %982 = vadd.xlane.f32.xlu1 %v981_v52 }
 0x228   :  { %v5194_v29 = vpop.f32.mrb[12].mxu1  ;;  %v984_v46 = vadd.f32 %v964_v57, %v963_v3 }
 0x229   :  { %v965_v35 = vmul.f32 %v5176_v0, %v5194_v29  ;;  %v933_v36 = vpop.f32.mrb[13].mxu1 }
 0x22a   :  { %v966_v56 = vmul.f32 %v5180_v9, %v933_v36  ;;  %985 = vadd.xlane.f32.xlu0 %v984_v46 }
 0x22c   :  { %v5199_v45 = vpop.f32.mrb[14].mxu1  ;;  %v987_v13 = vadd.f32 %v966_v56, %v965_v35 }
 0x22d   :  { %v967_v16 = vmul.f32 %v5176_v0, %v5199_v45  ;;  %v5203_v25 = vpop.f32.mrb[15].mxu1 }
 0x22e   :  { %v968_v52 = vmul.f32 %v5180_v9, %v5203_v25  ;;  %988 = vadd.xlane.f32.xlu1 %v987_v13 }
 0x230   :  { %v990_v3 = vadd.f32 %v968_v52, %v967_v16 }
 0x232   :  { %991 = vadd.xlane.f32.xlu0 %v990_v3 }
 0x2a3   :  { %v971_v57 = vpop.xlane.xlu0 %970 }
 0x2a4   :  { %v5207_v44 = vsub.f32 %v895_v12, %v971_v57  ;;  %v5209_v43 = vsub.f32 %v897_v17, %v971_v57 }
 0x2a6   :  { %v1009_v46 = vmul.f32 %v5207_v44, %v5207_v44  ;;  %v1010_v35 = vmul.f32 %v5209_v43, %v5209_v43 }
 0x2a7   :  { %v974_v56 = vpop.xlane.xlu1 %973 }
 0x2a8   :  { %v5215_v38 = vsub.f32 %v901_v19, %v974_v56  ;;  %v5217_v4 = vsub.f32 %v903_v28, %v974_v56  ;;  %v1025_v13 = vmul.f32 %v1009_v46, %v5176_v0  ;;  %v1026_v16 = vmul.f32 %v1010_v35, %v5180_v9 }
 0x2aa   :  { %v1041_v52 = vadd.f32 %v1026_v16, %v1025_v13  ;;  %v1011_v12 = vmul.f32 %v5215_v38, %v5215_v38  ;;  %v1012_v17 = vmul.f32 %v5217_v4, %v5217_v4 }
 0x2ab   :  { %v977_v3 = vpop.xlane.xlu0 %976 }
 0x2ac   :  { %v5225_v57 = vsub.f32 %v907_v63, %v977_v3  ;;  %v5227_v2 = vsub.f32 %v909_v53, %v977_v3  ;;  %1042 = vadd.xlane.f32.xlu1 %v1041_v52  ;;  %v1027_v19 = vmul.f32 %v1011_v12, %v5176_v0  ;;  %v1028_v28 = vmul.f32 %v1012_v17, %v5180_v9 }
 0x2ae   :  { %v1044_v46 = vadd.f32 %v1028_v28, %v1027_v19  ;;  %v1013_v35 = vmul.f32 %v5225_v57, %v5225_v57  ;;  %v1014_v56 = vmul.f32 %v5227_v2, %v5227_v2 }
 0x2af   :  { %v980_v13 = vpop.xlane.xlu0 %979 }
 0x2b0   :  { %v5235_v16 = vsub.f32 %v913_v32, %v980_v13  ;;  %v5237_v14 = vsub.f32 %v915_v37, %v980_v13  ;;  %1045 = vadd.xlane.f32.xlu0 %v1044_v46  ;;  %v1029_v63 = vmul.f32 %v1013_v35, %v5176_v0  ;;  %v1030_v53 = vmul.f32 %v1014_v56, %v5180_v9 }
 0x2b2   :  { %v1047_v52 = vadd.f32 %v1030_v53, %v1029_v63  ;;  %v1015_v12 = vmul.f32 %v5235_v16, %v5235_v16  ;;  %v1016_v17 = vmul.f32 %v5237_v14, %v5237_v14 }
 0x2b3   :  { %v983_v3 = vpop.xlane.xlu1 %982 }
 0x2b4   :  { %v5245_v19 = vsub.f32 %v919_v58, %v983_v3  ;;  %v5247_v28 = vsub.f32 %v921_v24, %v983_v3  ;;  %1048 = vadd.xlane.f32.xlu1 %v1047_v52  ;;  %v1031_v32 = vmul.f32 %v1015_v12, %v5176_v0  ;;  %v1032_v37 = vmul.f32 %v1016_v17, %v5180_v9 }
 0x2b6   :  { %v1050_v46 = vadd.f32 %v1032_v37, %v1031_v32  ;;  %v1017_v35 = vmul.f32 %v5245_v19, %v5245_v19  ;;  %v1018_v56 = vmul.f32 %v5247_v28, %v5247_v28 }
 0x2b7   :  { %v986_v13 = vpop.xlane.xlu0 %985 }
 0x2b8   :  { %v5255_v63 = vsub.f32 %v925_v23, %v986_v13  ;;  %v5257_v53 = vsub.f32 %v927_v49, %v986_v13  ;;  %1051 = vadd.xlane.f32.xlu0 %v1050_v46  ;;  %v1033_v58 = vmul.f32 %v1017_v35, %v5176_v0  ;;  %v1034_v24 = vmul.f32 %v1018_v56, %v5180_v9 }
 0x2ba   :  { %v1053_v52 = vadd.f32 %v1034_v24, %v1033_v58  ;;  %v1019_v12 = vmul.f32 %v5255_v63, %v5255_v63  ;;  %v1020_v17 = vmul.f32 %v5257_v53, %v5257_v53 }
 0x2bb   :  { %v989_v3 = vpop.xlane.xlu1 %988 }
 0x2bc   :  { %v5266_v32 = vsub.f32 %v5194_v29, %v989_v3  ;;  %v5268_v23 = vsub.f32 %v933_v36, %v989_v3  ;;  %1054 = vadd.xlane.f32.xlu1 %v1053_v52  ;;  %v1035_v49 = vmul.f32 %v1019_v12, %v5176_v0  ;;  %v1036_v37 = vmul.f32 %v1020_v17, %v5180_v9 }
 0x2be   :  { %v1056_v46 = vadd.f32 %v1036_v37, %v1035_v49  ;;  %v1021_v35 = vmul.f32 %v5266_v32, %v5266_v32  ;;  %v1022_v56 = vmul.f32 %v5268_v23, %v5268_v23  ;;  %v239_v37 = vld [vmem:[%s6573_s9 + $0x8] sm:$0xff] }
 0x2bf   :  { %v992_v13 = vpop.xlane.xlu0 %991 }
 0x2c0   :  { %v5277_v58 = vsub.f32 %v5199_v45, %v992_v13  ;;  %v5280_v29 = vsub.f32 %v5203_v25, %v992_v13  ;;  %1057 = vadd.xlane.f32.xlu0 %v1056_v46  ;;  %v1037_v36 = vmul.f32 %v1021_v35, %v5176_v0  ;;  %v1038_v24 = vmul.f32 %v1022_v56, %v5180_v9  ;;  %v238_v25 = vld [vmem:[%s6573_s9] sm:$0xff]  ;;  %v241_v46 = vld [vmem:[%s6573_s9 + $0x18] sm:$0xff]  ;;  %v240_v35 = vld [vmem:[%s6573_s9 + $0x10] sm:$0xff] }
 0x2c1   :  { %v243_v56 = vld [vmem:[%s6573_s9 + $0x28] sm:$0xff]  ;;  %v242_v13 = vld [vmem:[%s6573_s9 + $0x20] sm:$0xff] }
 0x2c2   :  { %v1059_v52 = vadd.f32 %v1038_v24, %v1037_v36  ;;  %v1023_v12 = vmul.f32 %v5277_v58, %v5277_v58  ;;  %v1024_v17 = vmul.f32 %v5280_v29, %v5280_v29 }
 0x2c4   :  { %1060 = vadd.xlane.f32.xlu1 %v1059_v52  ;;  %v1039_v3 = vmul.f32 %v1023_v12, %v5176_v0  ;;  %v1040_v45 = vmul.f32 %v1024_v17, %v5180_v9 }
 0x2c6   :  { %v1062_v49 = vadd.f32 %v1040_v45, %v1039_v3  ;;  %v198_v45 = vld [vmem:[%s6572_s8] sm:$0xff] }
 0x2c8   :  { %1063 = vadd.xlane.f32.xlu0 %v1062_v49 }
 0x2d5   :  { %1147 = vperm.xlu1 %4453, %v238_v25  }
 0x2d9   :  { %1152 = vperm.xlu1 %4453, %v239_v37  }
 0x2dd   :  { %1162 = vperm.xlu1 %4453, %v241_v46  }
 0x2de   :  { %1157 = vperm.xlu0 %4452, %v240_v35   ;;  %v199_v35 = vld [vmem:[%s6572_s8 + $0x8] sm:$0xff] }
 0x2e1   :  { %1172 = vperm.xlu1 %4453, %v243_v56  }
 0x2e2   :  { %1167 = vperm.xlu0 %4452, %v242_v13  }
 0x339   :  { %v1043_v36 = vpop.xlane.xlu1 %1042 }
 0x33a   :  { %v1065_v24 = vadd.f32 1e-05, %v1043_v36 }
 0x33c   :  { %4454 = vrsqrt.f32 %v1065_v24 }
 0x33d   :  { %v1046_v52 = vpop.xlane.xlu0 %1045 }
 0x33e   :  { %v1066_v12 = vadd.f32 1e-05, %v1046_v52  ;;  %v200_v52 = vld [vmem:[%s6572_s8 + $0x10] sm:$0xff] }
 0x340   :  { %4456 = vrsqrt.f32 %v1066_v12 }
 0x341   :  { %v1049_v17 = vpop.xlane.xlu1 %1048 }
 0x342   :  { %v1067_v3 = vadd.f32 1e-05, %v1049_v17 }
 0x344   :  { %4458 = vrsqrt.f32 %v1067_v3 }
 0x345   :  { %v1052_v49 = vpop.xlane.xlu0 %1051 }
 0x346   :  { %v4455_v25 = vpop.eup %4454  ;;  %v1068_v37 = vadd.f32 1e-05, %v1052_v49  ;;  %v201_v49 = vld [vmem:[%s6572_s8 + $0x18] sm:$0xff] }
 0x347   :  { %v1081_v46 = vmul.f32 %v4455_v25, %v198_v45 }
 0x348   :  { %4460 = vrsqrt.f32 %v1068_v37 }
 0x349   :  { %1091 = vperm.xlu1 %4453, %v1081_v46   ;;  %v1055_v56 = vpop.xlane.xlu1 %1054 }
 0x34a   :  { %v4457_v13 = vpop.eup %4456  ;;  %v1069_v36 = vadd.f32 1e-05, %v1055_v56  ;;  %v202_v56 = vld [vmem:[%s6572_s8 + $0x20] sm:$0xff] }
 0x34b   :  { %v1082_v24 = vmul.f32 %v4457_v13, %v199_v35 }
 0x34c   :  { %4462 = vrsqrt.f32 %v1069_v36 }
 0x34d   :  { %1096 = vperm.xlu0 %4452, %v1082_v24   ;;  %v1058_v12 = vpop.xlane.xlu0 %1057 }
 0x34e   :  { %v4459_v17 = vpop.eup %4458  ;;  %v1070_v3 = vadd.f32 1e-05, %v1058_v12  ;;  %v203_v12 = vld [vmem:[%s6572_s8 + $0x28] sm:$0xff] }
 0x34f   :  { %v1083_v45 = vmul.f32 %v4459_v17, %v200_v52 }
 0x350   :  { %4464 = vrsqrt.f32 %v1070_v3 }
 0x351   :  { %v1061_v25 = vpop.xlane.xlu1 %1060  ;;  %1101 = vperm.xlu0 %4452, %v1083_v45   ;;  %v204_v45 = vld [vmem:[%s6572_s8 + $0x30] sm:$0xff] }
 0x352   :  { %v4461_v37 = vpop.eup %4460  ;;  %v1071_v46 = vadd.f32 1e-05, %v1061_v25 }
 0x353   :  { %v1084_v35 = vmul.f32 %v4461_v37, %v201_v49  ;;  %v205_v37 = vld [vmem:[%s6572_s8 + $0x38] sm:$0xff] }
 0x354   :  { %4466 = vrsqrt.f32 %v1071_v46 }
 0x355   :  { %1106 = vperm.xlu1 %4453, %v1084_v35   ;;  %v1064_v13 = vpop.xlane.xlu0 %1063  ;;  %v244_v35 = vld [vmem:[%s6573_s9 + $0x30] sm:$0xff] }
 0x356   :  { %v4463_v36 = vpop.eup %4462  ;;  %v1072_v24 = vadd.f32 1e-05, %v1064_v13  ;;  %v298_v13 = vld [vmem:[%s6575_s11] sm:$0xff] }
 0x357   :  { %v1085_v52 = vmul.f32 %v4463_v36, %v202_v56  ;;  %v245_v36 = vld [vmem:[%s6573_s9 + $0x38] sm:$0xff] }
 0x358   :  { %4468 = vrsqrt.f32 %v1072_v24  ;;  %v300_v24 = vld [vmem:[%s6575_s11 + $0x10] sm:$0xff] }
 0x359   :  { %1111 = vperm.xlu0 %4452, %v1085_v52   ;;  %v299_v52 = vld [vmem:[%s6575_s11 + $0x8] sm:$0xff] }
 0x35a   :  { %v4465_v17 = vpop.eup %4464 }
 0x35b   :  { %v1086_v3 = vmul.f32 %v4465_v17, %v203_v12  ;;  %v142_v12 = vld [vmem:[%s6570_s6 + $0x20] sm:$0xff]  ;;  %v301_v17 = vld [vmem:[%s6575_s11 + $0x18] sm:$0xff] }
 0x35d   :  { %1116 = vperm.xlu1 %4453, %v1086_v3   ;;  %v144_v3 = vld [vmem:[%s6570_s6 + $0x30] sm:$0xff] }
 0x35e   :  { %v4467_v49 = vpop.eup %4466 }
 0x35f   :  { %v1087_v25 = vmul.f32 %v4467_v49, %v204_v45  ;;  %v143_v45 = vld [vmem:[%s6570_s6 + $0x28] sm:$0xff]  ;;  %v145_v49 = vld [vmem:[%s6570_s6 + $0x38] sm:$0xff] }
 0x361   :  { %1121 = vperm.xlu0 %4452, %v1087_v25   ;;  %v1148_v25 = vpop.permute.xlu1 %1147 }
 0x362   :  { %v4469_v46 = vpop.eup %4468 }
 0x363   :  { %v1088_v56 = vmul.f32 %v4469_v46, %v205_v37 }
 0x365   :  { %1177 = vperm.xlu0 %4452, %v244_v35   ;;  %1126 = vperm.xlu1 %4453, %v1088_v56   ;;  %v1153_v37 = vpop.permute.xlu1 %1152  ;;  %v1158_v35 = vpop.permute.xlu0 %1157 }
 0x369   :  { %1219 = vperm.xlu0 %4452, %v298_v13   ;;  %1182 = vperm.xlu1 %4453, %v245_v36   ;;  %v1163_v46 = vpop.permute.xlu1 %1162  ;;  %v1168_v13 = vpop.permute.xlu0 %1167 }
 0x36d   :  { %1229 = vperm.xlu0 %4452, %v300_v24   ;;  %1224 = vperm.xlu1 %4453, %v299_v52   ;;  %v1173_v56 = vpop.permute.xlu1 %1172 }
 0x371   :  { %340 = vperm.xlu0 %4452, %v142_v12   ;;  %1234 = vperm.xlu1 %4453, %v301_v17  }
 0x375   :  { %350 = vperm.xlu0 %4452, %v144_v3   ;;  %345 = vperm.xlu1 %4453, %v143_v45  }
 0x379   :  { %355 = vperm.xlu1 %4453, %v145_v49  }
 0x3c8   :  { %v1092_v36 = vpop.permute.xlu1 %1091 }
 0x3c9   :  { %v1129_v24 = vmul.f32 %v1092_v36, %v5207_v44  ;;  %v1130_v52 = vmul.f32 %v1092_v36, %v5209_v43 }
 0x3cb   :  { %v1185_v12 = vadd.f32 %v1148_v25, %v1129_v24  ;;  %v1186_v17 = vadd.f32 %v1148_v25, %v1130_v52 }
 0x3cc   :  { %v1097_v3 = vpop.permute.xlu0 %1096 }
 0x3cd   :  { %v1131_v45 = vmul.f32 %v1097_v3, %v5215_v38  ;;  %v1132_v9 = vmul.f32 %v1097_v3, %v5217_v4  ;;  %v1201_v7 = vmax.f32 %v1185_v12, 0.0  ;;  %v1202_v60 = vmax.f32 %v1186_v17, 0.0 }
 0x3cf   :  { %v1187_v0 = vadd.f32 %v1153_v37, %v1131_v45  ;;  %v1188_v49 = vadd.f32 %v1153_v37, %v1132_v9 }
 0x3d0   :  { %v1102_v5 = vpop.permute.xlu0 %1101 }
 0x3d1   :  { %v1203_v59 = vmax.f32 %v1187_v0, 0.0  ;;  %v1133_v51 = vmul.f32 %v1102_v5, %v5225_v57  ;;  %v1134_v50 = vmul.f32 %v1102_v5, %v5227_v2  ;;  %v1204_v44 = vmax.f32 %v1188_v49, 0.0 }
 0x3d3   :  { %v3991_v42 = vpack.c.bf16 %v1204_v44, %v1202_v60  ;;  %v3993_v43 = vpack.c.bf16 %v1203_v59, %v1201_v7  ;;  %v1189_v36 = vadd.f32 %v1158_v35, %v1133_v51  ;;  %v1190_v25 = vadd.f32 %v1158_v35, %v1134_v50 }
 0x3d4   :  { %v1107_v24 = vpop.permute.xlu1 %1106 }
 0x3d5   :  { %v1135_v38 = vmul.f32 %v1107_v24, %v5235_v16  ;;  %v1136_v4 = vmul.f32 %v1107_v24, %v5237_v14  ;;  %3992 = vmatprep.subr.bf16.mxu1 %v3991_v42  ;;  %v1205_v52 = vmax.f32 %v1189_v36, 0.0  ;;  %v1206_v12 = vmax.f32 %v1190_v25, 0.0 }
 0x3d6   :  { %3994 = vmatpush1.bf16.msra.mxu1 %v3993_v43 }
 0x3d7   :  { %v1191_v9 = vadd.f32 %v1163_v46, %v1135_v38  ;;  %v1192_v37 = vadd.f32 %v1163_v46, %v1136_v4 }
 0x3d8   :  { %v1112_v0 = vpop.permute.xlu0 %1111 }
 0x3d9   :  { %v1207_v57 = vmax.f32 %v1191_v9, 0.0  ;;  %v1137_v5 = vmul.f32 %v1112_v0, %v5245_v19  ;;  %v1138_v60 = vmul.f32 %v1112_v0, %v5247_v28  ;;  %v1208_v59 = vmax.f32 %v1192_v37, 0.0 }
 0x3db   :  { %v3995_v51 = vpack.c.bf16 %v1208_v59, %v1206_v12  ;;  %v3997_v50 = vpack.c.bf16 %v1207_v57, %v1205_v52  ;;  %v1193_v2 = vadd.f32 %v1168_v13, %v1137_v5  ;;  %v1194_v16 = vadd.f32 %v1168_v13, %v1138_v60  ;;  %v6638_v60 = vld [vmem:[#allocation6_spill] sm:$0xff]  ;;  %v6639_v59 = vld [vmem:[#allocation7_spill] sm:$0xff] }
 0x3dc   :  { %v1117_v7 = vpop.permute.xlu1 %1116 }
 0x3dd   :  { %v1139_v14 = vmul.f32 %v1117_v7, %v5255_v63  ;;  %v1140_v42 = vmul.f32 %v1117_v7, %v5257_v53  ;;  %3996 = vmatprep.subr.bf16.mxu1 %v3995_v51  ;;  %v1209_v3 = vmax.f32 %v1193_v2, 0.0  ;;  %v1210_v19 = vmax.f32 %v1194_v16, 0.0  ;;  %v6640_v51 = vld [vmem:[#allocation8_spill] sm:$0xff]  ;;  %v6642_v7 = vld [vmem:[#allocation10_spill] sm:$0xff]  ;;  %v6643_v2 = vld [vmem:[#allocation11_spill] sm:$0xff] }
 0x3de   :  { %3998 = vmatpush1.bf16.msra.mxu1 %v3997_v50  ;;  %v6641_v50 = vld [vmem:[#allocation9_spill] sm:$0xff]  ;;  %v6644_v16 = vld [vmem:[#allocation12_spill] sm:$0xff] }
 0x3df   :  { %v1195_v46 = vadd.f32 %v1173_v56, %v1139_v14  ;;  %v1196_v35 = vadd.f32 %v1173_v56, %v1140_v42  ;;  %v6645_v14 = vld [vmem:[#allocation13_spill] sm:$0xff] }
 0x3e0   :  { %v1122_v17 = vpop.permute.xlu0 %1121 }
 0x3e1   :  { %v1211_v45 = vmax.f32 %v1195_v46, 0.0  ;;  %v1212_v49 = vmax.f32 %v1196_v35, 0.0  ;;  %v1141_v25 = vmul.f32 %v1122_v17, %v5266_v32  ;;  %v1142_v13 = vmul.f32 %v1122_v17, %v5268_v23  ;;  %v278_v32 = vld [vmem:[%s6574_s10] sm:$0xff]  ;;  %v279_v23 = vld [vmem:[%s6574_s10 + $0x8] sm:$0xff] }
 0x3e3   :  { %v3999_v28 = vpack.c.bf16 %v1212_v49, %v1210_v19  ;;  %v4001_v44 = vpack.c.bf16 %v1211_v45, %v1209_v3 }
 0x3e4   :  { %v1127_v43 = vpop.permute.xlu1 %1126  ;;  %v1178_v36 = vpop.permute.xlu0 %1177 }
 0x3e5   :  { %4000 = vmatprep.subr.bf16.mxu1 %v3999_v28  ;;  %v1143_v63 = vmul.f32 %v1127_v43, %v5277_v58  ;;  %v1144_v53 = vmul.f32 %v1127_v43, %v5280_v29  ;;  %v1197_v56 = vadd.f32 %v1178_v36, %v1141_v25  ;;  %v1198_v24 = vadd.f32 %v1178_v36, %v1142_v13  ;;  %v280_v58 = vld [vmem:[%s6574_s10 + $0x10] sm:$0xff]  ;;  %v281_v29 = vld [vmem:[%s6574_s10 + $0x18] sm:$0xff] }
 0x3e6   :  { %4002 = vmatpush1.bf16.msra.mxu1 %v4001_v44 }
 0x3e7   :  { %v1213_v37 = vmax.f32 %v1197_v56, 0.0  ;;  %v1214_v52 = vmax.f32 %v1198_v24, 0.0 }
 0x3e8   :  { %v1183_v38 = vpop.permute.xlu1 %1182  ;;  %v1220_v42 = vpop.permute.xlu0 %1219 }
 0x3e9   :  { %v1199_v4 = vadd.f32 %v1183_v38, %v1143_v63  ;;  %v1200_v9 = vadd.f32 %v1183_v38, %v1144_v53 }
 0x3eb   :  { %v1215_v0 = vmax.f32 %v1199_v4, 0.0  ;;  %v1216_v12 = vmax.f32 %v1200_v9, 0.0 }
 0x3ec   :  { %v1225_v45 = vpop.permute.xlu1 %1224  ;;  %v1230_v25 = vpop.permute.xlu0 %1229 }
 0x3ed   :  { %v4005_v57 = vpack.c.bf16 %v1215_v0, %v1213_v37  ;;  %v4003_v5 = vpack.c.bf16 %v1216_v12, %v1214_v52 }
 0x3ef   :  { %4004 = vmatprep.subr.bf16.mxu1 %v4003_v5 }
 0x3f0   :  { %4006 = vmatpush1.bf16.msra.mxu1 %v4005_v57  ;;  %v1235_v4 = vpop.permute.xlu1 %1234 }
 0x3f1   :  { %4008 = vmatprep.subr.bf16.mxu1 %v4644_v6 }
 0x3f3   :  { %3867 = vmatmul.mubr.msk.f32.vlgmr.msra.gmra.mrb[16].mxu1 %vm1237_vm2, %v278_v32 }
 0x3f4   :  { %1320 = vmatprep.mubr.f32.mxu1 %v6633_v1  ;;  %4010 = vmatpush1.bf16.msra.mxu1 %v4653_v10 }
 0x3f5   :  { %4012 = vmatprep.subr.bf16.mxu1 %v4669_v15 }
 0x3f7   :  { %3868 = vmatmul.mubr.msk.f32.gmra.mrb[18].mxu1 %vm1237_vm2, %v279_v23  ;;  %v341_v23 = vpop.permute.xlu0 %340 }
 0x3f8   :  { %1326 = vmatprep.mubr.f32.mxu1 %v6633_v1  ;;  %4014 = vmatpush1.bf16.msra.mxu1 %v4678_v18 }
 0x3f9   :  { %4016 = vmatprep.subr.bf16.mxu1 %v4685_v20 }
 0x3fb   :  { %3869 = vmatmul.mubr.msk.f32.gmra.mrb[20].mxu1 %vm1237_vm2, %v280_v58  ;;  %v6646_v58 = vld [vmem:[#allocation22_spill] sm:$0xff] }
 0x3fc   :  { %1332 = vmatprep.mubr.f32.mxu1 %v6633_v1  ;;  %4018 = vmatpush1.bf16.msra.mxu1 %v4705_v26 }
 0x3fd   :  { %4020 = vmatprep.subr.bf16.mxu1 %v4708_v27 }
 0x3ff   :  { %3870 = vmatmul.mubr.msk.f32.gmra.mrb[22].mxu1 %vm1237_vm2, %v281_v29  ;;  %v437_v29 = vmul.f32 %v6646_v58, %v341_v23 }
 0x400   :  { %4022 = vmatpush1.bf16.msra.mxu1 %v4728_v33 }
 0x401   :  { %4024 = vmatprep.subr.bf16.mxu1 %v4731_v34 }
 0x404   :  { %4026 = vmatpush1.bf16.msra.mxu1 %v4751_v40 }
 0x405   :  { %4028 = vmatprep.subr.bf16.mxu1 %v4754_v41 }
 0x408   :  { %4030 = vmatpush1.bf16.msra.mxu1 %v4774_v47 }
 0x409   :  { %4032 = vmatprep.subr.bf16.mxu1 %v4777_v48 }
 0x40c   :  { %4034 = vmatpush1.bf16.msra.mxu1 %v4797_v54 }
 0x40d   :  { %4036 = vmatprep.subr.bf16.mxu1 %v4800_v55 }
 0x410   :  { %4038 = vmatpush1.bf16.msra.mxu1 %v4820_v61 }
 0x411   :  { %4040 = vmatprep.subr.bf16.mxu1 %v4823_v62 }
 0x414   :  { %4042 = vmatpush1.bf16.msra.mxu1 %v4849_v8 }
 0x415   :  { %4044 = vmatprep.subr.bf16.mxu1 %v4855_v11 }
 0x418   :  { %4046 = vmatpush1.bf16.msra.mxu1 %v4878_v21 }
 0x419   :  { %4048 = vmatprep.subr.bf16.mxu1 %v4881_v22 }
 0x41c   :  { %4050 = vmatpush1.bf16.msra.mxu1 %v4901_v30 }
 0x41d   :  { %4052 = vmatprep.subr.bf16.mxu1 %v4904_v31 }
 0x420   :  { %4054 = vmatpush1.bf16.msra.mxu1 %v4924_v39 }
 0x421   :  { %4056 = vmatprep.subr.bf16.mxu1 %v6638_v60 }
 0x424   :  { %4058 = vmatpush1.bf16.msra.mxu1 %v6639_v59 }
 0x425   :  { %4060 = vmatprep.subr.bf16.mxu1 %v6640_v51 }
 0x428   :  { %4062 = vmatpush1.bf16.msra.mxu1 %v6641_v50 }
 0x429   :  { %4064 = vmatprep.subr.bf16.mxu1 %v6642_v7 }
 0x42c   :  { %4066 = vmatpush1.bf16.msra.mxu1 %v6643_v2 }
 0x42d   :  { %4068 = vmatprep.subr.bf16.mxu1 %v6644_v16 }
 0x430   :  { %4070 = vmatpush1.bf16.msra.mxu1 %v6645_v14 }
 0x4c6   :  { %v1316_v46 = vpop.f32.mrb[16].mxu1 }
 0x4c7   :  { %v1317_v35 = vadd.f32 %v1316_v46, %v1220_v42  ;;  %v1318_v17 = vpop.f32.mrb[17].mxu1 }
 0x4c8   :  { %v1319_v3 = vadd.f32 %v1318_v17, %v1220_v42  ;;  %v6647_v42 = vld [vmem:[#allocation23_spill] sm:$0xff] }
 0x4c9   :  { %v1339_v28 = vmax.f32 %v1317_v35, 0.0  ;;  %v438_v46 = vmul.f32 %v6647_v42, %v341_v23  ;;  %v346_v35 = vpop.permute.xlu1 %345 }
 0x4ca   :  { %v1340_v19 = vmax.f32 %v1319_v3, 0.0  ;;  %v1322_v49 = vpop.f32.mrb[18].mxu1  ;;  %v439_v17 = vmul.f32 %v6646_v58, %v346_v35  ;;  %v6648_v3 = vld [vmem:[#allocation14_spill] sm:$0xff] }
 0x4cb   :  { %v1323_v44 = vadd.f32 %v1322_v49, %v1225_v45  ;;  %v1324_v43 = vpop.f32.mrb[19].mxu1  ;;  %v351_v49 = vpop.permute.xlu0 %350 }
 0x4cc   :  { %v1325_v36 = vadd.f32 %v1324_v43, %v1225_v45  ;;  %1411 = vmatprep.mubr.f32.mxu1 %v1340_v19  ;;  %v621_v45 = vadd.f32 %v6648_v3, %v437_v29  ;;  %v440_v19 = vmul.f32 %v6647_v42, %v346_v35  ;;  %v6653_v3 = vld [vmem:[#allocation19_spill] sm:$0xff] }
 0x4cd   :  { %1412 = vmatmul.mubr.f32.vlgmr.msra.gmra.mrb[24].mxu1 %v1339_v28  ;;  %v1341_v53 = vmax.f32 %v1323_v44, 0.0  ;;  %v6649_v44 = vld [vmem:[#allocation15_spill] sm:$0xff] }
 0x4ce   :  { %v1342_v13 = vmax.f32 %v1325_v36, 0.0  ;;  %v1328_v63 = vpop.f32.mrb[20].mxu1  ;;  %v623_v43 = vadd.f32 %v6649_v44, %v438_v46 }
 0x4cf   :  { %v1329_v56 = vadd.f32 %v1328_v63, %v1230_v25  ;;  %v1330_v24 = vpop.f32.mrb[21].mxu1  ;;  %v441_v63 = vmul.f32 %v6646_v58, %v351_v49 }
 0x4d0   :  { %v1331_v38 = vadd.f32 %v1330_v24, %v1230_v25  ;;  %1417 = vmatprep.mubr.f32.mxu1 %v1342_v13  ;;  %v442_v24 = vmul.f32 %v6647_v42, %v351_v49 }
 0x4d1   :  { %1418 = vmatmul.mubr.f32.gmra.mrb[26].mxu1 %v1341_v53  ;;  %v1343_v52 = vmax.f32 %v1329_v56, 0.0  ;;  %v6650_v53 = vld [vmem:[#allocation16_spill] sm:$0xff] }
 0x4d2   :  { %v1344_v9 = vmax.f32 %v1331_v38, 0.0  ;;  %v1334_v37 = vpop.f32.mrb[22].mxu1  ;;  %v627_v56 = vadd.f32 %v6650_v53, %v439_v17  ;;  %v356_v38 = vpop.permute.xlu1 %355  ;;  %v635_v17 = vadd.f32 %v6653_v3, %v442_v24  ;;  %v167_v24 = vld [vmem:[%s6571_s7 + $0x48] sm:$0xff] }
 0x4d3   :  { %v1335_v0 = vadd.f32 %v1334_v37, %v1235_v4  ;;  %v1336_v12 = vpop.f32.mrb[23].mxu1  ;;  %v444_v29 = vmul.f32 %v6647_v42, %v356_v38 }
 0x4d4   :  { %v1337_v57 = vadd.f32 %v1336_v12, %v1235_v4  ;;  %1423 = vmatprep.mubr.f32.mxu1 %v1344_v9  ;;  %v6651_v9 = vld [vmem:[#allocation17_spill] sm:$0xff] }
 0x4d5   :  { %1424 = vmatmul.mubr.f32.gmra.mrb[28].mxu1 %v1343_v52  ;;  %v1345_v32 = vmax.f32 %v1335_v0, 0.0  ;;  %v629_v37 = vadd.f32 %v6651_v9, %v440_v19  ;;  %v6654_v19 = vld [vmem:[#allocation20_spill] sm:$0xff] }
 0x4d6   :  { %v1346_v5 = vmax.f32 %v1337_v57, 0.0  ;;  %v443_v57 = vmul.f32 %v6646_v58, %v356_v38  ;;  %v168_v38 = vld [vmem:[%s6571_s7 + $0x50] sm:$0xff] }
 0x4d8   :  { %1429 = vmatprep.mubr.f32.mxu1 %v1346_v5  ;;  %v639_v44 = vadd.f32 %v6654_v19, %v443_v57  ;;  %v173_v57 = vld [vmem:[%s6571_s7 + $0x78] sm:$0xff] }
 0x4d9   :  { %1430 = vmatmul.mubr.f32.gmra.mrb[30].mxu1 %v1345_v32  ;;  %v6652_v32 = vld [vmem:[#allocation18_spill] sm:$0xff] }
 0x4da   :  { %1524 = vmatprep.mubr.f32.mxu1 %v6633_v1  ;;  %v633_v23 = vadd.f32 %v6652_v32, %v441_v63  ;;  %v6656_v32 = vld [vmem:[#allocation24_spill] sm:$0xff] }
 0x5a0   :  { %v1413_v28 = vpop.f32.mrb[24].mxu1 }
 0x5a1   :  { %v1414_v36 = vadd.f32 %v1413_v28, %v621_v45  ;;  %v1415_v25 = vpop.f32.mrb[25].mxu1 }
 0x5a2   :  { %v1416_v13 = vadd.f32 %v1415_v25, %v623_v43  ;;  %v6655_v25 = vld [vmem:[#allocation21_spill] sm:$0xff] }
 0x5a3   :  { %v641_v53 = vadd.f32 %v6655_v25, %v444_v29 }
 0x5a4   :  { %v1419_v4 = vpop.f32.mrb[26].mxu1 }
 0x5a5   :  { %v1420_v52 = vadd.f32 %v1419_v4, %v627_v56  ;;  %v1421_v0 = vpop.f32.mrb[27].mxu1 }
 0x5a6   :  { %v1422_v12 = vadd.f32 %v1421_v0, %v629_v37  ;;  %v169_v37 = vld [vmem:[%s6571_s7 + $0x58] sm:$0xff]  ;;  %v171_v0 = vld [vmem:[%s6571_s7 + $0x68] sm:$0xff] }
 0x5a7   :  { %v4073_v5 = vpack.c.bf16 %v1420_v52, %v1414_v36  ;;  %v170_v52 = vld [vmem:[%s6571_s7 + $0x60] sm:$0xff] }
 0x5a8   :  { %v4071_v46 = vpack.c.bf16 %v1422_v12, %v1416_v13  ;;  %v1425_v35 = vpop.f32.mrb[28].mxu1  ;;  %v166_v13 = vld [vmem:[%s6571_s7 + $0x40] sm:$0xff]  ;;  %v172_v12 = vld [vmem:[%s6571_s7 + $0x70] sm:$0xff] }
 0x5a9   :  { %v1426_v45 = vadd.f32 %v1425_v35, %v633_v23  ;;  %v1427_v49 = vpop.f32.mrb[29].mxu1 }
 0x5aa   :  { %v1428_v28 = vadd.f32 %v1427_v49, %v635_v17  ;;  %4072 = vmatprep.subr.bf16.mxu1 %v4071_v46  ;;  %v6657_v46 = vld [vmem:[#allocation25_spill] sm:$0xff] }
 0x5ab   :  { %4074 = vmatpush1.bf16.msra.mxu1 %v4073_v5 }
 0x5ac   :  { %v1431_v43 = vpop.f32.mrb[30].mxu1 }
 0x5ad   :  { %v1432_v56 = vadd.f32 %v1431_v43, %v639_v44  ;;  %v1433_v36 = vpop.f32.mrb[31].mxu1 }
 0x5ae   :  { %v1434_v4 = vadd.f32 %v1433_v36, %v641_v53 }
 0x5af   :  { %v4077_v63 = vpack.c.bf16 %v1432_v56, %v1426_v45 }
 0x5b0   :  { %v4075_v9 = vpack.c.bf16 %v1434_v4, %v1428_v28 }
 0x5b2   :  { %4076 = vmatprep.subr.bf16.mxu1 %v4075_v9 }
 0x5b3   :  { %4078 = vmatpush1.bf16.msra.mxu1 %v4077_v63 }
 0x5b6   :  { %3871 = vmatmul.mubr.msk.f32.vlgmr.msra.gmra.mrb[32].mxu1 %vm804_vm1, %v166_v13 }
 0x5b7   :  { %1530 = vmatprep.mubr.f32.mxu1 %v6633_v1 }
 0x5ba   :  { %3872 = vmatmul.mubr.msk.f32.gmra.mrb[34].mxu1 %vm804_vm1, %v167_v24 }
 0x5bb   :  { %1536 = vmatprep.mubr.f32.mxu1 %v6633_v1 }
 0x5be   :  { %3873 = vmatmul.mubr.msk.f32.gmra.mrb[36].mxu1 %vm804_vm1, %v168_v38 }
 0x5bf   :  { %1542 = vmatprep.mubr.f32.mxu1 %v6633_v1 }
 0x5c2   :  { %3874 = vmatmul.mubr.msk.f32.gmra.mrb[38].mxu1 %vm804_vm1, %v169_v37 }
 0x5c3   :  { %1548 = vmatprep.mubr.f32.mxu1 %v6633_v1 }
 0x5c6   :  { %3875 = vmatmul.mubr.msk.f32.gmra.mrb[40].mxu1 %vm804_vm1, %v170_v52 }
 0x5c7   :  { %1554 = vmatprep.mubr.f32.mxu1 %v6633_v1 }
 0x5ca   :  { %3876 = vmatmul.mubr.msk.f32.gmra.mrb[42].mxu1 %vm804_vm1, %v171_v0 }
 0x5cb   :  { %1560 = vmatprep.mubr.f32.mxu1 %v6633_v1 }
 0x5ce   :  { %3877 = vmatmul.mubr.msk.f32.gmra.mrb[44].mxu1 %vm804_vm1, %v172_v12 }
 0x5cf   :  { %1566 = vmatprep.mubr.f32.mxu1 %v6633_v1 }
 0x5d2   :  { %3878 = vmatmul.mubr.msk.f32.gmra.mrb[46].mxu1 %vm804_vm1, %v173_v57 }
 0x5d3   :  { %1933 = vmatprep.mubr.f32.mxu1 %v6633_v1 }
 0x689   :  { %v1526_v5 = vpop.f32.mrb[32].mxu1 }
 0x68a   :  { %v1573_v23 = vmul.f32 %v1526_v5, %v6656_v32  ;;  %v1528_v29 = vpop.f32.mrb[33].mxu1 }
 0x68b   :  { %v1574_v35 = vmul.f32 %v1528_v29, %v6657_v46 }
 0x68d   :  { %v1532_v3 = vpop.f32.mrb[34].mxu1  ;;  %v1589_v17 = vadd.f32 %v1574_v35, %v1573_v23 }
 0x68e   :  { %v1575_v45 = vmul.f32 %v1532_v3, %v6656_v32  ;;  %v1534_v49 = vpop.f32.mrb[35].mxu1 }
 0x68f   :  { %v1576_v28 = vmul.f32 %v1534_v49, %v6657_v46  ;;  %1590 = vadd.xlane.f32.xlu0 %v1589_v17 }
 0x691   :  { %v1538_v19 = vpop.f32.mrb[36].mxu1  ;;  %v1592_v44 = vadd.f32 %v1576_v28, %v1575_v45 }
 0x692   :  { %v1577_v43 = vmul.f32 %v1538_v19, %v6656_v32  ;;  %v1540_v25 = vpop.f32.mrb[37].mxu1 }
 0x693   :  { %v1578_v53 = vmul.f32 %v1540_v25, %v6657_v46  ;;  %1593 = vadd.xlane.f32.xlu1 %v1592_v44 }
 0x695   :  { %v1544_v56 = vpop.f32.mrb[38].mxu1  ;;  %v1595_v36 = vadd.f32 %v1578_v53, %v1577_v43 }
 0x696   :  { %v1579_v4 = vmul.f32 %v1544_v56, %v6656_v32  ;;  %v1546_v63 = vpop.f32.mrb[39].mxu1 }
 0x697   :  { %v1580_v9 = vmul.f32 %v1546_v63, %v6657_v46  ;;  %1596 = vadd.xlane.f32.xlu0 %v1595_v36 }
 0x699   :  { %v1550_v13 = vpop.f32.mrb[40].mxu1  ;;  %v1598_v24 = vadd.f32 %v1580_v9, %v1579_v4 }
 0x69a   :  { %v1581_v38 = vmul.f32 %v1550_v13, %v6656_v32  ;;  %v1552_v37 = vpop.f32.mrb[41].mxu1 }
 0x69b   :  { %v1582_v52 = vmul.f32 %v1552_v37, %v6657_v46  ;;  %1599 = vadd.xlane.f32.xlu0 %v1598_v24 }
 0x69d   :  { %v1556_v0 = vpop.f32.mrb[42].mxu1  ;;  %v1601_v12 = vadd.f32 %v1582_v52, %v1581_v38 }
 0x69e   :  { %v1583_v57 = vmul.f32 %v1556_v0, %v6656_v32  ;;  %v1558_v23 = vpop.f32.mrb[43].mxu1 }
 0x69f   :  { %v1584_v35 = vmul.f32 %v1558_v23, %v6657_v46  ;;  %1602 = vadd.xlane.f32.xlu1 %v1601_v12 }
 0x6a1   :  { %v5498_v17 = vpop.f32.mrb[44].mxu1  ;;  %v1604_v45 = vadd.f32 %v1584_v35, %v1583_v57 }
 0x6a2   :  { %v1585_v28 = vmul.f32 %v5498_v17, %v6656_v32  ;;  %v1564_v44 = vpop.f32.mrb[45].mxu1 }
 0x6a3   :  { %v1586_v43 = vmul.f32 %v1564_v44, %v6657_v46  ;;  %1605 = vadd.xlane.f32.xlu0 %v1604_v45 }
 0x6a5   :  { %v5503_v53 = vpop.f32.mrb[46].mxu1  ;;  %v1607_v36 = vadd.f32 %v1586_v43, %v1585_v28 }
 0x6a6   :  { %v1587_v4 = vmul.f32 %v5503_v53, %v6656_v32  ;;  %v5507_v9 = vpop.f32.mrb[47].mxu1 }
 0x6a7   :  { %v1588_v24 = vmul.f32 %v5507_v9, %v6657_v46  ;;  %1608 = vadd.xlane.f32.xlu1 %v1607_v36 }
 0x6a9   :  { %v1610_v38 = vadd.f32 %v1588_v24, %v1587_v4 }
 0x6ab   :  { %1611 = vadd.xlane.f32.xlu0 %v1610_v38 }
 0x71c   :  { %v1591_v52 = vpop.xlane.xlu0 %1590 }
 0x71d   :  { %v5511_v12 = vsub.f32 %v1526_v5, %v1591_v52  ;;  %v5513_v57 = vsub.f32 %v1528_v29, %v1591_v52 }
 0x71f   :  { %v1629_v35 = vmul.f32 %v5511_v12, %v5511_v12  ;;  %v1630_v45 = vmul.f32 %v5513_v57, %v5513_v57 }
 0x720   :  { %v1594_v28 = vpop.xlane.xlu1 %1593 }
 0x721   :  { %v5519_v43 = vsub.f32 %v1532_v3, %v1594_v28  ;;  %v5521_v42 = vsub.f32 %v1534_v49, %v1594_v28  ;;  %v1645_v36 = vmul.f32 %v1629_v35, %v6656_v32  ;;  %v1646_v4 = vmul.f32 %v1630_v45, %v6657_v46 }
 0x723   :  { %v1661_v24 = vadd.f32 %v1646_v4, %v1645_v36  ;;  %v1631_v5 = vmul.f32 %v5519_v43, %v5519_v43  ;;  %v1632_v29 = vmul.f32 %v5521_v42, %v5521_v42 }
 0x724   :  { %v1597_v38 = vpop.xlane.xlu0 %1596 }
 0x725   :  { %v5529_v52 = vsub.f32 %v1538_v19, %v1597_v38  ;;  %v5531_v58 = vsub.f32 %v1540_v25, %v1597_v38  ;;  %1662 = vadd.xlane.f32.xlu1 %v1661_v24  ;;  %v1647_v3 = vmul.f32 %v1631_v5, %v6656_v32  ;;  %v1648_v49 = vmul.f32 %v1632_v29, %v6657_v46 }
 0x727   :  { %v1664_v35 = vadd.f32 %v1648_v49, %v1647_v3  ;;  %v1633_v45 = vmul.f32 %v5529_v52, %v5529_v52  ;;  %v1634_v28 = vmul.f32 %v5531_v58, %v5531_v58 }
 0x728   :  { %v1600_v36 = vpop.xlane.xlu0 %1599 }
 0x729   :  { %v5539_v4 = vsub.f32 %v1544_v56, %v1600_v36  ;;  %v5541_v6 = vsub.f32 %v1546_v63, %v1600_v36  ;;  %1665 = vadd.xlane.f32.xlu0 %v1664_v35  ;;  %v1649_v19 = vmul.f32 %v1633_v45, %v6656_v32  ;;  %v1650_v25 = vmul.f32 %v1634_v28, %v6657_v46 }
 0x72b   :  { %v1667_v24 = vadd.f32 %v1650_v25, %v1649_v19  ;;  %v1635_v5 = vmul.f32 %v5539_v4, %v5539_v4  ;;  %v1636_v29 = vmul.f32 %v5541_v6, %v5541_v6 }
 0x72c   :  { %v1603_v38 = vpop.xlane.xlu1 %1602 }
 0x72d   :  { %v5549_v3 = vsub.f32 %v1550_v13, %v1603_v38  ;;  %v5551_v49 = vsub.f32 %v1552_v37, %v1603_v38  ;;  %1668 = vadd.xlane.f32.xlu1 %v1667_v24  ;;  %v1651_v56 = vmul.f32 %v1635_v5, %v6656_v32  ;;  %v1652_v63 = vmul.f32 %v1636_v29, %v6657_v46 }
 0x72f   :  { %v1670_v35 = vadd.f32 %v1652_v63, %v1651_v56  ;;  %v1637_v45 = vmul.f32 %v5549_v3, %v5549_v3  ;;  %v1638_v28 = vmul.f32 %v5551_v49, %v5551_v49 }
 0x730   :  { %v1606_v36 = vpop.xlane.xlu0 %1605 }
 0x731   :  { %v5559_v19 = vsub.f32 %v1556_v0, %v1606_v36  ;;  %v5561_v25 = vsub.f32 %v1558_v23, %v1606_v36  ;;  %1671 = vadd.xlane.f32.xlu0 %v1670_v35  ;;  %v1653_v13 = vmul.f32 %v1637_v45, %v6656_v32  ;;  %v1654_v37 = vmul.f32 %v1638_v28, %v6657_v46 }
 0x733   :  { %v1673_v24 = vadd.f32 %v1654_v37, %v1653_v13  ;;  %v1639_v5 = vmul.f32 %v5559_v19, %v5559_v19  ;;  %v1640_v29 = vmul.f32 %v5561_v25, %v5561_v25 }
 0x734   :  { %v1609_v38 = vpop.xlane.xlu1 %1608 }
 0x735   :  { %v5570_v56 = vsub.f32 %v5498_v17, %v1609_v38  ;;  %v5572_v0 = vsub.f32 %v1564_v44, %v1609_v38  ;;  %1674 = vadd.xlane.f32.xlu1 %v1673_v24  ;;  %v1655_v23 = vmul.f32 %v1639_v5, %v6656_v32  ;;  %v1656_v63 = vmul.f32 %v1640_v29, %v6657_v46 }
 0x737   :  { %v1676_v35 = vadd.f32 %v1656_v63, %v1655_v23  ;;  %v1641_v45 = vmul.f32 %v5570_v56, %v5570_v56  ;;  %v1642_v28 = vmul.f32 %v5572_v0, %v5572_v0  ;;  %v247_v63 = vld [vmem:[%s6573_s9 + $0x48] sm:$0xff] }
 0x738   :  { %v1612_v36 = vpop.xlane.xlu0 %1611 }
 0x739   :  { %v5581_v13 = vsub.f32 %v5503_v53, %v1612_v36  ;;  %v5584_v17 = vsub.f32 %v5507_v9, %v1612_v36  ;;  %1677 = vadd.xlane.f32.xlu0 %v1676_v35  ;;  %v1657_v44 = vmul.f32 %v1641_v45, %v6656_v32  ;;  %v1658_v37 = vmul.f32 %v1642_v28, %v6657_v46  ;;  %v246_v9 = vld [vmem:[%s6573_s9 + $0x40] sm:$0xff]  ;;  %v249_v35 = vld [vmem:[%s6573_s9 + $0x58] sm:$0xff]  ;;  %v248_v45 = vld [vmem:[%s6573_s9 + $0x50] sm:$0xff] }
 0x73a   :  { %v251_v28 = vld [vmem:[%s6573_s9 + $0x68] sm:$0xff]  ;;  %v250_v36 = vld [vmem:[%s6573_s9 + $0x60] sm:$0xff] }
 0x73b   :  { %v1679_v24 = vadd.f32 %v1658_v37, %v1657_v44  ;;  %v1643_v5 = vmul.f32 %v5581_v13, %v5581_v13  ;;  %v1644_v29 = vmul.f32 %v5584_v17, %v5584_v17 }
 0x73d   :  { %1680 = vadd.xlane.f32.xlu1 %v1679_v24  ;;  %v1659_v38 = vmul.f32 %v1643_v5, %v6656_v32  ;;  %v1660_v53 = vmul.f32 %v1644_v29, %v6657_v46 }
 0x73f   :  { %v1682_v23 = vadd.f32 %v1660_v53, %v1659_v38  ;;  %v206_v53 = vld [vmem:[%s6572_s8 + $0x40] sm:$0xff] }
 0x741   :  { %1683 = vadd.xlane.f32.xlu0 %v1682_v23 }
 0x74e   :  { %1767 = vperm.xlu1 %4453, %v246_v9  }
 0x752   :  { %1772 = vperm.xlu1 %4453, %v247_v63  }
 0x756   :  { %1782 = vperm.xlu1 %4453, %v249_v35  }
 0x757   :  { %1777 = vperm.xlu0 %4452, %v248_v45   ;;  %v207_v45 = vld [vmem:[%s6572_s8 + $0x48] sm:$0xff] }
 0x75a   :  { %1792 = vperm.xlu1 %4453, %v251_v28  }
 0x75b   :  { %1787 = vperm.xlu0 %4452, %v250_v36  }
 0x7b2   :  { %v1663_v44 = vpop.xlane.xlu1 %1662 }
 0x7b3   :  { %v1685_v37 = vadd.f32 1e-05, %v1663_v44 }
 0x7b5   :  { %4470 = vrsqrt.f32 %v1685_v37 }
 0x7b6   :  { %v1666_v24 = vpop.xlane.xlu0 %1665 }
 0x7b7   :  { %v1686_v5 = vadd.f32 1e-05, %v1666_v24  ;;  %v208_v24 = vld [vmem:[%s6572_s8 + $0x50] sm:$0xff] }
 0x7b9   :  { %4472 = vrsqrt.f32 %v1686_v5 }
 0x7ba   :  { %v1669_v29 = vpop.xlane.xlu1 %1668 }
 0x7bb   :  { %v1687_v38 = vadd.f32 1e-05, %v1669_v29 }
 0x7bd   :  { %4474 = vrsqrt.f32 %v1687_v38 }
 0x7be   :  { %v1672_v23 = vpop.xlane.xlu0 %1671 }
 0x7bf   :  { %v4471_v9 = vpop.eup %4470  ;;  %v1688_v63 = vadd.f32 1e-05, %v1672_v23  ;;  %v209_v23 = vld [vmem:[%s6572_s8 + $0x58] sm:$0xff] }
 0x7c0   :  { %v1701_v35 = vmul.f32 %v4471_v9, %v206_v53 }
 0x7c1   :  { %4476 = vrsqrt.f32 %v1688_v63 }
 0x7c2   :  { %1711 = vperm.xlu1 %4453, %v1701_v35   ;;  %v1675_v28 = vpop.xlane.xlu1 %1674 }
 0x7c3   :  { %v4473_v36 = vpop.eup %4472  ;;  %v1689_v44 = vadd.f32 1e-05, %v1675_v28  ;;  %v210_v28 = vld [vmem:[%s6572_s8 + $0x60] sm:$0xff] }
 0x7c4   :  { %v1702_v37 = vmul.f32 %v4473_v36, %v207_v45 }
 0x7c5   :  { %4478 = vrsqrt.f32 %v1689_v44 }
 0x7c6   :  { %1716 = vperm.xlu0 %4452, %v1702_v37   ;;  %v1678_v5 = vpop.xlane.xlu0 %1677 }
 0x7c7   :  { %v4475_v29 = vpop.eup %4474  ;;  %v1690_v38 = vadd.f32 1e-05, %v1678_v5  ;;  %v211_v5 = vld [vmem:[%s6572_s8 + $0x68] sm:$0xff] }
 0x7c8   :  { %v1703_v53 = vmul.f32 %v4475_v29, %v208_v24 }
 0x7c9   :  { %4480 = vrsqrt.f32 %v1690_v38 }
 0x7ca   :  { %v1681_v9 = vpop.xlane.xlu1 %1680  ;;  %1721 = vperm.xlu0 %4452, %v1703_v53   ;;  %v212_v53 = vld [vmem:[%s6572_s8 + $0x70] sm:$0xff] }
 0x7cb   :  { %v4477_v63 = vpop.eup %4476  ;;  %v1691_v35 = vadd.f32 1e-05, %v1681_v9 }
 0x7cc   :  { %v1704_v45 = vmul.f32 %v4477_v63, %v209_v23  ;;  %v213_v63 = vld [vmem:[%s6572_s8 + $0x78] sm:$0xff] }
 0x7cd   :  { %4482 = vrsqrt.f32 %v1691_v35 }
 0x7ce   :  { %1726 = vperm.xlu1 %4453, %v1704_v45   ;;  %v1684_v36 = vpop.xlane.xlu0 %1683  ;;  %v252_v45 = vld [vmem:[%s6573_s9 + $0x70] sm:$0xff] }
 0x7cf   :  { %v4479_v44 = vpop.eup %4478  ;;  %v1692_v37 = vadd.f32 1e-05, %v1684_v36  ;;  %v302_v36 = vld [vmem:[%s6575_s11 + $0x20] sm:$0xff] }
 0x7d0   :  { %v1705_v24 = vmul.f32 %v4479_v44, %v210_v28  ;;  %v253_v44 = vld [vmem:[%s6573_s9 + $0x78] sm:$0xff] }
 0x7d1   :  { %4484 = vrsqrt.f32 %v1692_v37  ;;  %v304_v37 = vld [vmem:[%s6575_s11 + $0x30] sm:$0xff] }
 0x7d2   :  { %1731 = vperm.xlu0 %4452, %v1705_v24   ;;  %v303_v24 = vld [vmem:[%s6575_s11 + $0x28] sm:$0xff] }
 0x7d3   :  { %v4481_v29 = vpop.eup %4480 }
 0x7d4   :  { %v1706_v38 = vmul.f32 %v4481_v29, %v211_v5  ;;  %v146_v5 = vld [vmem:[%s6570_s6 + $0x40] sm:$0xff]  ;;  %v305_v29 = vld [vmem:[%s6575_s11 + $0x38] sm:$0xff] }
 0x7d6   :  { %1736 = vperm.xlu1 %4453, %v1706_v38   ;;  %v148_v38 = vld [vmem:[%s6570_s6 + $0x50] sm:$0xff] }
 0x7d7   :  { %v4483_v23 = vpop.eup %4482 }
 0x7d8   :  { %v1707_v9 = vmul.f32 %v4483_v23, %v212_v53  ;;  %v147_v53 = vld [vmem:[%s6570_s6 + $0x48] sm:$0xff]  ;;  %v149_v23 = vld [vmem:[%s6570_s6 + $0x58] sm:$0xff] }
 0x7da   :  { %1741 = vperm.xlu0 %4452, %v1707_v9   ;;  %v1768_v9 = vpop.permute.xlu1 %1767 }
 0x7db   :  { %v4485_v35 = vpop.eup %4484 }
 0x7dc   :  { %v1708_v28 = vmul.f32 %v4485_v35, %v213_v63 }
 0x7de   :  { %1797 = vperm.xlu0 %4452, %v252_v45   ;;  %1746 = vperm.xlu1 %4453, %v1708_v28   ;;  %v1773_v63 = vpop.permute.xlu1 %1772  ;;  %v1778_v45 = vpop.permute.xlu0 %1777 }
 0x7e2   :  { %1839 = vperm.xlu0 %4452, %v302_v36   ;;  %1802 = vperm.xlu1 %4453, %v253_v44   ;;  %v1783_v35 = vpop.permute.xlu1 %1782  ;;  %v1788_v36 = vpop.permute.xlu0 %1787 }
 0x7e6   :  { %1849 = vperm.xlu0 %4452, %v304_v37   ;;  %1844 = vperm.xlu1 %4453, %v303_v24   ;;  %v1793_v28 = vpop.permute.xlu1 %1792 }
 0x7ea   :  { %360 = vperm.xlu0 %4452, %v146_v5   ;;  %1854 = vperm.xlu1 %4453, %v305_v29  }
 0x7ee   :  { %370 = vperm.xlu0 %4452, %v148_v38   ;;  %365 = vperm.xlu1 %4453, %v147_v53  }
 0x7f2   :  { %375 = vperm.xlu1 %4453, %v149_v23  }
 0x841   :  { %v1712_v44 = vpop.permute.xlu1 %1711 }
 0x842   :  { %v1749_v37 = vmul.f32 %v1712_v44, %v5511_v12  ;;  %v1750_v24 = vmul.f32 %v1712_v44, %v5513_v57 }
 0x844   :  { %v1805_v5 = vadd.f32 %v1768_v9, %v1749_v37  ;;  %v1806_v29 = vadd.f32 %v1768_v9, %v1750_v24 }
 0x845   :  { %v1717_v38 = vpop.permute.xlu0 %1716 }
 0x846   :  { %v1751_v53 = vmul.f32 %v1717_v38, %v5519_v43  ;;  %v1752_v46 = vmul.f32 %v1717_v38, %v5521_v42  ;;  %v1821_v14 = vmax.f32 %v1805_v5, 0.0  ;;  %v1822_v2 = vmax.f32 %v1806_v29, 0.0 }
 0x848   :  { %v1807_v32 = vadd.f32 %v1773_v63, %v1751_v53  ;;  %v1808_v23 = vadd.f32 %v1773_v63, %v1752_v46 }
 0x849   :  { %v1722_v16 = vpop.permute.xlu0 %1721 }
 0x84a   :  { %v1823_v7 = vmax.f32 %v1807_v32, 0.0  ;;  %v1753_v50 = vmul.f32 %v1722_v16, %v5529_v52  ;;  %v1754_v51 = vmul.f32 %v1722_v16, %v5531_v58  ;;  %v1824_v12 = vmax.f32 %v1808_v23, 0.0 }
 0x84c   :  { %v4079_v59 = vpack.c.bf16 %v1824_v12, %v1822_v2  ;;  %v4081_v57 = vpack.c.bf16 %v1823_v7, %v1821_v14  ;;  %v1809_v44 = vadd.f32 %v1778_v45, %v1753_v50  ;;  %v1810_v9 = vadd.f32 %v1778_v45, %v1754_v51 }
 0x84d   :  { %v1727_v37 = vpop.permute.xlu1 %1726 }
 0x84e   :  { %v1755_v43 = vmul.f32 %v1727_v37, %v5539_v4  ;;  %v1756_v42 = vmul.f32 %v1727_v37, %v5541_v6  ;;  %4080 = vmatprep.subr.bf16.mxu1 %v4079_v59  ;;  %v1825_v24 = vmax.f32 %v1809_v44, 0.0  ;;  %v1826_v5 = vmax.f32 %v1810_v9, 0.0 }
 0x84f   :  { %4082 = vmatpush1.bf16.msra.mxu1 %v4081_v57 }
 0x850   :  { %v1811_v46 = vadd.f32 %v1783_v35, %v1755_v43  ;;  %v1812_v63 = vadd.f32 %v1783_v35, %v1756_v42 }
 0x851   :  { %v1732_v32 = vpop.permute.xlu0 %1731 }
 0x852   :  { %v1827_v52 = vmax.f32 %v1811_v46, 0.0  ;;  %v1757_v16 = vmul.f32 %v1732_v32, %v5549_v3  ;;  %v1758_v2 = vmul.f32 %v1732_v32, %v5551_v49  ;;  %v1828_v7 = vmax.f32 %v1812_v63, 0.0 }
 0x854   :  { %v4083_v50 = vpack.c.bf16 %v1828_v7, %v1826_v5  ;;  %v4085_v51 = vpack.c.bf16 %v1827_v52, %v1825_v24  ;;  %v1813_v58 = vadd.f32 %v1788_v36, %v1757_v16  ;;  %v1814_v4 = vadd.f32 %v1788_v36, %v1758_v2 }
 0x855   :  { %v1737_v14 = vpop.permute.xlu1 %1736 }
 0x856   :  { %v1759_v6 = vmul.f32 %v1737_v14, %v5559_v19  ;;  %v1760_v59 = vmul.f32 %v1737_v14, %v5561_v25  ;;  %4084 = vmatprep.subr.bf16.mxu1 %v4083_v50  ;;  %v1829_v38 = vmax.f32 %v1813_v58, 0.0  ;;  %v1830_v3 = vmax.f32 %v1814_v4, 0.0 }
 0x857   :  { %4086 = vmatpush1.bf16.msra.mxu1 %v4085_v51 }
 0x858   :  { %v1815_v35 = vadd.f32 %v1793_v28, %v1759_v6  ;;  %v1816_v45 = vadd.f32 %v1793_v28, %v1760_v59 }
 0x859   :  { %v1742_v29 = vpop.permute.xlu0 %1741 }
 0x85a   :  { %v1831_v53 = vmax.f32 %v1815_v35, 0.0  ;;  %v1832_v23 = vmax.f32 %v1816_v45, 0.0  ;;  %v1761_v9 = vmul.f32 %v1742_v29, %v5570_v56  ;;  %v1762_v36 = vmul.f32 %v1742_v29, %v5572_v0  ;;  %v282_v56 = vld [vmem:[%s6574_s10 + $0x20] sm:$0xff]  ;;  %v283_v0 = vld [vmem:[%s6574_s10 + $0x28] sm:$0xff] }
 0x85c   :  { %v4087_v49 = vpack.c.bf16 %v1832_v23, %v1830_v3  ;;  %v4089_v12 = vpack.c.bf16 %v1831_v53, %v1829_v38 }
 0x85d   :  { %v1747_v57 = vpop.permute.xlu1 %1746  ;;  %v1798_v44 = vpop.permute.xlu0 %1797 }
 0x85e   :  { %4088 = vmatprep.subr.bf16.mxu1 %v4087_v49  ;;  %v1763_v19 = vmul.f32 %v1747_v57, %v5581_v13  ;;  %v1764_v25 = vmul.f32 %v1747_v57, %v5584_v17  ;;  %v1817_v28 = vadd.f32 %v1798_v44, %v1761_v9  ;;  %v1818_v37 = vadd.f32 %v1798_v44, %v1762_v36  ;;  %v284_v13 = vld [vmem:[%s6574_s10 + $0x30] sm:$0xff]  ;;  %v285_v17 = vld [vmem:[%s6574_s10 + $0x38] sm:$0xff] }
 0x85f   :  { %4090 = vmatpush1.bf16.msra.mxu1 %v4089_v12 }
 0x860   :  { %v1833_v63 = vmax.f32 %v1817_v28, 0.0  ;;  %v1834_v24 = vmax.f32 %v1818_v37, 0.0 }
 0x861   :  { %v1803_v43 = vpop.permute.xlu1 %1802  ;;  %v1840_v2 = vpop.permute.xlu0 %1839 }
 0x862   :  { %v1819_v42 = vadd.f32 %v1803_v43, %v1763_v19  ;;  %v1820_v46 = vadd.f32 %v1803_v43, %v1764_v25 }
 0x864   :  { %v1835_v32 = vmax.f32 %v1819_v42, 0.0  ;;  %v1836_v5 = vmax.f32 %v1820_v46, 0.0  ;;  %v6658_v46 = vld [vmem:[#allocation7_spill] sm:$0xff] }
 0x865   :  { %v1845_v58 = vpop.permute.xlu1 %1844  ;;  %v1850_v38 = vpop.permute.xlu0 %1849 }
 0x866   :  { %v4093_v52 = vpack.c.bf16 %v1835_v32, %v1833_v63  ;;  %v4091_v16 = vpack.c.bf16 %v1836_v5, %v1834_v24  ;;  %v6659_v63 = vld [vmem:[#allocation8_spill] sm:$0xff]  ;;  %v6660_v24 = vld [vmem:[#allocation9_spill] sm:$0xff]  ;;  %v6661_v32 = vld [vmem:[#allocation10_spill] sm:$0xff] }
 0x867   :  { %v6662_v5 = vld [vmem:[#allocation11_spill] sm:$0xff] }
 0x868   :  { %4092 = vmatprep.subr.bf16.mxu1 %v4091_v16  ;;  %v6664_v16 = vld [vmem:[#allocation13_spill] sm:$0xff] }
 0x869   :  { %4094 = vmatpush1.bf16.msra.mxu1 %v4093_v52  ;;  %v1855_v44 = vpop.permute.xlu1 %1854  ;;  %v6663_v52 = vld [vmem:[#allocation12_spill] sm:$0xff] }
 0x86c   :  { %3879 = vmatmul.mubr.msk.f32.vlgmr.msra.gmra.mrb[48].mxu1 %vm1237_vm2, %v282_v56  ;;  %v6665_v56 = vld [vmem:[#allocation5_spill] sm:$0xff] }
 0x86d   :  { %1939 = vmatprep.mubr.f32.mxu1 %v6633_v1 }
 0x870   :  { %3880 = vmatmul.mubr.msk.f32.gmra.mrb[50].mxu1 %vm1237_vm2, %v283_v0  ;;  %v361_v0 = vpop.permute.xlu0 %360 }
 0x871   :  { %1945 = vmatprep.mubr.f32.mxu1 %v6633_v1 }
 0x874   :  { %3881 = vmatmul.mubr.msk.f32.gmra.mrb[52].mxu1 %vm1237_vm2, %v284_v13  ;;  %v366_v13 = vpop.permute.xlu1 %365 }
 0x875   :  { %1951 = vmatprep.mubr.f32.mxu1 %v6633_v1 }
 0x878   :  { %3882 = vmatmul.mubr.msk.f32.gmra.mrb[54].mxu1 %vm1237_vm2, %v285_v17 }
 0x879   :  { %2143 = vmatprep.mubr.f32.mxu1 %v6633_v1 }
 0x93f   :  { %v1935_v7 = vpop.f32.mrb[48].mxu1 }
 0x940   :  { %v1936_v50 = vadd.f32 %v1935_v7, %v1840_v2  ;;  %v1937_v51 = vpop.f32.mrb[49].mxu1  ;;  %v6666_v7 = vld [vmem:[#allocation22_spill] sm:$0xff] }
 0x941   :  { %v1938_v14 = vadd.f32 %v1937_v51, %v1840_v2  ;;  %v447_v51 = vmul.f32 %v6666_v7, %v366_v13 }
 0x942   :  { %v1958_v59 = vmax.f32 %v1936_v50, 0.0  ;;  %v445_v50 = vmul.f32 %v6666_v7, %v361_v0 }
 0x943   :  { %v1959_v4 = vmax.f32 %v1938_v14, 0.0  ;;  %v1941_v6 = vpop.f32.mrb[50].mxu1  ;;  %v6667_v14 = vld [vmem:[#allocation23_spill] sm:$0xff] }
 0x944   :  { %v1942_v35 = vadd.f32 %v1941_v6, %v1845_v58  ;;  %v1943_v45 = vpop.f32.mrb[51].mxu1  ;;  %v448_v6 = vmul.f32 %v6667_v14, %v366_v13 }
 0x945   :  { %v1944_v29 = vadd.f32 %v1943_v45, %v1845_v58  ;;  %2030 = vmatprep.mubr.f32.mxu0 %v1959_v4  ;;  %v446_v58 = vmul.f32 %v6667_v14, %v361_v0 }
 0x946   :  { %2031 = vmatmul.mubr.f32.vlgmr.msra.gmra.mrb[16].mxu0 %v1958_v59  ;;  %v1960_v23 = vmax.f32 %v1942_v35, 0.0 }
 0x947   :  { %v1961_v53 = vmax.f32 %v1944_v29, 0.0  ;;  %v1947_v3 = vpop.f32.mrb[52].mxu1  ;;  %4186 = vmatpush1.bf16.msra.mxu0 %v4653_v10 }
 0x948   :  { %v1948_v49 = vadd.f32 %v1947_v3, %v1850_v38  ;;  %v1949_v12 = vpop.f32.mrb[53].mxu1  ;;  %4188 = vmatprep.subr.bf16.mxu0 %v4669_v15 }
 0x949   :  { %v1950_v57 = vadd.f32 %v1949_v12, %v1850_v38  ;;  %2036 = vmatprep.mubr.f32.mxu0 %v1961_v53  ;;  %v371_v53 = vpop.permute.xlu0 %370 }
 0x94a   :  { %2037 = vmatmul.mubr.f32.gmra.mrb[18].mxu0 %v1960_v23  ;;  %v1962_v19 = vmax.f32 %v1948_v49, 0.0  ;;  %v376_v23 = vpop.permute.xlu1 %375 }
 0x94b   :  { %v1963_v9 = vmax.f32 %v1950_v57, 0.0  ;;  %v1953_v36 = vpop.f32.mrb[54].mxu1  ;;  %4190 = vmatpush1.bf16.msra.mxu0 %v4678_v18 }
 0x94c   :  { %v1954_v25 = vadd.f32 %v1953_v36, %v1855_v44  ;;  %v1955_v28 = vpop.f32.mrb[55].mxu1  ;;  %4192 = vmatprep.subr.bf16.mxu0 %v4685_v20  ;;  %v450_v36 = vmul.f32 %v6667_v14, %v371_v53 }
 0x94d   :  { %v1956_v37 = vadd.f32 %v1955_v28, %v1855_v44  ;;  %2042 = vmatprep.mubr.f32.mxu0 %v1963_v9  ;;  %v449_v44 = vmul.f32 %v6666_v7, %v371_v53  ;;  %v451_v9 = vmul.f32 %v6666_v7, %v376_v23  ;;  %v6669_v53 = vld [vmem:[#allocation25_spill] sm:$0xff] }
 0x94e   :  { %2043 = vmatmul.mubr.f32.gmra.mrb[20].mxu0 %v1962_v19  ;;  %v1964_v42 = vmax.f32 %v1954_v25, 0.0  ;;  %v452_v25 = vmul.f32 %v6667_v14, %v376_v23 }
 0x94f   :  { %v1965_v43 = vmax.f32 %v1956_v37, 0.0  ;;  %4194 = vmatpush1.bf16.msra.mxu0 %v4705_v26 }
 0x950   :  { %4196 = vmatprep.subr.bf16.mxu0 %v4708_v27 }
 0x951   :  { %2048 = vmatprep.mubr.f32.mxu0 %v1965_v43 }
 0x952   :  { %2049 = vmatmul.mubr.f32.gmra.mrb[22].mxu0 %v1964_v42 }
 0x953   :  { %4198 = vmatpush1.bf16.msra.mxu0 %v4728_v33 }
 0x954   :  { %4200 = vmatprep.subr.bf16.mxu0 %v4731_v34 }
 0x957   :  { %4202 = vmatpush1.bf16.msra.mxu0 %v4751_v40 }
 0x958   :  { %4204 = vmatprep.subr.bf16.mxu0 %v4754_v41 }
 0x95b   :  { %4206 = vmatpush1.bf16.msra.mxu0 %v4774_v47 }
 0x95c   :  { %4208 = vmatprep.subr.bf16.mxu0 %v4777_v48 }
 0x95f   :  { %4210 = vmatpush1.bf16.msra.mxu0 %v4797_v54 }
 0x960   :  { %4212 = vmatprep.subr.bf16.mxu0 %v4800_v55 }
 0x963   :  { %4214 = vmatpush1.bf16.msra.mxu0 %v4820_v61 }
 0x964   :  { %4216 = vmatprep.subr.bf16.mxu0 %v4823_v62 }
 0x967   :  { %4218 = vmatpush1.bf16.msra.mxu0 %v4849_v8 }
 0x968   :  { %4220 = vmatprep.subr.bf16.mxu0 %v4855_v11 }
 0x96b   :  { %4222 = vmatpush1.bf16.msra.mxu0 %v4878_v21 }
 0x96c   :  { %4224 = vmatprep.subr.bf16.mxu0 %v4881_v22 }
 0x96f   :  { %4226 = vmatpush1.bf16.msra.mxu0 %v4901_v30 }
 0x970   :  { %4228 = vmatprep.subr.bf16.mxu0 %v4904_v31 }
 0x973   :  { %4230 = vmatpush1.bf16.msra.mxu0 %v4924_v39 }
 0x974   :  { %4232 = vmatprep.subr.bf16.mxu0 %v6638_v60 }
 0x977   :  { %4234 = vmatpush1.bf16.msra.mxu0 %v6658_v46 }
 0x978   :  { %4236 = vmatprep.subr.bf16.mxu0 %v6659_v63 }
 0x97b   :  { %4238 = vmatpush1.bf16.msra.mxu0 %v6660_v24 }
 0x97c   :  { %4240 = vmatprep.subr.bf16.mxu0 %v6661_v32 }
 0x97f   :  { %4242 = vmatpush1.bf16.msra.mxu0 %v6662_v5 }
 0x980   :  { %4244 = vmatprep.subr.bf16.mxu0 %v6663_v52 }
 0x983   :  { %4246 = vmatpush1.bf16.msra.mxu0 %v6664_v16 }
 0x984   :  { %4272 = vmatprep.subr.bf16.mxu0 %v6665_v56 }
 0xa19   :  { %v2032_v17 = vpop.f32.mrb[16].mxu0 }
 0xa1a   :  { %v2034_v2 = vpop.f32.mrb[17].mxu0  ;;  %v4391_v59 = vadd.f32 %v2032_v17, %v445_v50  ;;  %v174_v17 = vld [vmem:[%s6571_s7 + $0x80] sm:$0xff]  ;;  %v176_v50 = vld [vmem:[%s6571_s7 + $0x90] sm:$0xff] }
 0xa1b   :  { %v4392_v29 = vadd.f32 %v2034_v2, %v446_v58  ;;  %v175_v2 = vld [vmem:[%s6571_s7 + $0x88] sm:$0xff]  ;;  %v178_v58 = vld [vmem:[%s6571_s7 + $0xa0] sm:$0xff] }
 0xa1d   :  { %v2038_v4 = vpop.f32.mrb[18].mxu0 }
 0xa1e   :  { %v4393_v35 = vadd.f32 %v2038_v4, %v447_v51  ;;  %v2040_v45 = vpop.f32.mrb[19].mxu0  ;;  %v177_v51 = vld [vmem:[%s6571_s7 + $0x98] sm:$0xff]  ;;  %v179_v4 = vld [vmem:[%s6571_s7 + $0xa8] sm:$0xff] }
 0xa1f   :  { %v4394_v38 = vadd.f32 %v2040_v45, %v448_v6  ;;  %v180_v6 = vld [vmem:[%s6571_s7 + $0xb0] sm:$0xff]  ;;  %v6668_v45 = vld [vmem:[#allocation24_spill] sm:$0xff] }
 0xa20   :  { %v4161_v3 = vpack.c.bf16 %v4393_v35, %v4391_v59  ;;  %v181_v59 = vld [vmem:[%s6571_s7 + $0xb8] sm:$0xff] }
 0xa21   :  { %v4159_v49 = vpack.c.bf16 %v4394_v38, %v4392_v29  ;;  %v2044_v12 = vpop.f32.mrb[20].mxu0 }
 0xa22   :  { %v2046_v57 = vpop.f32.mrb[21].mxu0  ;;  %v4395_v28 = vadd.f32 %v2044_v12, %v449_v44 }
 0xa23   :  { %4160 = vmatprep.subr.bf16.mxu1 %v4159_v49  ;;  %v4396_v42 = vadd.f32 %v2046_v57, %v450_v36 }
 0xa24   :  { %4162 = vmatpush1.bf16.msra.mxu1 %v4161_v3 }
 0xa25   :  { %v2050_v19 = vpop.f32.mrb[22].mxu0 }
 0xa26   :  { %v4397_v37 = vadd.f32 %v2050_v19, %v451_v9  ;;  %v2052_v43 = vpop.f32.mrb[23].mxu0 }
 0xa27   :  { %v4398_v56 = vadd.f32 %v2052_v43, %v452_v25 }
 0xa28   :  { %v4165_v0 = vpack.c.bf16 %v4397_v37, %v4395_v28 }
 0xa29   :  { %v4163_v13 = vpack.c.bf16 %v4398_v56, %v4396_v42 }
 0xa2b   :  { %4164 = vmatprep.subr.bf16.mxu1 %v4163_v13 }
 0xa2c   :  { %4166 = vmatpush1.bf16.msra.mxu1 %v4165_v0 }
 0xa2f   :  { %3883 = vmatmul.mubr.msk.f32.vlgmr.msra.gmra.mrb[56].mxu1 %vm804_vm1, %v174_v17 }
 0xa30   :  { %2149 = vmatprep.mubr.f32.mxu1 %v6633_v1 }
 0xa33   :  { %3884 = vmatmul.mubr.msk.f32.gmra.mrb[58].mxu1 %vm804_vm1, %v175_v2 }
 0xa34   :  { %2155 = vmatprep.mubr.f32.mxu1 %v6633_v1 }
 0xa37   :  { %3885 = vmatmul.mubr.msk.f32.gmra.mrb[60].mxu1 %vm804_vm1, %v176_v50 }
 0xa38   :  { %2161 = vmatprep.mubr.f32.mxu1 %v6633_v1 }
 0xa3b   :  { %3886 = vmatmul.mubr.msk.f32.gmra.mrb[62].mxu1 %vm804_vm1, %v177_v51 }
 0xa3c   :  { %2167 = vmatprep.mubr.f32.mxu1 %v6633_v1 }
 0xa3f   :  { %3887 = vmatmul.mubr.msk.f32.gmra.mrb[64].mxu1 %vm804_vm1, %v178_v58 }
 0xa40   :  { %2173 = vmatprep.mubr.f32.mxu1 %v6633_v1 }
 0xa43   :  { %3888 = vmatmul.mubr.msk.f32.gmra.mrb[66].mxu1 %vm804_vm1, %v179_v4 }
 0xa44   :  { %2179 = vmatprep.mubr.f32.mxu1 %v6633_v1 }
 0xa47   :  { %3889 = vmatmul.mubr.msk.f32.gmra.mrb[68].mxu1 %vm804_vm1, %v180_v6 }
 0xa48   :  { %2185 = vmatprep.mubr.f32.mxu1 %v6633_v1 }
 0xa4b   :  { %3890 = vmatmul.mubr.msk.f32.gmra.mrb[70].mxu1 %vm804_vm1, %v181_v59 }
 0xa4c   :  { %2552 = vmatprep.mubr.f32.mxu1 %v6633_v1 }
 0xb02   :  { %v2145_v35 = vpop.f32.mrb[56].mxu1 }
 0xb03   :  { %v2192_v29 = vmul.f32 %v2145_v35, %v6668_v45  ;;  %v2147_v38 = vpop.f32.mrb[57].mxu1 }
 0xb04   :  { %v2193_v3 = vmul.f32 %v2147_v38, %v6669_v53 }
 0xb06   :  { %v2151_v23 = vpop.f32.mrb[58].mxu1  ;;  %v2208_v49 = vadd.f32 %v2193_v3, %v2192_v29 }
 0xb07   :  { %v2194_v12 = vmul.f32 %v2151_v23, %v6668_v45  ;;  %v2153_v57 = vpop.f32.mrb[59].mxu1 }
 0xb08   :  { %v2195_v44 = vmul.f32 %v2153_v57, %v6669_v53  ;;  %2209 = vadd.xlane.f32.xlu0 %v2208_v49 }
 0xb0a   :  { %v2157_v9 = vpop.f32.mrb[60].mxu1  ;;  %v2211_v36 = vadd.f32 %v2195_v44, %v2194_v12 }
 0xb0b   :  { %v2196_v19 = vmul.f32 %v2157_v9, %v6668_v45  ;;  %v2159_v25 = vpop.f32.mrb[61].mxu1 }
 0xb0c   :  { %v2197_v28 = vmul.f32 %v2159_v25, %v6669_v53  ;;  %2212 = vadd.xlane.f32.xlu1 %v2211_v36 }
 0xb0e   :  { %v2163_v37 = vpop.f32.mrb[62].mxu1  ;;  %v2214_v43 = vadd.f32 %v2197_v28, %v2196_v19 }
 0xb0f   :  { %v2198_v42 = vmul.f32 %v2163_v37, %v6668_v45  ;;  %v2165_v56 = vpop.f32.mrb[63].mxu1 }
 0xb10   :  { %v2199_v0 = vmul.f32 %v2165_v56, %v6669_v53  ;;  %2215 = vadd.xlane.f32.xlu0 %v2214_v43 }
 0xb12   :  { %v2169_v13 = vpop.f32.mrb[64].mxu1  ;;  %v2217_v17 = vadd.f32 %v2199_v0, %v2198_v42 }
 0xb13   :  { %v2200_v2 = vmul.f32 %v2169_v13, %v6668_v45  ;;  %v2171_v50 = vpop.f32.mrb[65].mxu1 }
 0xb14   :  { %v2201_v51 = vmul.f32 %v2171_v50, %v6669_v53  ;;  %2218 = vadd.xlane.f32.xlu0 %v2217_v17 }
 0xb16   :  { %v2175_v58 = vpop.f32.mrb[66].mxu1  ;;  %v2220_v4 = vadd.f32 %v2201_v51, %v2200_v2 }
 0xb17   :  { %v2202_v6 = vmul.f32 %v2175_v58, %v6668_v45  ;;  %v2177_v59 = vpop.f32.mrb[67].mxu1 }
 0xb18   :  { %v2203_v29 = vmul.f32 %v2177_v59, %v6669_v53  ;;  %2221 = vadd.xlane.f32.xlu1 %v2220_v4 }
 0xb1a   :  { %v5794_v3 = vpop.f32.mrb[68].mxu1  ;;  %v2223_v49 = vadd.f32 %v2203_v29, %v2202_v6 }
 0xb1b   :  { %v2204_v12 = vmul.f32 %v5794_v3, %v6668_v45  ;;  %v2183_v44 = vpop.f32.mrb[69].mxu1 }
 0xb1c   :  { %v2205_v36 = vmul.f32 %v2183_v44, %v6669_v53  ;;  %2224 = vadd.xlane.f32.xlu0 %v2223_v49 }
 0xb1e   :  { %v5799_v19 = vpop.f32.mrb[70].mxu1  ;;  %v2226_v28 = vadd.f32 %v2205_v36, %v2204_v12 }
 0xb1f   :  { %v2206_v43 = vmul.f32 %v5799_v19, %v6668_v45  ;;  %v5803_v42 = vpop.f32.mrb[71].mxu1 }
 0xb20   :  { %v2207_v0 = vmul.f32 %v5803_v42, %v6669_v53  ;;  %2227 = vadd.xlane.f32.xlu1 %v2226_v28 }
 0xb22   :  { %v2229_v17 = vadd.f32 %v2207_v0, %v2206_v43 }
 0xb24   :  { %2230 = vadd.xlane.f32.xlu0 %v2229_v17 }
 0xb95   :  { %v2210_v2 = vpop.xlane.xlu0 %2209 }
 0xb96   :  { %v5807_v51 = vsub.f32 %v2145_v35, %v2210_v2  ;;  %v5809_v4 = vsub.f32 %v2147_v38, %v2210_v2 }
 0xb98   :  { %v2248_v6 = vmul.f32 %v5807_v51, %v5807_v51  ;;  %v2249_v29 = vmul.f32 %v5809_v4, %v5809_v4 }
 0xb99   :  { %v2213_v49 = vpop.xlane.xlu1 %2212 }
 0xb9a   :  { %v5815_v12 = vsub.f32 %v2151_v23, %v2213_v49  ;;  %v5817_v36 = vsub.f32 %v2153_v57, %v2213_v49  ;;  %v2264_v28 = vmul.f32 %v2248_v6, %v6668_v45  ;;  %v2265_v43 = vmul.f32 %v2249_v29, %v6669_v53 }
 0xb9c   :  { %v2280_v0 = vadd.f32 %v2265_v43, %v2264_v28  ;;  %v2250_v35 = vmul.f32 %v5815_v12, %v5815_v12  ;;  %v2251_v38 = vmul.f32 %v5817_v36, %v5817_v36 }
 0xb9d   :  { %v2216_v17 = vpop.xlane.xlu0 %2215 }
 0xb9e   :  { %v5825_v2 = vsub.f32 %v2157_v9, %v2216_v17  ;;  %v5827_v14 = vsub.f32 %v2159_v25, %v2216_v17  ;;  %2281 = vadd.xlane.f32.xlu1 %v2280_v0  ;;  %v2266_v23 = vmul.f32 %v2250_v35, %v6668_v45  ;;  %v2267_v57 = vmul.f32 %v2251_v38, %v6669_v53 }
 0xba0   :  { %v2283_v6 = vadd.f32 %v2267_v57, %v2266_v23  ;;  %v2252_v29 = vmul.f32 %v5825_v2, %v5825_v2  ;;  %v2253_v49 = vmul.f32 %v5827_v14, %v5827_v14 }
 0xba1   :  { %v2219_v28 = vpop.xlane.xlu0 %2218 }
 0xba2   :  { %v5835_v43 = vsub.f32 %v2163_v37, %v2219_v28  ;;  %v5837_v7 = vsub.f32 %v2165_v56, %v2219_v28  ;;  %2284 = vadd.xlane.f32.xlu0 %v2283_v6  ;;  %v2268_v9 = vmul.f32 %v2252_v29, %v6668_v45  ;;  %v2269_v25 = vmul.f32 %v2253_v49, %v6669_v53 }
 0xba4   :  { %v2286_v0 = vadd.f32 %v2269_v25, %v2268_v9  ;;  %v2254_v35 = vmul.f32 %v5835_v43, %v5835_v43  ;;  %v2255_v38 = vmul.f32 %v5837_v7, %v5837_v7 }
 0xba5   :  { %v2222_v17 = vpop.xlane.xlu1 %2221 }
 0xba6   :  { %v5845_v23 = vsub.f32 %v2169_v13, %v2222_v17  ;;  %v5847_v57 = vsub.f32 %v2171_v50, %v2222_v17  ;;  %2287 = vadd.xlane.f32.xlu1 %v2286_v0  ;;  %v2270_v37 = vmul.f32 %v2254_v35, %v6668_v45  ;;  %v2271_v56 = vmul.f32 %v2255_v38, %v6669_v53 }
 0xba8   :  { %v2289_v6 = vadd.f32 %v2271_v56, %v2270_v37  ;;  %v2256_v29 = vmul.f32 %v5845_v23, %v5845_v23  ;;  %v2257_v49 = vmul.f32 %v5847_v57, %v5847_v57 }
 0xba9   :  { %v2225_v28 = vpop.xlane.xlu0 %2224 }
 0xbaa   :  { %v5855_v9 = vsub.f32 %v2175_v58, %v2225_v28  ;;  %v5857_v25 = vsub.f32 %v2177_v59, %v2225_v28  ;;  %2290 = vadd.xlane.f32.xlu0 %v2289_v6  ;;  %v2272_v13 = vmul.f32 %v2256_v29, %v6668_v45  ;;  %v2273_v50 = vmul.f32 %v2257_v49, %v6669_v53 }
 0xbac   :  { %v2258_v0 = vmul.f32 %v5855_v9, %v5855_v9  ;;  %v2259_v35 = vmul.f32 %v5857_v25, %v5857_v25  ;;  %v2292_v38 = vadd.f32 %v2273_v50, %v2272_v13 }
 0xbad   :  { %v2228_v17 = vpop.xlane.xlu1 %2227 }
 0xbae   :  { %v5866_v37 = vsub.f32 %v5794_v3, %v2228_v17  ;;  %v5868_v58 = vsub.f32 %v2183_v44, %v2228_v17  ;;  %2293 = vadd.xlane.f32.xlu1 %v2292_v38  ;;  %v2274_v59 = vmul.f32 %v2258_v0, %v6668_v45  ;;  %v2275_v56 = vmul.f32 %v2259_v35, %v6669_v53 }
 0xbb0   :  { %v2295_v6 = vadd.f32 %v2275_v56, %v2274_v59  ;;  %v2260_v29 = vmul.f32 %v5866_v37, %v5866_v37  ;;  %v2261_v49 = vmul.f32 %v5868_v58, %v5868_v58  ;;  %v255_v56 = vld [vmem:[%s6573_s9 + $0x88] sm:$0xff] }
 0xbb1   :  { %v2231_v28 = vpop.xlane.xlu0 %2230 }
 0xbb2   :  { %v5877_v13 = vsub.f32 %v5799_v19, %v2231_v28  ;;  %v5880_v3 = vsub.f32 %v5803_v42, %v2231_v28  ;;  %2296 = vadd.xlane.f32.xlu0 %v2295_v6  ;;  %v2276_v44 = vmul.f32 %v2260_v29, %v6668_v45  ;;  %v2277_v50 = vmul.f32 %v2261_v49, %v6669_v53  ;;  %v254_v42 = vld [vmem:[%s6573_s9 + $0x80] sm:$0xff]  ;;  %v257_v6 = vld [vmem:[%s6573_s9 + $0x98] sm:$0xff]  ;;  %v256_v29 = vld [vmem:[%s6573_s9 + $0x90] sm:$0xff] }
 0xbb3   :  { %v259_v49 = vld [vmem:[%s6573_s9 + $0xa8] sm:$0xff]  ;;  %v258_v28 = vld [vmem:[%s6573_s9 + $0xa0] sm:$0xff] }
 0xbb4   :  { %v2262_v0 = vmul.f32 %v5877_v13, %v5877_v13  ;;  %v2263_v35 = vmul.f32 %v5880_v3, %v5880_v3  ;;  %v2298_v38 = vadd.f32 %v2277_v50, %v2276_v44 }
 0xbb6   :  { %2299 = vadd.xlane.f32.xlu1 %v2298_v38  ;;  %v2278_v17 = vmul.f32 %v2262_v0, %v6668_v45  ;;  %v2279_v19 = vmul.f32 %v2263_v35, %v6669_v53 }
 0xbb8   :  { %v2301_v59 = vadd.f32 %v2279_v19, %v2278_v17  ;;  %v214_v19 = vld [vmem:[%s6572_s8 + $0x80] sm:$0xff] }
 0xbba   :  { %2302 = vadd.xlane.f32.xlu0 %v2301_v59 }
 0xbc7   :  { %2386 = vperm.xlu1 %4453, %v254_v42  }
 0xbcb   :  { %2391 = vperm.xlu1 %4453, %v255_v56  }
 0xbcf   :  { %2401 = vperm.xlu1 %4453, %v257_v6  }
 0xbd0   :  { %2396 = vperm.xlu0 %4452, %v256_v29   ;;  %v215_v29 = vld [vmem:[%s6572_s8 + $0x88] sm:$0xff] }
 0xbd3   :  { %2411 = vperm.xlu1 %4453, %v259_v49  }
 0xbd4   :  { %2406 = vperm.xlu0 %4452, %v258_v28  }
 0xc2b   :  { %v2282_v44 = vpop.xlane.xlu1 %2281 }
 0xc2c   :  { %v2304_v50 = vadd.f32 1e-05, %v2282_v44 }
 0xc2e   :  { %4486 = vrsqrt.f32 %v2304_v50 }
 0xc2f   :  { %v2285_v0 = vpop.xlane.xlu0 %2284 }
 0xc30   :  { %v2305_v35 = vadd.f32 1e-05, %v2285_v0  ;;  %v216_v0 = vld [vmem:[%s6572_s8 + $0x90] sm:$0xff] }
 0xc32   :  { %4488 = vrsqrt.f32 %v2305_v35 }
 0xc33   :  { %v2288_v38 = vpop.xlane.xlu1 %2287 }
 0xc34   :  { %v2306_v17 = vadd.f32 1e-05, %v2288_v38 }
 0xc36   :  { %4490 = vrsqrt.f32 %v2306_v17 }
 0xc37   :  { %v2291_v59 = vpop.xlane.xlu0 %2290 }
 0xc38   :  { %v4487_v42 = vpop.eup %4486  ;;  %v2307_v56 = vadd.f32 1e-05, %v2291_v59  ;;  %v217_v59 = vld [vmem:[%s6572_s8 + $0x98] sm:$0xff] }
 0xc39   :  { %v2320_v6 = vmul.f32 %v4487_v42, %v214_v19 }
 0xc3a   :  { %4492 = vrsqrt.f32 %v2307_v56 }
 0xc3b   :  { %2330 = vperm.xlu1 %4453, %v2320_v6   ;;  %v2294_v49 = vpop.xlane.xlu1 %2293 }
 0xc3c   :  { %v4489_v28 = vpop.eup %4488  ;;  %v2308_v44 = vadd.f32 1e-05, %v2294_v49  ;;  %v218_v49 = vld [vmem:[%s6572_s8 + $0xa0] sm:$0xff] }
 0xc3d   :  { %v2321_v50 = vmul.f32 %v4489_v28, %v215_v29 }
 0xc3e   :  { %4494 = vrsqrt.f32 %v2308_v44 }
 0xc3f   :  { %2335 = vperm.xlu0 %4452, %v2321_v50   ;;  %v2297_v35 = vpop.xlane.xlu0 %2296 }
 0xc40   :  { %v4491_v38 = vpop.eup %4490  ;;  %v2309_v17 = vadd.f32 1e-05, %v2297_v35  ;;  %v219_v35 = vld [vmem:[%s6572_s8 + $0xa8] sm:$0xff] }
 0xc41   :  { %v2322_v19 = vmul.f32 %v4491_v38, %v216_v0 }
 0xc42   :  { %4496 = vrsqrt.f32 %v2309_v17 }
 0xc43   :  { %v2300_v42 = vpop.xlane.xlu1 %2299  ;;  %2340 = vperm.xlu0 %4452, %v2322_v19   ;;  %v220_v19 = vld [vmem:[%s6572_s8 + $0xb0] sm:$0xff] }
 0xc44   :  { %v4493_v56 = vpop.eup %4492  ;;  %v2310_v6 = vadd.f32 1e-05, %v2300_v42 }
 0xc45   :  { %v2323_v29 = vmul.f32 %v4493_v56, %v217_v59  ;;  %v221_v56 = vld [vmem:[%s6572_s8 + $0xb8] sm:$0xff] }
 0xc46   :  { %4498 = vrsqrt.f32 %v2310_v6 }
 0xc47   :  { %2345 = vperm.xlu1 %4453, %v2323_v29   ;;  %v2303_v28 = vpop.xlane.xlu0 %2302  ;;  %v260_v29 = vld [vmem:[%s6573_s9 + $0xb0] sm:$0xff] }
 0xc48   :  { %v4495_v44 = vpop.eup %4494  ;;  %v2311_v50 = vadd.f32 1e-05, %v2303_v28  ;;  %v306_v28 = vld [vmem:[%s6575_s11 + $0x40] sm:$0xff] }
 0xc49   :  { %v2324_v0 = vmul.f32 %v4495_v44, %v218_v49  ;;  %v261_v44 = vld [vmem:[%s6573_s9 + $0xb8] sm:$0xff] }
 0xc4a   :  { %4500 = vrsqrt.f32 %v2311_v50  ;;  %v308_v50 = vld [vmem:[%s6575_s11 + $0x50] sm:$0xff] }
 0xc4b   :  { %2350 = vperm.xlu0 %4452, %v2324_v0   ;;  %v307_v0 = vld [vmem:[%s6575_s11 + $0x48] sm:$0xff] }
 0xc4c   :  { %v4497_v38 = vpop.eup %4496 }
 0xc4d   :  { %v2325_v17 = vmul.f32 %v4497_v38, %v219_v35  ;;  %v150_v35 = vld [vmem:[%s6570_s6 + $0x60] sm:$0xff]  ;;  %v309_v38 = vld [vmem:[%s6575_s11 + $0x58] sm:$0xff] }
 0xc4f   :  { %2355 = vperm.xlu1 %4453, %v2325_v17   ;;  %v152_v17 = vld [vmem:[%s6570_s6 + $0x70] sm:$0xff] }
 0xc50   :  { %v4499_v59 = vpop.eup %4498 }
 0xc51   :  { %v2326_v42 = vmul.f32 %v4499_v59, %v220_v19  ;;  %v151_v19 = vld [vmem:[%s6570_s6 + $0x68] sm:$0xff]  ;;  %v153_v59 = vld [vmem:[%s6570_s6 + $0x78] sm:$0xff] }
 0xc53   :  { %2360 = vperm.xlu0 %4452, %v2326_v42   ;;  %v2387_v42 = vpop.permute.xlu1 %2386 }
 0xc54   :  { %v4501_v6 = vpop.eup %4500 }
 0xc55   :  { %v2327_v49 = vmul.f32 %v4501_v6, %v221_v56 }
 0xc57   :  { %2416 = vperm.xlu0 %4452, %v260_v29   ;;  %2365 = vperm.xlu1 %4453, %v2327_v49   ;;  %v2392_v56 = vpop.permute.xlu1 %2391  ;;  %v2397_v29 = vpop.permute.xlu0 %2396 }
 0xc5b   :  { %2458 = vperm.xlu0 %4452, %v306_v28   ;;  %2421 = vperm.xlu1 %4453, %v261_v44   ;;  %v2402_v6 = vpop.permute.xlu1 %2401  ;;  %v2407_v28 = vpop.permute.xlu0 %2406 }
 0xc5f   :  { %2468 = vperm.xlu0 %4452, %v308_v50   ;;  %2463 = vperm.xlu1 %4453, %v307_v0   ;;  %v2412_v49 = vpop.permute.xlu1 %2411 }
 0xc63   :  { %380 = vperm.xlu0 %4452, %v150_v35   ;;  %2473 = vperm.xlu1 %4453, %v309_v38  }
 0xc67   :  { %390 = vperm.xlu0 %4452, %v152_v17   ;;  %385 = vperm.xlu1 %4453, %v151_v19  }
 0xc6b   :  { %395 = vperm.xlu1 %4453, %v153_v59  }
 0xcba   :  { %v2331_v44 = vpop.permute.xlu1 %2330 }
 0xcbb   :  { %v2368_v50 = vmul.f32 %v2331_v44, %v5807_v51  ;;  %v2369_v0 = vmul.f32 %v2331_v44, %v5809_v4 }
 0xcbd   :  { %v2424_v35 = vadd.f32 %v2387_v42, %v2368_v50  ;;  %v2425_v38 = vadd.f32 %v2387_v42, %v2369_v0 }
 0xcbe   :  { %v2336_v17 = vpop.permute.xlu0 %2335 }
 0xcbf   :  { %v2370_v19 = vmul.f32 %v2336_v17, %v5815_v12  ;;  %v2371_v53 = vmul.f32 %v2336_v17, %v5817_v36  ;;  %v2440_v16 = vmax.f32 %v2424_v35, 0.0  ;;  %v2441_v52 = vmax.f32 %v2425_v38, 0.0 }
 0xcc1   :  { %v2426_v45 = vadd.f32 %v2392_v56, %v2370_v19  ;;  %v2427_v59 = vadd.f32 %v2392_v56, %v2371_v53 }
 0xcc2   :  { %v2341_v5 = vpop.permute.xlu0 %2340 }
 0xcc3   :  { %v2442_v32 = vmax.f32 %v2426_v45, 0.0  ;;  %v2443_v24 = vmax.f32 %v2427_v59, 0.0  ;;  %v2372_v63 = vmul.f32 %v2341_v5, %v5825_v2  ;;  %v2373_v51 = vmul.f32 %v2341_v5, %v5827_v14 }
 0xcc5   :  { %v4169_v46 = vpack.c.bf16 %v2442_v32, %v2440_v16  ;;  %v4167_v4 = vpack.c.bf16 %v2443_v24, %v2441_v52  ;;  %v2428_v44 = vadd.f32 %v2397_v29, %v2372_v63  ;;  %v2429_v42 = vadd.f32 %v2397_v29, %v2373_v51 }
 0xcc6   :  { %v2346_v50 = vpop.permute.xlu1 %2345 }
 0xcc7   :  { %v2374_v12 = vmul.f32 %v2346_v50, %v5835_v43  ;;  %v2375_v36 = vmul.f32 %v2346_v50, %v5837_v7  ;;  %4168 = vmatprep.subr.bf16.mxu1 %v4167_v4  ;;  %v2444_v0 = vmax.f32 %v2428_v44, 0.0  ;;  %v2445_v45 = vmax.f32 %v2429_v42, 0.0 }
 0xcc8   :  { %4170 = vmatpush1.bf16.msra.mxu1 %v4169_v46 }
 0xcc9   :  { %v2430_v53 = vadd.f32 %v2402_v6, %v2374_v12  ;;  %v2431_v56 = vadd.f32 %v2402_v6, %v2375_v36 }
 0xcca   :  { %v2351_v35 = vpop.permute.xlu0 %2350 }
 0xccb   :  { %v2446_v38 = vmax.f32 %v2430_v53, 0.0  ;;  %v2447_v2 = vmax.f32 %v2431_v56, 0.0  ;;  %v2376_v5 = vmul.f32 %v2351_v35, %v5845_v23  ;;  %v2377_v24 = vmul.f32 %v2351_v35, %v5847_v57 }
 0xccd   :  { %v4173_v63 = vpack.c.bf16 %v2446_v38, %v2444_v0  ;;  %v4171_v32 = vpack.c.bf16 %v2447_v2, %v2445_v45  ;;  %v2432_v16 = vadd.f32 %v2407_v28, %v2376_v5  ;;  %v2433_v14 = vadd.f32 %v2407_v28, %v2377_v24 }
 0xcce   :  { %v2356_v52 = vpop.permute.xlu1 %2355 }
 0xccf   :  { %v2378_v7 = vmul.f32 %v2356_v52, %v5855_v9  ;;  %v2379_v46 = vmul.f32 %v2356_v52, %v5857_v25  ;;  %4172 = vmatprep.subr.bf16.mxu1 %v4171_v32  ;;  %v2448_v17 = vmax.f32 %v2432_v16, 0.0  ;;  %v2449_v19 = vmax.f32 %v2433_v14, 0.0 }
 0xcd0   :  { %4174 = vmatpush1.bf16.msra.mxu1 %v4173_v63 }
 0xcd1   :  { %v2434_v43 = vadd.f32 %v2412_v49, %v2378_v7  ;;  %v2435_v6 = vadd.f32 %v2412_v49, %v2379_v46 }
 0xcd2   :  { %v2361_v29 = vpop.permute.xlu0 %2360 }
 0xcd3   :  { %v2450_v59 = vmax.f32 %v2434_v43, 0.0  ;;  %v2451_v23 = vmax.f32 %v2435_v6, 0.0  ;;  %v2380_v42 = vmul.f32 %v2361_v29, %v5866_v37  ;;  %v2381_v28 = vmul.f32 %v2361_v29, %v5868_v58  ;;  %v286_v37 = vld [vmem:[%s6574_s10 + $0x40] sm:$0xff]  ;;  %v287_v58 = vld [vmem:[%s6574_s10 + $0x48] sm:$0xff] }
 0xcd5   :  { %v4177_v51 = vpack.c.bf16 %v2450_v59, %v2448_v17  ;;  %v4175_v57 = vpack.c.bf16 %v2451_v23, %v2449_v19 }
 0xcd6   :  { %v2366_v4 = vpop.permute.xlu1 %2365  ;;  %v2417_v44 = vpop.permute.xlu0 %2416 }
 0xcd7   :  { %4176 = vmatprep.subr.bf16.mxu1 %v4175_v57  ;;  %v2382_v9 = vmul.f32 %v2366_v4, %v5877_v13  ;;  %v2383_v25 = vmul.f32 %v2366_v4, %v5880_v3  ;;  %v2436_v49 = vadd.f32 %v2417_v44, %v2380_v42  ;;  %v2437_v50 = vadd.f32 %v2417_v44, %v2381_v28  ;;  %v288_v13 = vld [vmem:[%s6574_s10 + $0x50] sm:$0xff]  ;;  %v289_v3 = vld [vmem:[%s6574_s10 + $0x58] sm:$0xff] }
 0xcd8   :  { %4178 = vmatpush1.bf16.msra.mxu1 %v4177_v51 }
 0xcd9   :  { %v2452_v56 = vmax.f32 %v2436_v49, 0.0  ;;  %v2453_v0 = vmax.f32 %v2437_v50, 0.0 }
 0xcda   :  { %v2422_v12 = vpop.permute.xlu1 %2421  ;;  %v2459_v5 = vpop.permute.xlu0 %2458 }
 0xcdb   :  { %v2438_v36 = vadd.f32 %v2422_v12, %v2382_v9  ;;  %v2439_v53 = vadd.f32 %v2422_v12, %v2383_v25 }
 0xcdd   :  { %v2454_v45 = vmax.f32 %v2438_v36, 0.0  ;;  %v2455_v35 = vmax.f32 %v2439_v53, 0.0 }
 0xcde   :  { %v2464_v16 = vpop.permute.xlu1 %2463  ;;  %v2469_v17 = vpop.permute.xlu0 %2468 }
 0xcdf   :  { %v4181_v38 = vpack.c.bf16 %v2454_v45, %v2452_v56  ;;  %v4179_v2 = vpack.c.bf16 %v2455_v35, %v2453_v0 }
 0xce1   :  { %4180 = vmatprep.subr.bf16.mxu1 %v4179_v2 }
 0xce2   :  { %4182 = vmatpush1.bf16.msra.mxu1 %v4181_v38  ;;  %v2474_v44 = vpop.permute.xlu1 %2473 }
 0xce5   :  { %3891 = vmatmul.mubr.msk.f32.vlgmr.msra.gmra.mrb[72].mxu1 %vm1237_vm2, %v286_v37 }
 0xce6   :  { %2558 = vmatprep.mubr.f32.mxu1 %v6633_v1 }
 0xce9   :  { %3892 = vmatmul.mubr.msk.f32.gmra.mrb[74].mxu1 %vm1237_vm2, %v287_v58 }
 0xcea   :  { %2564 = vmatprep.mubr.f32.mxu1 %v6633_v1 }
 0xced   :  { %3893 = vmatmul.mubr.msk.f32.gmra.mrb[76].mxu1 %vm1237_vm2, %v288_v13 }
 0xcee   :  { %2570 = vmatprep.mubr.f32.mxu1 %v6633_v1 }
 0xcf1   :  { %3894 = vmatmul.mubr.msk.f32.gmra.mrb[78].mxu1 %vm1237_vm2, %v289_v3 }
 0xcf2   :  { %2762 = vmatprep.mubr.f32.mxu1 %v6633_v1 }
 0xdb8   :  { %v2554_v24 = vpop.f32.mrb[72].mxu1 }
 0xdb9   :  { %v2555_v63 = vadd.f32 %v2554_v24, %v2459_v5  ;;  %v2556_v32 = vpop.f32.mrb[73].mxu1 }
 0xdba   :  { %v2557_v52 = vadd.f32 %v2556_v32, %v2459_v5 }
 0xdbb   :  { %v2577_v46 = vmax.f32 %v2555_v63, 0.0 }
 0xdbc   :  { %v2578_v14 = vmax.f32 %v2557_v52, 0.0  ;;  %v2560_v7 = vpop.f32.mrb[74].mxu1 }
 0xdbd   :  { %v2561_v43 = vadd.f32 %v2560_v7, %v2464_v16  ;;  %v2562_v6 = vpop.f32.mrb[75].mxu1  ;;  %v183_v7 = vld [vmem:[%s6571_s7 + $0xc8] sm:$0xff] }
 0xdbe   :  { %v2563_v29 = vadd.f32 %v2562_v6, %v2464_v16  ;;  %2649 = vmatprep.mubr.f32.mxu0 %v2578_v14  ;;  %v182_v14 = vld [vmem:[%s6571_s7 + $0xc0] sm:$0xff] }
 0xdbf   :  { %2650 = vmatmul.mubr.f32.vlgmr.msra.gmra.mrb[24].mxu0 %v2577_v46  ;;  %v2579_v23 = vmax.f32 %v2561_v43, 0.0  ;;  %v184_v46 = vld [vmem:[%s6571_s7 + $0xd0] sm:$0xff]  ;;  %v185_v43 = vld [vmem:[%s6571_s7 + $0xd8] sm:$0xff]  ;;  %v186_v6 = vld [vmem:[%s6571_s7 + $0xe0] sm:$0xff] }
 0xdc0   :  { %v2580_v19 = vmax.f32 %v2563_v29, 0.0  ;;  %v2566_v59 = vpop.f32.mrb[76].mxu1  ;;  %4274 = vmatpush1.bf16.msra.mxu0 %v4653_v10  ;;  %v187_v29 = vld [vmem:[%s6571_s7 + $0xe8] sm:$0xff] }
 0xdc1   :  { %v2567_v51 = vadd.f32 %v2566_v59, %v2469_v17  ;;  %v2568_v57 = vpop.f32.mrb[77].mxu1  ;;  %4276 = vmatprep.subr.bf16.mxu0 %v4669_v15 }
 0xdc2   :  { %v2569_v4 = vadd.f32 %v2568_v57, %v2469_v17  ;;  %2655 = vmatprep.mubr.f32.mxu0 %v2580_v19  ;;  %v188_v17 = vld [vmem:[%s6571_s7 + $0xf0] sm:$0xff]  ;;  %v189_v19 = vld [vmem:[%s6571_s7 + $0xf8] sm:$0xff] }
 0xdc3   :  { %2656 = vmatmul.mubr.f32.gmra.mrb[26].mxu0 %v2579_v23  ;;  %v2581_v9 = vmax.f32 %v2567_v51, 0.0  ;;  %v6679_v23 = vld [vmem:[#allocation24_spill] sm:$0xff] }
 0xdc4   :  { %v2582_v42 = vmax.f32 %v2569_v4, 0.0  ;;  %v2572_v28 = vpop.f32.mrb[78].mxu1  ;;  %4278 = vmatpush1.bf16.msra.mxu0 %v4678_v18  ;;  %v6670_v18 = vld [vmem:[#allocation7_spill] sm:$0xff]  ;;  %v6680_v4 = vld [vmem:[#allocation25_spill] sm:$0xff] }
 0xdc5   :  { %v2573_v25 = vadd.f32 %v2572_v28, %v2474_v44  ;;  %v2574_v49 = vpop.f32.mrb[79].mxu1  ;;  %4280 = vmatprep.subr.bf16.mxu0 %v4685_v20  ;;  %v6671_v20 = vld [vmem:[#allocation8_spill] sm:$0xff] }
 0xdc6   :  { %v2575_v50 = vadd.f32 %v2574_v49, %v2474_v44  ;;  %2661 = vmatprep.mubr.f32.mxu0 %v2582_v42 }
 0xdc7   :  { %2662 = vmatmul.mubr.f32.gmra.mrb[28].mxu0 %v2581_v9  ;;  %v2583_v15 = vmax.f32 %v2573_v25, 0.0 }
 0xdc8   :  { %v2584_v10 = vmax.f32 %v2575_v50, 0.0  ;;  %4282 = vmatpush1.bf16.msra.mxu0 %v4705_v26  ;;  %v6672_v26 = vld [vmem:[#allocation9_spill] sm:$0xff] }
 0xdc9   :  { %4284 = vmatprep.subr.bf16.mxu0 %v4708_v27  ;;  %v6673_v27 = vld [vmem:[#allocation10_spill] sm:$0xff] }
 0xdca   :  { %2667 = vmatprep.mubr.f32.mxu0 %v2584_v10 }
 0xdcb   :  { %2668 = vmatmul.mubr.f32.gmra.mrb[30].mxu0 %v2583_v15 }
 0xdcc   :  { %4286 = vmatpush1.bf16.msra.mxu0 %v4728_v33  ;;  %v6674_v33 = vld [vmem:[#allocation11_spill] sm:$0xff] }
 0xdcd   :  { %4288 = vmatprep.subr.bf16.mxu0 %v4731_v34  ;;  %v6675_v34 = vld [vmem:[#allocation12_spill] sm:$0xff] }
 0xdd0   :  { %4290 = vmatpush1.bf16.msra.mxu0 %v4751_v40  ;;  %v6676_v40 = vld [vmem:[#allocation13_spill] sm:$0xff] }
 0xdd1   :  { %4292 = vmatprep.subr.bf16.mxu0 %v4754_v41  ;;  %v381_v41 = vpop.permute.xlu0 %380 }
 0xdd4   :  { %4294 = vmatpush1.bf16.msra.mxu0 %v4774_v47  ;;  %v386_v47 = vpop.permute.xlu1 %385 }
 0xdd5   :  { %4296 = vmatprep.subr.bf16.mxu0 %v4777_v48  ;;  %v391_v36 = vpop.permute.xlu0 %390 }
 0xdd8   :  { %4298 = vmatpush1.bf16.msra.mxu0 %v4797_v54  ;;  %v396_v56 = vpop.permute.xlu1 %395 }
 0xdd9   :  { %4300 = vmatprep.subr.bf16.mxu0 %v4800_v55  ;;  %v6677_v55 = vld [vmem:[#allocation22_spill] sm:$0xff] }
 0xdda   :  { %v457_v38 = vmul.f32 %v6677_v55, %v391_v36  ;;  %v459_v2 = vmul.f32 %v6677_v55, %v396_v56 }
 0xddc   :  { %4302 = vmatpush1.bf16.msra.mxu0 %v4820_v61  ;;  %v453_v61 = vmul.f32 %v6677_v55, %v381_v41 }
 0xddd   :  { %4304 = vmatprep.subr.bf16.mxu0 %v4823_v62  ;;  %v455_v62 = vmul.f32 %v6677_v55, %v386_v47 }
 0xde0   :  { %4306 = vmatpush1.bf16.msra.mxu0 %v4849_v8  ;;  %v6678_v8 = vld [vmem:[#allocation23_spill] sm:$0xff] }
 0xde1   :  { %4308 = vmatprep.subr.bf16.mxu0 %v4855_v11  ;;  %v454_v11 = vmul.f32 %v6678_v8, %v381_v41  ;;  %v458_v37 = vmul.f32 %v6678_v8, %v391_v36  ;;  %v460_v58 = vmul.f32 %v6678_v8, %v396_v56 }
 0xde4   :  { %4310 = vmatpush1.bf16.msra.mxu0 %v4878_v21  ;;  %v456_v21 = vmul.f32 %v6678_v8, %v386_v47 }
 0xde5   :  { %4312 = vmatprep.subr.bf16.mxu0 %v4881_v22 }
 0xde8   :  { %4314 = vmatpush1.bf16.msra.mxu0 %v4901_v30 }
 0xde9   :  { %4316 = vmatprep.subr.bf16.mxu0 %v4904_v31 }
 0xdec   :  { %4318 = vmatpush1.bf16.msra.mxu0 %v4924_v39 }
 0xded   :  { %4320 = vmatprep.subr.bf16.mxu0 %v6638_v60 }
 0xdf0   :  { %4322 = vmatpush1.bf16.msra.mxu0 %v6670_v18 }
 0xdf1   :  { %4324 = vmatprep.subr.bf16.mxu0 %v6671_v20 }
 0xdf4   :  { %4326 = vmatpush1.bf16.msra.mxu0 %v6672_v26 }
 0xdf5   :  { %4328 = vmatprep.subr.bf16.mxu0 %v6673_v27 }
 0xdf8   :  { %4330 = vmatpush1.bf16.msra.mxu0 %v6674_v33 }
 0xdf9   :  { %4332 = vmatprep.subr.bf16.mxu0 %v6675_v34 }
 0xdfc   :  { %4334 = vmatpush1.bf16.msra.mxu0 %v6676_v40 }
 0xe92   :  { %v2651_v48 = vpop.f32.mrb[24].mxu0 }
 0xe93   :  { %v2653_v54 = vpop.f32.mrb[25].mxu0  ;;  %v4399_v30 = vadd.f32 %v2651_v48, %v453_v61 }
 0xe94   :  { %v4400_v60 = vadd.f32 %v2653_v54, %v454_v11 }
 0xe96   :  { %v2657_v22 = vpop.f32.mrb[26].mxu0 }
 0xe97   :  { %v4401_v31 = vadd.f32 %v2657_v22, %v455_v62  ;;  %v2659_v39 = vpop.f32.mrb[27].mxu0 }
 0xe98   :  { %v4402_v12 = vadd.f32 %v2659_v39, %v456_v21 }
 0xe99   :  { %v4249_v53 = vpack.c.bf16 %v4401_v31, %v4399_v30 }
 0xe9a   :  { %v4247_v0 = vpack.c.bf16 %v4402_v12, %v4400_v60  ;;  %v2663_v45 = vpop.f32.mrb[28].mxu0 }
 0xe9b   :  { %v2665_v35 = vpop.f32.mrb[29].mxu0  ;;  %v4403_v3 = vadd.f32 %v2663_v45, %v457_v38 }
 0xe9c   :  { %4248 = vmatprep.subr.bf16.mxu1 %v4247_v0  ;;  %v4404_v63 = vadd.f32 %v2665_v35, %v458_v37 }
 0xe9d   :  { %4250 = vmatpush1.bf16.msra.mxu1 %v4249_v53 }
 0xe9e   :  { %v2669_v13 = vpop.f32.mrb[30].mxu0 }
 0xe9f   :  { %v4405_v5 = vadd.f32 %v2669_v13, %v459_v2  ;;  %v2671_v24 = vpop.f32.mrb[31].mxu0 }
 0xea0   :  { %v4406_v32 = vadd.f32 %v2671_v24, %v460_v58 }
 0xea1   :  { %v4253_v52 = vpack.c.bf16 %v4405_v5, %v4403_v3 }
 0xea2   :  { %v4251_v16 = vpack.c.bf16 %v4406_v32, %v4404_v63 }
 0xea4   :  { %4252 = vmatprep.subr.bf16.mxu1 %v4251_v16 }
 0xea5   :  { %4254 = vmatpush1.bf16.msra.mxu1 %v4253_v52 }
 0xea8   :  { %3895 = vmatmul.mubr.msk.f32.vlgmr.msra.gmra.mrb[80].mxu1 %vm804_vm1, %v182_v14 }
 0xea9   :  { %2768 = vmatprep.mubr.f32.mxu1 %v6633_v1 }
 0xeac   :  { %3896 = vmatmul.mubr.msk.f32.gmra.mrb[82].mxu1 %vm804_vm1, %v183_v7 }
 0xead   :  { %2774 = vmatprep.mubr.f32.mxu1 %v6633_v1 }
 0xeb0   :  { %3897 = vmatmul.mubr.msk.f32.gmra.mrb[84].mxu1 %vm804_vm1, %v184_v46 }
 0xeb1   :  { %2780 = vmatprep.mubr.f32.mxu1 %v6633_v1 }
 0xeb4   :  { %3898 = vmatmul.mubr.msk.f32.gmra.mrb[86].mxu1 %vm804_vm1, %v185_v43 }
 0xeb5   :  { %2786 = vmatprep.mubr.f32.mxu1 %v6633_v1 }
 0xeb8   :  { %3899 = vmatmul.mubr.msk.f32.gmra.mrb[88].mxu1 %vm804_vm1, %v186_v6 }
 0xeb9   :  { %2792 = vmatprep.mubr.f32.mxu1 %v6633_v1 }
 0xebc   :  { %3900 = vmatmul.mubr.msk.f32.gmra.mrb[90].mxu1 %vm804_vm1, %v187_v29 }
 0xebd   :  { %2798 = vmatprep.mubr.f32.mxu1 %v6633_v1 }
 0xec0   :  { %3901 = vmatmul.mubr.msk.f32.gmra.mrb[92].mxu1 %vm804_vm1, %v188_v17 }
 0xec1   :  { %2804 = vmatprep.mubr.f32.mxu1 %v6633_v1 }
 0xec4   :  { %3902 = vmatmul.mubr.msk.f32.gmra.mrb[94].mxu1 %vm804_vm1, %v189_v19 }
 0xec5   :  { %3171 = vmatprep.mubr.f32.mxu1 %v6633_v1 }
 0xf7b   :  { %v2764_v59 = vpop.f32.mrb[80].mxu1 }
 0xf7c   :  { %v2811_v51 = vmul.f32 %v2764_v59, %v6679_v23  ;;  %v2766_v57 = vpop.f32.mrb[81].mxu1 }
 0xf7d   :  { %v2812_v44 = vmul.f32 %v2766_v57, %v6680_v4 }
 0xf7f   :  { %v2827_v42 = vadd.f32 %v2812_v44, %v2811_v51  ;;  %v2770_v28 = vpop.f32.mrb[82].mxu1 }
 0xf80   :  { %v2813_v9 = vmul.f32 %v2770_v28, %v6679_v23  ;;  %v2772_v25 = vpop.f32.mrb[83].mxu1 }
 0xf81   :  { %v2814_v49 = vmul.f32 %v2772_v25, %v6680_v4  ;;  %2828 = vadd.xlane.f32.xlu0 %v2827_v42 }
 0xf83   :  { %v2830_v50 = vadd.f32 %v2814_v49, %v2813_v9  ;;  %v2776_v10 = vpop.f32.mrb[84].mxu1 }
 0xf84   :  { %v2815_v15 = vmul.f32 %v2776_v10, %v6679_v23  ;;  %v2778_v18 = vpop.f32.mrb[85].mxu1 }
 0xf85   :  { %v2816_v20 = vmul.f32 %v2778_v18, %v6680_v4  ;;  %2831 = vadd.xlane.f32.xlu1 %v2830_v50 }
 0xf87   :  { %v2833_v26 = vadd.f32 %v2816_v20, %v2815_v15  ;;  %v2782_v27 = vpop.f32.mrb[86].mxu1 }
 0xf88   :  { %v2817_v33 = vmul.f32 %v2782_v27, %v6679_v23  ;;  %v2784_v34 = vpop.f32.mrb[87].mxu1 }
 0xf89   :  { %v2818_v40 = vmul.f32 %v2784_v34, %v6680_v4  ;;  %2834 = vadd.xlane.f32.xlu0 %v2833_v26 }
 0xf8b   :  { %v2836_v41 = vadd.f32 %v2818_v40, %v2817_v33  ;;  %v2788_v47 = vpop.f32.mrb[88].mxu1 }
 0xf8c   :  { %v2819_v48 = vmul.f32 %v2788_v47, %v6679_v23  ;;  %v2790_v54 = vpop.f32.mrb[89].mxu1 }
 0xf8d   :  { %v2820_v61 = vmul.f32 %v2790_v54, %v6680_v4  ;;  %2837 = vadd.xlane.f32.xlu0 %v2836_v41 }
 0xf8f   :  { %v2839_v62 = vadd.f32 %v2820_v61, %v2819_v48  ;;  %v2794_v11 = vpop.f32.mrb[90].mxu1 }
 0xf90   :  { %v2821_v21 = vmul.f32 %v2794_v11, %v6679_v23  ;;  %v2796_v22 = vpop.f32.mrb[91].mxu1 }
 0xf91   :  { %v2822_v30 = vmul.f32 %v2796_v22, %v6680_v4  ;;  %2840 = vadd.xlane.f32.xlu1 %v2839_v62 }
 0xf93   :  { %v2842_v31 = vadd.f32 %v2822_v30, %v2821_v21  ;;  %v6089_v39 = vpop.f32.mrb[92].mxu1 }
 0xf94   :  { %v2823_v60 = vmul.f32 %v6089_v39, %v6679_v23  ;;  %v6093_v12 = vpop.f32.mrb[93].mxu1 }
 0xf95   :  { %v2824_v36 = vmul.f32 %v6093_v12, %v6680_v4  ;;  %2843 = vadd.xlane.f32.xlu0 %v2842_v31 }
 0xf97   :  { %v2845_v53 = vadd.f32 %v2824_v36, %v2823_v60  ;;  %v6097_v56 = vpop.f32.mrb[94].mxu1 }
 0xf98   :  { %v2825_v0 = vmul.f32 %v6097_v56, %v6679_v23  ;;  %v6101_v45 = vpop.f32.mrb[95].mxu1 }
 0xf99   :  { %v2826_v35 = vmul.f32 %v6101_v45, %v6680_v4  ;;  %2846 = vadd.xlane.f32.xlu1 %v2845_v53 }
 0xf9b   :  { %v2848_v38 = vadd.f32 %v2826_v35, %v2825_v0 }
 0xf9d   :  { %2849 = vadd.xlane.f32.xlu0 %v2848_v38 }
0x100e   :  { %v2829_v2 = vpop.xlane.xlu0 %2828 }
0x100f   :  { %v6105_v37 = vsub.f32 %v2764_v59, %v2829_v2  ;;  %v6107_v58 = vsub.f32 %v2766_v57, %v2829_v2 }
0x1011   :  { %v2867_v13 = vmul.f32 %v6105_v37, %v6105_v37  ;;  %v2868_v3 = vmul.f32 %v6107_v58, %v6107_v58 }
0x1012   :  { %v2832_v5 = vpop.xlane.xlu1 %2831 }
0x1013   :  { %v2883_v24 = vmul.f32 %v2867_v13, %v6679_v23  ;;  %v2884_v63 = vmul.f32 %v2868_v3, %v6680_v4  ;;  %v6115_v32 = vsub.f32 %v2770_v28, %v2832_v5  ;;  %v6117_v52 = vsub.f32 %v2772_v25, %v2832_v5 }
0x1015   :  { %v2869_v16 = vmul.f32 %v6115_v32, %v6115_v32  ;;  %v2870_v14 = vmul.f32 %v6117_v52, %v6117_v52  ;;  %v2899_v7 = vadd.f32 %v2884_v63, %v2883_v24 }
0x1016   :  { %v2835_v46 = vpop.xlane.xlu0 %2834 }
0x1017   :  { %v2885_v43 = vmul.f32 %v2869_v16, %v6679_v23  ;;  %v2886_v6 = vmul.f32 %v2870_v14, %v6680_v4  ;;  %v6125_v29 = vsub.f32 %v2776_v10, %v2835_v46  ;;  %v6127_v17 = vsub.f32 %v2778_v18, %v2835_v46  ;;  %2900 = vadd.xlane.f32.xlu1 %v2899_v7  ;;  %v265_v14 = vld [vmem:[%s6573_s9 + $0xd8] sm:$0xff]  ;;  %v264_v7 = vld [vmem:[%s6573_s9 + $0xd0] sm:$0xff]  ;;  %v267_v46 = vld [vmem:[%s6573_s9 + $0xe8] sm:$0xff] }
0x1019   :  { %v2871_v19 = vmul.f32 %v6125_v29, %v6125_v29  ;;  %v2872_v59 = vmul.f32 %v6127_v17, %v6127_v17  ;;  %v2902_v51 = vadd.f32 %v2886_v6, %v2885_v43  ;;  %v266_v43 = vld [vmem:[%s6573_s9 + $0xe0] sm:$0xff] }
0x101a   :  { %v2838_v57 = vpop.xlane.xlu0 %2837 }
0x101b   :  { %v2887_v44 = vmul.f32 %v2871_v19, %v6679_v23  ;;  %v2888_v42 = vmul.f32 %v2872_v59, %v6680_v4  ;;  %v6135_v28 = vsub.f32 %v2782_v27, %v2838_v57  ;;  %v6137_v9 = vsub.f32 %v2784_v34, %v2838_v57  ;;  %2903 = vadd.xlane.f32.xlu0 %v2902_v51 }
0x101d   :  { %v2873_v25 = vmul.f32 %v6135_v28, %v6135_v28  ;;  %v2874_v49 = vmul.f32 %v6137_v9, %v6137_v9  ;;  %v2905_v50 = vadd.f32 %v2888_v42, %v2887_v44  ;;  %v222_v42 = vld [vmem:[%s6572_s8 + $0xc0] sm:$0xff] }
0x101e   :  { %v2841_v10 = vpop.xlane.xlu1 %2840 }
0x101f   :  { %v2889_v15 = vmul.f32 %v2873_v25, %v6679_v23  ;;  %v2890_v18 = vmul.f32 %v2874_v49, %v6680_v4  ;;  %v6145_v20 = vsub.f32 %v2788_v47, %v2841_v10  ;;  %v6147_v26 = vsub.f32 %v2790_v54, %v2841_v10  ;;  %2906 = vadd.xlane.f32.xlu1 %v2905_v50 }
0x1021   :  { %v2875_v27 = vmul.f32 %v6145_v20, %v6145_v20  ;;  %v2876_v33 = vmul.f32 %v6147_v26, %v6147_v26  ;;  %v2908_v34 = vadd.f32 %v2890_v18, %v2889_v15  ;;  %v223_v15 = vld [vmem:[%s6572_s8 + $0xc8] sm:$0xff] }
0x1022   :  { %v2844_v40 = vpop.xlane.xlu0 %2843 }
0x1023   :  { %v2891_v41 = vmul.f32 %v2875_v27, %v6679_v23  ;;  %v2892_v48 = vmul.f32 %v2876_v33, %v6680_v4  ;;  %v6155_v61 = vsub.f32 %v2794_v11, %v2844_v40  ;;  %v6157_v62 = vsub.f32 %v2796_v22, %v2844_v40  ;;  %2909 = vadd.xlane.f32.xlu0 %v2908_v34  ;;  %v224_v40 = vld [vmem:[%s6572_s8 + $0xd0] sm:$0xff] }
0x1025   :  { %v2877_v47 = vmul.f32 %v6155_v61, %v6155_v61  ;;  %v2878_v54 = vmul.f32 %v6157_v62, %v6157_v62  ;;  %v2911_v21 = vadd.f32 %v2892_v48, %v2891_v41 }
0x1026   :  { %v2847_v30 = vpop.xlane.xlu1 %2846 }
0x1027   :  { %v2893_v31 = vmul.f32 %v2877_v47, %v6679_v23  ;;  %v2894_v60 = vmul.f32 %v2878_v54, %v6680_v4  ;;  %v6166_v36 = vsub.f32 %v6089_v39, %v2847_v30  ;;  %v6169_v11 = vsub.f32 %v6093_v12, %v2847_v30  ;;  %2912 = vadd.xlane.f32.xlu1 %v2911_v21  ;;  %v225_v21 = vld [vmem:[%s6572_s8 + $0xd8] sm:$0xff] }
0x1029   :  { %v2879_v22 = vmul.f32 %v6166_v36, %v6166_v36  ;;  %v2880_v53 = vmul.f32 %v6169_v11, %v6169_v11  ;;  %v2914_v0 = vadd.f32 %v2894_v60, %v2893_v31 }
0x102a   :  { %v2850_v35 = vpop.xlane.xlu0 %2849 }
0x102b   :  { %v2895_v38 = vmul.f32 %v2879_v22, %v6679_v23  ;;  %v2896_v2 = vmul.f32 %v2880_v53, %v6680_v4  ;;  %v6178_v13 = vsub.f32 %v6097_v56, %v2850_v35  ;;  %v6181_v39 = vsub.f32 %v6101_v45, %v2850_v35  ;;  %2915 = vadd.xlane.f32.xlu0 %v2914_v0  ;;  %v262_v56 = vld [vmem:[%s6573_s9 + $0xc0] sm:$0xff]  ;;  %v263_v45 = vld [vmem:[%s6573_s9 + $0xc8] sm:$0xff] }
0x102c   :  { %v226_v53 = vld [vmem:[%s6572_s8 + $0xe0] sm:$0xff] }
0x102d   :  { %v2881_v12 = vmul.f32 %v6178_v13, %v6178_v13  ;;  %v2882_v3 = vmul.f32 %v6181_v39, %v6181_v39  ;;  %v2917_v5 = vadd.f32 %v2896_v2, %v2895_v38 }
0x102f   :  { %v2897_v24 = vmul.f32 %v2881_v12, %v6679_v23  ;;  %v2898_v63 = vmul.f32 %v2882_v3, %v6680_v4  ;;  %2918 = vadd.xlane.f32.xlu1 %v2917_v5  ;;  %v227_v12 = vld [vmem:[%s6572_s8 + $0xe8] sm:$0xff] }
0x1031   :  { %v2920_v16 = vadd.f32 %v2898_v63, %v2897_v24  ;;  %v228_v24 = vld [vmem:[%s6572_s8 + $0xf0] sm:$0xff] }
0x1033   :  { %2921 = vadd.xlane.f32.xlu0 %v2920_v16 }
0x1040   :  { %3005 = vperm.xlu1 %4453, %v262_v56   ;;  %v229_v56 = vld [vmem:[%s6572_s8 + $0xf8] sm:$0xff] }
0x1044   :  { %3010 = vperm.xlu1 %4453, %v263_v45  }
0x1048   :  { %3020 = vperm.xlu1 %4453, %v265_v14   ;;  %v268_v14 = vld [vmem:[%s6573_s9 + $0xf0] sm:$0xff] }
0x1049   :  { %3015 = vperm.xlu0 %4452, %v264_v7  }
0x104c   :  { %3030 = vperm.xlu1 %4453, %v267_v46   ;;  %v310_v46 = vld [vmem:[%s6575_s11 + $0x60] sm:$0xff] }
0x104d   :  { %3025 = vperm.xlu0 %4452, %v266_v43   ;;  %v269_v43 = vld [vmem:[%s6573_s9 + $0xf8] sm:$0xff] }
0x10a4   :  { %v2901_v6 = vpop.xlane.xlu1 %2900 }
0x10a5   :  { %v2923_v19 = vadd.f32 1e-05, %v2901_v6  ;;  %v312_v6 = vld [vmem:[%s6575_s11 + $0x70] sm:$0xff] }
0x10a7   :  { %4502 = vrsqrt.f32 %v2923_v19  ;;  %v311_v19 = vld [vmem:[%s6575_s11 + $0x68] sm:$0xff] }
0x10a8   :  { %v2904_v59 = vpop.xlane.xlu0 %2903 }
0x10a9   :  { %v2924_v51 = vadd.f32 1e-05, %v2904_v59  ;;  %v154_v59 = vld [vmem:[%s6570_s6 + $0x80] sm:$0xff] }
0x10ab   :  { %4504 = vrsqrt.f32 %v2924_v51  ;;  %v313_v51 = vld [vmem:[%s6575_s11 + $0x78] sm:$0xff] }
0x10ac   :  { %v2907_v57 = vpop.xlane.xlu1 %2906 }
0x10ad   :  { %v2925_v44 = vadd.f32 1e-05, %v2907_v57  ;;  %v156_v57 = vld [vmem:[%s6570_s6 + $0x90] sm:$0xff] }
0x10af   :  { %4506 = vrsqrt.f32 %v2925_v44  ;;  %v155_v44 = vld [vmem:[%s6570_s6 + $0x88] sm:$0xff] }
0x10b0   :  { %v2910_v25 = vpop.xlane.xlu0 %2909 }
0x10b1   :  { %v4503_v49 = vpop.eup %4502  ;;  %v2926_v50 = vadd.f32 1e-05, %v2910_v25 }
0x10b2   :  { %v2939_v10 = vmul.f32 %v4503_v49, %v222_v42  ;;  %v157_v42 = vld [vmem:[%s6570_s6 + $0x98] sm:$0xff] }
0x10b3   :  { %4508 = vrsqrt.f32 %v2926_v50 }
0x10b4   :  { %2949 = vperm.xlu1 %4453, %v2939_v10   ;;  %v2913_v18 = vpop.xlane.xlu1 %2912 }
0x10b5   :  { %v4505_v27 = vpop.eup %4504  ;;  %v2927_v33 = vadd.f32 1e-05, %v2913_v18 }
0x10b6   :  { %v2940_v34 = vmul.f32 %v4505_v27, %v223_v15 }
0x10b7   :  { %4510 = vrsqrt.f32 %v2927_v33 }
0x10b8   :  { %2954 = vperm.xlu0 %4452, %v2940_v34   ;;  %v2916_v41 = vpop.xlane.xlu0 %2915 }
0x10b9   :  { %v4507_v48 = vpop.eup %4506  ;;  %v2928_v47 = vadd.f32 1e-05, %v2916_v41 }
0x10ba   :  { %v2941_v54 = vmul.f32 %v4507_v48, %v224_v40 }
0x10bb   :  { %4512 = vrsqrt.f32 %v2928_v47 }
0x10bc   :  { %v2919_v30 = vpop.xlane.xlu1 %2918  ;;  %2959 = vperm.xlu0 %4452, %v2941_v54  }
0x10bd   :  { %v4509_v31 = vpop.eup %4508  ;;  %v2929_v60 = vadd.f32 1e-05, %v2919_v30 }
0x10be   :  { %v2942_v22 = vmul.f32 %v4509_v31, %v225_v21 }
0x10bf   :  { %4514 = vrsqrt.f32 %v2929_v60 }
0x10c0   :  { %2964 = vperm.xlu1 %4453, %v2942_v22   ;;  %v2922_v0 = vpop.xlane.xlu0 %2921  ;;  %v3006_v25 = vpop.permute.xlu1 %3005 }
0x10c1   :  { %v4511_v35 = vpop.eup %4510  ;;  %v2930_v38 = vadd.f32 1e-05, %v2922_v0 }
0x10c2   :  { %v2943_v2 = vmul.f32 %v4511_v35, %v226_v53 }
0x10c3   :  { %4516 = vrsqrt.f32 %v2930_v38 }
0x10c4   :  { %2969 = vperm.xlu0 %4452, %v2943_v2   ;;  %v3011_v49 = vpop.permute.xlu1 %3010 }
0x10c5   :  { %v4513_v3 = vpop.eup %4512 }
0x10c6   :  { %v2944_v5 = vmul.f32 %v4513_v3, %v227_v12 }
0x10c8   :  { %2974 = vperm.xlu1 %4453, %v2944_v5   ;;  %v3021_v50 = vpop.permute.xlu1 %3020  ;;  %v3016_v10 = vpop.permute.xlu0 %3015 }
0x10c9   :  { %v4515_v63 = vpop.eup %4514 }
0x10ca   :  { %v2945_v16 = vmul.f32 %v4515_v63, %v228_v24 }
0x10cc   :  { %2979 = vperm.xlu0 %4452, %v2945_v16   ;;  %v3031_v15 = vpop.permute.xlu1 %3030  ;;  %v3026_v18 = vpop.permute.xlu0 %3025 }
0x10cd   :  { %v4517_v45 = vpop.eup %4516 }
0x10ce   :  { %v2946_v7 = vmul.f32 %v4517_v45, %v229_v56 }
0x10d0   :  { %3035 = vperm.xlu0 %4452, %v268_v14   ;;  %2984 = vperm.xlu1 %4453, %v2946_v7  }
0x10d4   :  { %3077 = vperm.xlu0 %4452, %v310_v46   ;;  %3040 = vperm.xlu1 %4453, %v269_v43  }
0x10d8   :  { %3087 = vperm.xlu0 %4452, %v312_v6   ;;  %3082 = vperm.xlu1 %4453, %v311_v19  }
0x10dc   :  { %400 = vperm.xlu0 %4452, %v154_v59   ;;  %3092 = vperm.xlu1 %4453, %v313_v51  }
0x10e0   :  { %410 = vperm.xlu0 %4452, %v156_v57   ;;  %405 = vperm.xlu1 %4453, %v155_v44  }
0x10e4   :  { %415 = vperm.xlu1 %4453, %v157_v42  }
0x1133   :  { %v2950_v27 = vpop.permute.xlu1 %2949 }
0x1134   :  { %v2987_v33 = vmul.f32 %v2950_v27, %v6105_v37  ;;  %v2988_v34 = vmul.f32 %v2950_v27, %v6107_v58 }
0x1136   :  { %v3043_v40 = vadd.f32 %v3006_v25, %v2987_v33  ;;  %v3044_v41 = vadd.f32 %v3006_v25, %v2988_v34 }
0x1137   :  { %v2955_v48 = vpop.permute.xlu0 %2954 }
0x1138   :  { %v2989_v47 = vmul.f32 %v2955_v48, %v6115_v32  ;;  %v2990_v54 = vmul.f32 %v2955_v48, %v6117_v52  ;;  %v3059_v31 = vmax.f32 %v3043_v40, 0.0  ;;  %v3060_v60 = vmax.f32 %v3044_v41, 0.0 }
0x113a   :  { %v3045_v21 = vadd.f32 %v3011_v49, %v2989_v47  ;;  %v3046_v30 = vadd.f32 %v3011_v49, %v2990_v54 }
0x113b   :  { %v2960_v22 = vpop.permute.xlu0 %2959 }
0x113c   :  { %v3061_v53 = vmax.f32 %v3045_v21, 0.0  ;;  %v3062_v0 = vmax.f32 %v3046_v30, 0.0  ;;  %v2991_v35 = vmul.f32 %v2960_v22, %v6125_v29  ;;  %v2992_v37 = vmul.f32 %v2960_v22, %v6127_v17 }
0x113e   :  { %v4257_v38 = vpack.c.bf16 %v3061_v53, %v3059_v31  ;;  %v4255_v58 = vpack.c.bf16 %v3062_v0, %v3060_v60  ;;  %v3047_v2 = vadd.f32 %v3016_v10, %v2991_v35  ;;  %v3048_v12 = vadd.f32 %v3016_v10, %v2992_v37 }
0x113f   :  { %v2965_v3 = vpop.permute.xlu1 %2964 }
0x1140   :  { %v2993_v32 = vmul.f32 %v2965_v3, %v6135_v28  ;;  %v2994_v52 = vmul.f32 %v2965_v3, %v6137_v9  ;;  %4256 = vmatprep.subr.bf16.mxu1 %v4255_v58  ;;  %v3063_v63 = vmax.f32 %v3047_v2, 0.0  ;;  %v3064_v16 = vmax.f32 %v3048_v12, 0.0 }
0x1141   :  { %4258 = vmatpush1.bf16.msra.mxu1 %v4257_v38 }
0x1142   :  { %v3049_v5 = vadd.f32 %v3021_v50, %v2993_v32  ;;  %v3050_v24 = vadd.f32 %v3021_v50, %v2994_v52 }
0x1143   :  { %v2970_v56 = vpop.permute.xlu0 %2969 }
0x1144   :  { %v3065_v45 = vmax.f32 %v3049_v5, 0.0  ;;  %v3066_v29 = vmax.f32 %v3050_v24, 0.0  ;;  %v2995_v17 = vmul.f32 %v2970_v56, %v6145_v20  ;;  %v2996_v14 = vmul.f32 %v2970_v56, %v6147_v26 }
0x1146   :  { %v4261_v7 = vpack.c.bf16 %v3065_v45, %v3063_v63  ;;  %v4259_v46 = vpack.c.bf16 %v3066_v29, %v3064_v16  ;;  %v3051_v6 = vadd.f32 %v3026_v18, %v2995_v17  ;;  %v3052_v28 = vadd.f32 %v3026_v18, %v2996_v14 }
0x1147   :  { %v2975_v43 = vpop.permute.xlu1 %2974 }
0x1148   :  { %v2997_v9 = vmul.f32 %v2975_v43, %v6155_v61  ;;  %v2998_v19 = vmul.f32 %v2975_v43, %v6157_v62  ;;  %4260 = vmatprep.subr.bf16.mxu1 %v4259_v46  ;;  %v3067_v44 = vmax.f32 %v3051_v6, 0.0  ;;  %v3068_v42 = vmax.f32 %v3052_v28, 0.0 }
0x1149   :  { %4262 = vmatpush1.bf16.msra.mxu1 %v4261_v7 }
0x114a   :  { %v3053_v59 = vadd.f32 %v3031_v15, %v2997_v9  ;;  %v3054_v51 = vadd.f32 %v3031_v15, %v2998_v19 }
0x114b   :  { %v2980_v57 = vpop.permute.xlu0 %2979 }
0x114c   :  { %v3069_v25 = vmax.f32 %v3053_v59, 0.0  ;;  %v3070_v20 = vmax.f32 %v3054_v51, 0.0  ;;  %v2999_v27 = vmul.f32 %v2980_v57, %v6166_v36  ;;  %v3000_v18 = vmul.f32 %v2980_v57, %v6169_v11  ;;  %v290_v36 = vld [vmem:[%s6574_s10 + $0x60] sm:$0xff]  ;;  %v291_v11 = vld [vmem:[%s6574_s10 + $0x68] sm:$0xff] }
0x114e   :  { %v4265_v49 = vpack.c.bf16 %v3069_v25, %v3067_v44  ;;  %v4263_v26 = vpack.c.bf16 %v3070_v20, %v3068_v42 }
0x114f   :  { %v2985_v50 = vpop.permute.xlu1 %2984  ;;  %v3036_v10 = vpop.permute.xlu0 %3035 }
0x1150   :  { %4264 = vmatprep.subr.bf16.mxu1 %v4263_v26  ;;  %v3001_v61 = vmul.f32 %v2985_v50, %v6178_v13  ;;  %v3002_v62 = vmul.f32 %v2985_v50, %v6181_v39  ;;  %v3055_v15 = vadd.f32 %v3036_v10, %v2999_v27  ;;  %v3056_v33 = vadd.f32 %v3036_v10, %v3000_v18  ;;  %v292_v13 = vld [vmem:[%s6574_s10 + $0x70] sm:$0xff]  ;;  %v293_v39 = vld [vmem:[%s6574_s10 + $0x78] sm:$0xff] }
0x1151   :  { %4266 = vmatpush1.bf16.msra.mxu1 %v4265_v49 }
0x1152   :  { %v3071_v48 = vmax.f32 %v3055_v15, 0.0  ;;  %v3072_v47 = vmax.f32 %v3056_v33, 0.0 }
0x1153   :  { %v3041_v34 = vpop.permute.xlu1 %3040  ;;  %v3078_v60 = vpop.permute.xlu0 %3077 }
0x1154   :  { %v3057_v40 = vadd.f32 %v3041_v34, %v3001_v61  ;;  %v3058_v41 = vadd.f32 %v3041_v34, %v3002_v62 }
0x1156   :  { %v3073_v54 = vmax.f32 %v3057_v40, 0.0  ;;  %v3074_v21 = vmax.f32 %v3058_v41, 0.0 }
0x1157   :  { %v3083_v37 = vpop.permute.xlu1 %3082  ;;  %v3088_v52 = vpop.permute.xlu0 %3087 }
0x1158   :  { %v4269_v30 = vpack.c.bf16 %v3073_v54, %v3071_v48  ;;  %v4267_v31 = vpack.c.bf16 %v3074_v21, %v3072_v47 }
0x115a   :  { %4268 = vmatprep.subr.bf16.mxu1 %v4267_v31 }
0x115b   :  { %4270 = vmatpush1.bf16.msra.mxu1 %v4269_v30  ;;  %v3093_v29 = vpop.permute.xlu1 %3092  ;;  %v401_v19 = vpop.permute.xlu0 %400 }
0x115c   :  { %v461_v44 = vmul.f32 %v6677_v55, %v401_v19  ;;  %v462_v25 = vmul.f32 %v6678_v8, %v401_v19 }
0x115e   :  { %3903 = vmatmul.mubr.msk.f32.vlgmr.msra.gmra.mrb[96].mxu1 %vm1237_vm2, %v290_v36 }
0x115f   :  { %3177 = vmatprep.mubr.f32.mxu1 %v6633_v1  ;;  %v406_v59 = vpop.permute.xlu1 %405  ;;  %v411_v61 = vpop.permute.xlu0 %410 }
0x1160   :  { %v463_v42 = vmul.f32 %v6677_v55, %v406_v59  ;;  %v464_v20 = vmul.f32 %v6678_v8, %v406_v59  ;;  %v465_v41 = vmul.f32 %v6677_v55, %v411_v61  ;;  %v466_v47 = vmul.f32 %v6678_v8, %v411_v61 }
0x1162   :  { %3904 = vmatmul.mubr.msk.f32.gmra.mrb[98].mxu1 %vm1237_vm2, %v291_v11 }
0x1163   :  { %3183 = vmatprep.mubr.f32.mxu1 %v6633_v1  ;;  %v416_v15 = vpop.permute.xlu1 %415 }
0x1164   :  { %v467_v48 = vmul.f32 %v6677_v55, %v416_v15  ;;  %v468_v54 = vmul.f32 %v6678_v8, %v416_v15  ;;  %v191_v55 = vld [vmem:[%s6571_s7 + $0x108] sm:$0xff]  ;;  %v192_v8 = vld [vmem:[%s6571_s7 + $0x110] sm:$0xff] }
0x1166   :  { %3905 = vmatmul.mubr.msk.f32.gmra.mrb[100].mxu1 %vm1237_vm2, %v292_v13 }
0x1167   :  { %3189 = vmatprep.mubr.f32.mxu1 %v6633_v1 }
0x116a   :  { %3906 = vmatmul.mubr.msk.f32.gmra.mrb[102].mxu1 %vm1237_vm2, %v293_v39 }
0x116b   :  { %3381 = vmatprep.mubr.f32.mxu1 %v6633_v1 }
0x1231   :  { %v3173_v22 = vpop.f32.mrb[96].mxu1 }
0x1232   :  { %v3174_v53 = vadd.f32 %v3173_v22, %v3078_v60  ;;  %v3175_v0 = vpop.f32.mrb[97].mxu1  ;;  %v190_v22 = vld [vmem:[%s6571_s7 + $0x100] sm:$0xff] }
0x1233   :  { %v3176_v35 = vadd.f32 %v3175_v0, %v3078_v60  ;;  %v194_v0 = vld [vmem:[%s6571_s7 + $0x120] sm:$0xff] }
0x1234   :  { %v3196_v2 = vmax.f32 %v3174_v53, 0.0  ;;  %v193_v53 = vld [vmem:[%s6571_s7 + $0x118] sm:$0xff] }
0x1235   :  { %v3197_v38 = vmax.f32 %v3176_v35, 0.0  ;;  %v3179_v58 = vpop.f32.mrb[98].mxu1  ;;  %v195_v35 = vld [vmem:[%s6571_s7 + $0x128] sm:$0xff] }
0x1236   :  { %v3180_v12 = vadd.f32 %v3179_v58, %v3083_v37  ;;  %v3181_v3 = vpop.f32.mrb[99].mxu1 }
0x1237   :  { %v3182_v32 = vadd.f32 %v3181_v3, %v3083_v37  ;;  %3268 = vmatprep.mubr.f32.mxu0 %v3197_v38  ;;  %v196_v37 = vld [vmem:[%s6571_s7 + $0x130] sm:$0xff]  ;;  %v197_v38 = vld [vmem:[%s6571_s7 + $0x138] sm:$0xff] }
0x1238   :  { %3269 = vmatmul.mubr.f32.vlgmr.msra.gmra.mrb[32].mxu0 %v3196_v2  ;;  %v3198_v63 = vmax.f32 %v3180_v12, 0.0 }
0x1239   :  { %v3199_v5 = vmax.f32 %v3182_v32, 0.0  ;;  %v3185_v24 = vpop.f32.mrb[100].mxu1 }
0x123a   :  { %v3186_v16 = vadd.f32 %v3185_v24, %v3088_v52  ;;  %v3187_v56 = vpop.f32.mrb[101].mxu1 }
0x123b   :  { %v3188_v45 = vadd.f32 %v3187_v56, %v3088_v52  ;;  %3274 = vmatprep.mubr.f32.mxu0 %v3199_v5 }
0x123c   :  { %3275 = vmatmul.mubr.f32.gmra.mrb[34].mxu0 %v3198_v63  ;;  %v3200_v7 = vmax.f32 %v3186_v16, 0.0 }
0x123d   :  { %v3201_v17 = vmax.f32 %v3188_v45, 0.0  ;;  %v3191_v14 = vpop.f32.mrb[102].mxu1 }
0x123e   :  { %v3192_v46 = vadd.f32 %v3191_v14, %v3093_v29  ;;  %v3193_v43 = vpop.f32.mrb[103].mxu1 }
0x123f   :  { %v3194_v6 = vadd.f32 %v3193_v43, %v3093_v29  ;;  %3280 = vmatprep.mubr.f32.mxu0 %v3201_v17 }
0x1240   :  { %3281 = vmatmul.mubr.f32.gmra.mrb[36].mxu0 %v3200_v7  ;;  %v3202_v9 = vmax.f32 %v3192_v46, 0.0 }
0x1241   :  { %v3203_v28 = vmax.f32 %v3194_v6, 0.0 }
0x1243   :  { %3286 = vmatprep.mubr.f32.mxu0 %v3203_v28 }
0x1244   :  { %3287 = vmatmul.mubr.f32.gmra.mrb[38].mxu0 %v3202_v9 }
0x1245   :  { %3790 = vmatprep.mubr.f32.mxu0 %v6633_v1 }
0x130b   :  { %v3270_v51 = vpop.f32.mrb[32].mxu0 }
0x130c   :  { %v3272_v57 = vpop.f32.mrb[33].mxu0  ;;  %v4407_v26 = vadd.f32 %v3270_v51, %v461_v44 }
0x130d   :  { %v4408_v27 = vadd.f32 %v3272_v57, %v462_v25 }
0x130f   :  { %v3276_v49 = vpop.f32.mrb[34].mxu0 }
0x1310   :  { %v4409_v50 = vadd.f32 %v3276_v49, %v463_v42  ;;  %v3278_v10 = vpop.f32.mrb[35].mxu0 }
0x1311   :  { %v4410_v18 = vadd.f32 %v3278_v10, %v464_v20 }
0x1312   :  { %v4337_v62 = vpack.c.bf16 %v4409_v50, %v4407_v26 }
0x1313   :  { %v4335_v33 = vpack.c.bf16 %v4410_v18, %v4408_v27  ;;  %v3282_v34 = vpop.f32.mrb[36].mxu0 }
0x1314   :  { %v3284_v40 = vpop.f32.mrb[37].mxu0  ;;  %v4411_v30 = vadd.f32 %v3282_v34, %v465_v41 }
0x1315   :  { %4336 = vmatprep.subr.bf16.mxu1 %v4335_v33  ;;  %v4412_v11 = vadd.f32 %v3284_v40, %v466_v47 }
0x1316   :  { %4338 = vmatpush1.bf16.msra.mxu1 %v4337_v62 }
0x1317   :  { %v3288_v21 = vpop.f32.mrb[38].mxu0 }
0x1318   :  { %v4413_v31 = vadd.f32 %v3288_v21, %v467_v48  ;;  %v3290_v36 = vpop.f32.mrb[39].mxu0 }
0x1319   :  { %v4414_v13 = vadd.f32 %v3290_v36, %v468_v54 }
0x131a   :  { %v4341_v39 = vpack.c.bf16 %v4413_v31, %v4411_v30 }
0x131b   :  { %v4339_v60 = vpack.c.bf16 %v4414_v13, %v4412_v11 }
0x131d   :  { %4340 = vmatprep.subr.bf16.mxu1 %v4339_v60 }
0x131e   :  { %4342 = vmatpush1.bf16.msra.mxu1 %v4341_v39 }
0x1321   :  { %3907 = vmatmul.mubr.msk.f32.vlgmr.msra.gmra.mrb[104].mxu1 %vm804_vm1, %v190_v22 }
0x1322   :  { %3387 = vmatprep.mubr.f32.mxu1 %v6633_v1 }
0x1325   :  { %3908 = vmatmul.mubr.msk.f32.gmra.mrb[106].mxu1 %vm804_vm1, %v191_v55 }
0x1326   :  { %3393 = vmatprep.mubr.f32.mxu1 %v6633_v1 }
0x1329   :  { %3909 = vmatmul.mubr.msk.f32.gmra.mrb[108].mxu1 %vm804_vm1, %v192_v8 }
0x132a   :  { %3399 = vmatprep.mubr.f32.mxu1 %v6633_v1 }
0x132d   :  { %3910 = vmatmul.mubr.msk.f32.gmra.mrb[110].mxu1 %vm804_vm1, %v193_v53 }
0x132e   :  { %3405 = vmatprep.mubr.f32.mxu1 %v6633_v1 }
0x1331   :  { %3911 = vmatmul.mubr.msk.f32.gmra.mrb[112].mxu1 %vm804_vm1, %v194_v0 }
0x1332   :  { %3411 = vmatprep.mubr.f32.mxu1 %v6633_v1 }
0x1335   :  { %3912 = vmatmul.mubr.msk.f32.gmra.mrb[114].mxu1 %vm804_vm1, %v195_v35 }
0x1336   :  { %3417 = vmatprep.mubr.f32.mxu1 %v6633_v1 }
0x1339   :  { %3913 = vmatmul.mubr.msk.f32.gmra.mrb[116].mxu1 %vm804_vm1, %v196_v37 }
0x133a   :  { %3423 = vmatprep.mubr.f32.mxu1 %v6633_v1 }
0x133d   :  { %3914 = vmatmul.mubr.msk.f32.gmra.mrb[118].mxu1 %vm804_vm1, %v197_v38 }
0x133e   :  { %3808 = vmatprep.mubr.f32.mxu1 %v6633_v1 }
0x13f4   :  { %v3383_v58 = vpop.f32.mrb[104].mxu1 }
0x13f5   :  { %v3430_v2 = vmul.f32 %v3383_v58, %v6679_v23  ;;  %v3385_v12 = vpop.f32.mrb[105].mxu1 }
0x13f6   :  { %v3431_v3 = vmul.f32 %v3385_v12, %v6680_v4 }
0x13f8   :  { %v3446_v32 = vadd.f32 %v3431_v3, %v3430_v2  ;;  %v3389_v52 = vpop.f32.mrb[106].mxu1 }
0x13f9   :  { %v3432_v5 = vmul.f32 %v3389_v52, %v6679_v23  ;;  %v3391_v24 = vpop.f32.mrb[107].mxu1 }
0x13fa   :  { %v3433_v63 = vmul.f32 %v3391_v24, %v6680_v4  ;;  %3447 = vadd.xlane.f32.xlu0 %v3446_v32 }
0x13fc   :  { %v3449_v16 = vadd.f32 %v3433_v63, %v3432_v5  ;;  %v3395_v56 = vpop.f32.mrb[108].mxu1 }
0x13fd   :  { %v3434_v45 = vmul.f32 %v3395_v56, %v6679_v23  ;;  %v3397_v29 = vpop.f32.mrb[109].mxu1 }
0x13fe   :  { %v3435_v17 = vmul.f32 %v3397_v29, %v6680_v4  ;;  %3450 = vadd.xlane.f32.xlu1 %v3449_v16 }
0x1400   :  { %v3452_v14 = vadd.f32 %v3435_v17, %v3434_v45  ;;  %v3401_v7 = vpop.f32.mrb[110].mxu1 }
0x1401   :  { %v3436_v46 = vmul.f32 %v3401_v7, %v6679_v23  ;;  %v3403_v43 = vpop.f32.mrb[111].mxu1 }
0x1402   :  { %v3437_v6 = vmul.f32 %v3403_v43, %v6680_v4  ;;  %3453 = vadd.xlane.f32.xlu0 %v3452_v14 }
0x1404   :  { %v3455_v28 = vadd.f32 %v3437_v6, %v3436_v46  ;;  %v3407_v9 = vpop.f32.mrb[112].mxu1 }
0x1405   :  { %v3438_v19 = vmul.f32 %v3407_v9, %v6679_v23  ;;  %v3409_v59 = vpop.f32.mrb[113].mxu1 }
0x1406   :  { %v3439_v51 = vmul.f32 %v3409_v59, %v6680_v4  ;;  %3456 = vadd.xlane.f32.xlu0 %v3455_v28 }
0x1408   :  { %v3458_v57 = vadd.f32 %v3439_v51, %v3438_v19  ;;  %v3413_v44 = vpop.f32.mrb[114].mxu1 }
0x1409   :  { %v3440_v42 = vmul.f32 %v3413_v44, %v6679_v23  ;;  %v3415_v25 = vpop.f32.mrb[115].mxu1 }
0x140a   :  { %v3441_v20 = vmul.f32 %v3415_v25, %v6680_v4  ;;  %3459 = vadd.xlane.f32.xlu1 %v3458_v57 }
0x140c   :  { %v3461_v49 = vadd.f32 %v3441_v20, %v3440_v42  ;;  %v6358_v26 = vpop.f32.mrb[116].mxu1 }
0x140d   :  { %v3442_v50 = vmul.f32 %v6358_v26, %v6679_v23  ;;  %v6362_v10 = vpop.f32.mrb[117].mxu1 }
0x140e   :  { %v3443_v27 = vmul.f32 %v6362_v10, %v6680_v4  ;;  %3462 = vadd.xlane.f32.xlu0 %v3461_v49 }
0x1410   :  { %v3464_v18 = vadd.f32 %v3443_v27, %v3442_v50  ;;  %v6366_v61 = vpop.f32.mrb[118].mxu1 }
0x1411   :  { %v3444_v62 = vmul.f32 %v6366_v61, %v6679_v23  ;;  %v6370_v15 = vpop.f32.mrb[119].mxu1 }
0x1412   :  { %v3445_v33 = vmul.f32 %v6370_v15, %v6680_v4  ;;  %3465 = vadd.xlane.f32.xlu1 %v3464_v18 }
0x1414   :  { %v3467_v34 = vadd.f32 %v3445_v33, %v3444_v62 }
0x1416   :  { %3468 = vadd.xlane.f32.xlu0 %v3467_v34 }
0x1487   :  { %v3448_v40 = vpop.xlane.xlu0 %3447 }
0x1488   :  { %v6374_v41 = vsub.f32 %v3383_v58, %v3448_v40  ;;  %v6376_v48 = vsub.f32 %v3385_v12, %v3448_v40 }
0x148a   :  { %v3486_v47 = vmul.f32 %v6374_v41, %v6374_v41  ;;  %v3487_v54 = vmul.f32 %v6376_v48, %v6376_v48 }
0x148b   :  { %v3451_v21 = vpop.xlane.xlu1 %3450 }
0x148c   :  { %v3502_v30 = vmul.f32 %v3486_v47, %v6679_v23  ;;  %v3503_v31 = vmul.f32 %v3487_v54, %v6680_v4  ;;  %v6384_v36 = vsub.f32 %v3389_v52, %v3451_v21  ;;  %v6386_v11 = vsub.f32 %v3391_v24, %v3451_v21 }
0x148e   :  { %v3488_v13 = vmul.f32 %v6384_v36, %v6384_v36  ;;  %v3489_v39 = vmul.f32 %v6386_v11, %v6386_v11  ;;  %v3518_v60 = vadd.f32 %v3503_v31, %v3502_v30  ;;  %v273_v31 = vld [vmem:[%s6573_s9 + $0x118] sm:$0xff] }
0x148f   :  { %v3454_v22 = vpop.xlane.xlu0 %3453 }
0x1490   :  { %v3504_v55 = vmul.f32 %v3488_v13, %v6679_v23  ;;  %v3505_v8 = vmul.f32 %v3489_v39, %v6680_v4  ;;  %v6394_v53 = vsub.f32 %v3395_v56, %v3454_v22  ;;  %v6396_v0 = vsub.f32 %v3397_v29, %v3454_v22  ;;  %3519 = vadd.xlane.f32.xlu1 %v3518_v60  ;;  %v274_v13 = vld [vmem:[%s6573_s9 + $0x120] sm:$0xff] }
0x1492   :  { %v3490_v35 = vmul.f32 %v6394_v53, %v6394_v53  ;;  %v3491_v37 = vmul.f32 %v6396_v0, %v6396_v0  ;;  %v3521_v38 = vadd.f32 %v3505_v8, %v3504_v55 }
0x1493   :  { %v3457_v58 = vpop.xlane.xlu0 %3456 }
0x1494   :  { %v3506_v2 = vmul.f32 %v3490_v35, %v6679_v23  ;;  %v3507_v12 = vmul.f32 %v3491_v37, %v6680_v4  ;;  %v6404_v3 = vsub.f32 %v3401_v7, %v3457_v58  ;;  %v6406_v32 = vsub.f32 %v3403_v43, %v3457_v58  ;;  %3522 = vadd.xlane.f32.xlu0 %v3521_v38  ;;  %v230_v37 = vld [vmem:[%s6572_s8 + $0x100] sm:$0xff] }
0x1496   :  { %v3492_v52 = vmul.f32 %v6404_v3, %v6404_v3  ;;  %v3493_v5 = vmul.f32 %v6406_v32, %v6406_v32  ;;  %v3524_v24 = vadd.f32 %v3507_v12, %v3506_v2 }
0x1497   :  { %v3460_v63 = vpop.xlane.xlu1 %3459 }
0x1498   :  { %v3508_v16 = vmul.f32 %v3492_v52, %v6679_v23  ;;  %v3509_v56 = vmul.f32 %v3493_v5, %v6680_v4  ;;  %v6414_v45 = vsub.f32 %v3407_v9, %v3460_v63  ;;  %v6416_v29 = vsub.f32 %v3409_v59, %v3460_v63  ;;  %3525 = vadd.xlane.f32.xlu1 %v3524_v24  ;;  %v231_v52 = vld [vmem:[%s6572_s8 + $0x108] sm:$0xff] }
0x149a   :  { %v3494_v17 = vmul.f32 %v6414_v45, %v6414_v45  ;;  %v3495_v14 = vmul.f32 %v6416_v29, %v6416_v29  ;;  %v3527_v7 = vadd.f32 %v3509_v56, %v3508_v16  ;;  %v232_v56 = vld [vmem:[%s6572_s8 + $0x110] sm:$0xff] }
0x149b   :  { %v3463_v46 = vpop.xlane.xlu0 %3462 }
0x149c   :  { %v3510_v43 = vmul.f32 %v3494_v17, %v6679_v23  ;;  %v3511_v6 = vmul.f32 %v3495_v14, %v6680_v4  ;;  %v6424_v28 = vsub.f32 %v3413_v44, %v3463_v46  ;;  %v6426_v19 = vsub.f32 %v3415_v25, %v3463_v46  ;;  %3528 = vadd.xlane.f32.xlu0 %v3527_v7 }
0x149e   :  { %v3496_v9 = vmul.f32 %v6424_v28, %v6424_v28  ;;  %v3497_v59 = vmul.f32 %v6426_v19, %v6426_v19  ;;  %v3530_v51 = vadd.f32 %v3511_v6, %v3510_v43  ;;  %v233_v43 = vld [vmem:[%s6572_s8 + $0x118] sm:$0xff] }
0x149f   :  { %v3466_v57 = vpop.xlane.xlu1 %3465 }
0x14a0   :  { %v3512_v42 = vmul.f32 %v3496_v9, %v6679_v23  ;;  %v3513_v20 = vmul.f32 %v3497_v59, %v6680_v4  ;;  %v6435_v49 = vsub.f32 %v6358_v26, %v3466_v57  ;;  %v6438_v44 = vsub.f32 %v6362_v10, %v3466_v57  ;;  %3531 = vadd.xlane.f32.xlu1 %v3530_v51  ;;  %v234_v57 = vld [vmem:[%s6572_s8 + $0x120] sm:$0xff] }
0x14a2   :  { %v3498_v25 = vmul.f32 %v6435_v49, %v6435_v49  ;;  %v3499_v50 = vmul.f32 %v6438_v44, %v6438_v44  ;;  %v3533_v27 = vadd.f32 %v3513_v20, %v3512_v42 }
0x14a3   :  { %v3469_v18 = vpop.xlane.xlu0 %3468 }
0x14a4   :  { %v3514_v62 = vmul.f32 %v3498_v25, %v6679_v23  ;;  %v3515_v33 = vmul.f32 %v3499_v50, %v6680_v4  ;;  %v6447_v34 = vsub.f32 %v6366_v61, %v3469_v18  ;;  %v6450_v26 = vsub.f32 %v6370_v15, %v3469_v18  ;;  %3534 = vadd.xlane.f32.xlu0 %v3533_v27  ;;  %v270_v61 = vld [vmem:[%s6573_s9 + $0x100] sm:$0xff]  ;;  %v271_v15 = vld [vmem:[%s6573_s9 + $0x108] sm:$0xff] }
0x14a5   :  { %v235_v27 = vld [vmem:[%s6572_s8 + $0x128] sm:$0xff] }
0x14a6   :  { %v3500_v10 = vmul.f32 %v6447_v34, %v6447_v34  ;;  %v3501_v40 = vmul.f32 %v6450_v26, %v6450_v26  ;;  %v3536_v47 = vadd.f32 %v3515_v33, %v3514_v62  ;;  %v236_v33 = vld [vmem:[%s6572_s8 + $0x130] sm:$0xff] }
0x14a8   :  { %v3516_v54 = vmul.f32 %v3500_v10, %v6679_v23  ;;  %v3517_v21 = vmul.f32 %v3501_v40, %v6680_v4  ;;  %3537 = vadd.xlane.f32.xlu1 %v3536_v47  ;;  %v272_v23 = vld [vmem:[%s6573_s9 + $0x110] sm:$0xff]  ;;  %v275_v4 = vld [vmem:[%s6573_s9 + $0x128] sm:$0xff]  ;;  %v237_v47 = vld [vmem:[%s6572_s8 + $0x138] sm:$0xff] }
0x14aa   :  { %v3539_v30 = vadd.f32 %v3517_v21, %v3516_v54  ;;  %v276_v21 = vld [vmem:[%s6573_s9 + $0x130] sm:$0xff] }
0x14ac   :  { %3540 = vadd.xlane.f32.xlu0 %v3539_v30 }
0x14b9   :  { %3624 = vperm.xlu1 %4453, %v270_v61   ;;  %v314_v61 = vld [vmem:[%s6575_s11 + $0x80] sm:$0xff] }
0x14bd   :  { %3629 = vperm.xlu1 %4453, %v271_v15   ;;  %v277_v15 = vld [vmem:[%s6573_s9 + $0x138] sm:$0xff] }
0x14c1   :  { %3639 = vperm.xlu1 %4453, %v273_v31   ;;  %v316_v31 = vld [vmem:[%s6575_s11 + $0x90] sm:$0xff] }
0x14c2   :  { %3634 = vperm.xlu0 %4452, %v272_v23   ;;  %v315_v23 = vld [vmem:[%s6575_s11 + $0x88] sm:$0xff] }
0x14c5   :  { %3649 = vperm.xlu1 %4453, %v275_v4   ;;  %v317_v4 = vld [vmem:[%s6575_s11 + $0x98] sm:$0xff] }
0x14c6   :  { %3644 = vperm.xlu0 %4452, %v274_v13  }
0x151d   :  { %v3520_v39 = vpop.xlane.xlu1 %3519 }
0x151e   :  { %v3542_v60 = vadd.f32 1e-05, %v3520_v39 }
0x1520   :  { %4518 = vrsqrt.f32 %v3542_v60 }
0x1521   :  { %v3523_v22 = vpop.xlane.xlu0 %3522 }
0x1522   :  { %v3543_v55 = vadd.f32 1e-05, %v3523_v22 }
0x1524   :  { %4520 = vrsqrt.f32 %v3543_v55 }
0x1525   :  { %v3526_v8 = vpop.xlane.xlu1 %3525 }
0x1526   :  { %v3544_v35 = vadd.f32 1e-05, %v3526_v8 }
0x1528   :  { %4522 = vrsqrt.f32 %v3544_v35 }
0x1529   :  { %v3529_v38 = vpop.xlane.xlu0 %3528 }
0x152a   :  { %v4519_v58 = vpop.eup %4518  ;;  %v3545_v2 = vadd.f32 1e-05, %v3529_v38 }
0x152b   :  { %v3558_v12 = vmul.f32 %v4519_v58, %v230_v37 }
0x152c   :  { %4524 = vrsqrt.f32 %v3545_v2 }
0x152d   :  { %3568 = vperm.xlu1 %4453, %v3558_v12   ;;  %v3532_v5 = vpop.xlane.xlu1 %3531 }
0x152e   :  { %v4521_v24 = vpop.eup %4520  ;;  %v3546_v63 = vadd.f32 1e-05, %v3532_v5 }
0x152f   :  { %v3559_v16 = vmul.f32 %v4521_v24, %v231_v52 }
0x1530   :  { %4526 = vrsqrt.f32 %v3546_v63 }
0x1531   :  { %3573 = vperm.xlu0 %4452, %v3559_v16   ;;  %v3535_v17 = vpop.xlane.xlu0 %3534 }
0x1532   :  { %v4523_v14 = vpop.eup %4522  ;;  %v3547_v7 = vadd.f32 1e-05, %v3535_v17 }
0x1533   :  { %v3560_v46 = vmul.f32 %v4523_v14, %v232_v56 }
0x1534   :  { %4528 = vrsqrt.f32 %v3547_v7 }
0x1535   :  { %v3538_v6 = vpop.xlane.xlu1 %3537  ;;  %3578 = vperm.xlu0 %4452, %v3560_v46  }
0x1536   :  { %v4525_v9 = vpop.eup %4524  ;;  %v3548_v59 = vadd.f32 1e-05, %v3538_v6 }
0x1537   :  { %v3561_v51 = vmul.f32 %v4525_v9, %v233_v43 }
0x1538   :  { %4530 = vrsqrt.f32 %v3548_v59 }
0x1539   :  { %3583 = vperm.xlu1 %4453, %v3561_v51   ;;  %v3541_v42 = vpop.xlane.xlu0 %3540  ;;  %v3625_v13 = vpop.permute.xlu1 %3624 }
0x153a   :  { %v4527_v20 = vpop.eup %4526  ;;  %v3549_v25 = vadd.f32 1e-05, %v3541_v42 }
0x153b   :  { %v3562_v50 = vmul.f32 %v4527_v20, %v234_v57 }
0x153c   :  { %4532 = vrsqrt.f32 %v3549_v25 }
0x153d   :  { %3588 = vperm.xlu0 %4452, %v3562_v50   ;;  %v3630_v39 = vpop.permute.xlu1 %3629 }
0x153e   :  { %v4529_v18 = vpop.eup %4528 }
0x153f   :  { %v3563_v62 = vmul.f32 %v4529_v18, %v235_v27 }
0x1541   :  { %3593 = vperm.xlu1 %4453, %v3563_v62   ;;  %v3640_v60 = vpop.permute.xlu1 %3639  ;;  %v3635_v22 = vpop.permute.xlu0 %3634 }
0x1542   :  { %v4531_v10 = vpop.eup %4530 }
0x1543   :  { %v3564_v40 = vmul.f32 %v4531_v10, %v236_v33 }
0x1545   :  { %3598 = vperm.xlu0 %4452, %v3564_v40   ;;  %v3650_v55 = vpop.permute.xlu1 %3649  ;;  %v3645_v8 = vpop.permute.xlu0 %3644 }
0x1546   :  { %v4533_v54 = vpop.eup %4532 }
0x1547   :  { %v3565_v30 = vmul.f32 %v4533_v54, %v237_v47 }
0x1549   :  { %3654 = vperm.xlu0 %4452, %v276_v21   ;;  %3603 = vperm.xlu1 %4453, %v3565_v30  }
0x154d   :  { %3696 = vperm.xlu0 %4452, %v314_v61   ;;  %3659 = vperm.xlu1 %4453, %v277_v15  }
0x1551   :  { %3706 = vperm.xlu0 %4452, %v316_v31   ;;  %3701 = vperm.xlu1 %4453, %v315_v23  }
0x1555   :  { %3711 = vperm.xlu1 %4453, %v317_v4  }
0x15ac   :  { %v3569_v35 = vpop.permute.xlu1 %3568 }
0x15ad   :  { %v3606_v37 = vmul.f32 %v3569_v35, %v6374_v41  ;;  %v3607_v38 = vmul.f32 %v3569_v35, %v6376_v48 }
0x15af   :  { %v3662_v58 = vadd.f32 %v3625_v13, %v3606_v37  ;;  %v3663_v2 = vadd.f32 %v3625_v13, %v3607_v38 }
0x15b0   :  { %v3574_v12 = vpop.permute.xlu0 %3573 }
0x15b1   :  { %v3608_v52 = vmul.f32 %v3574_v12, %v6384_v36  ;;  %v3609_v5 = vmul.f32 %v3574_v12, %v6386_v11  ;;  %v3678_v16 = vmax.f32 %v3662_v58, 0.0  ;;  %v3679_v56 = vmax.f32 %v3663_v2, 0.0 }
0x15b3   :  { %v3664_v24 = vadd.f32 %v3630_v39, %v3608_v52  ;;  %v3665_v63 = vadd.f32 %v3630_v39, %v3609_v5  ;;  %v296_v52 = vld [vmem:[%s6574_s10 + $0x90] sm:$0xff] }
0x15b4   :  { %v3579_v17 = vpop.permute.xlu0 %3578 }
0x15b5   :  { %v3680_v14 = vmax.f32 %v3664_v24, 0.0  ;;  %v3681_v7 = vmax.f32 %v3665_v63, 0.0  ;;  %v3610_v46 = vmul.f32 %v3579_v17, %v6394_v53  ;;  %v3611_v41 = vmul.f32 %v3579_v17, %v6396_v0 }
0x15b7   :  { %v4345_v43 = vpack.c.bf16 %v3680_v14, %v3678_v16  ;;  %v4343_v48 = vpack.c.bf16 %v3681_v7, %v3679_v56  ;;  %v3666_v6 = vadd.f32 %v3635_v22, %v3610_v46  ;;  %v3667_v9 = vadd.f32 %v3635_v22, %v3611_v41 }
0x15b8   :  { %v3584_v59 = vpop.permute.xlu1 %3583 }
0x15b9   :  { %v3612_v36 = vmul.f32 %v3584_v59, %v6404_v3  ;;  %v3613_v11 = vmul.f32 %v3584_v59, %v6406_v32  ;;  %4344 = vmatprep.subr.bf16.mxu0 %v4343_v48  ;;  %4359 = vmatprep.subr.bf16.mxu1 %v4343_v48  ;;  %v3682_v42 = vmax.f32 %v3666_v6, 0.0  ;;  %v3683_v20 = vmax.f32 %v3667_v9, 0.0 }
0x15ba   :  { %4346 = vmatpush1.bf16.msra.mxu0 %v4345_v43  ;;  %4363 = vmatpush1.bf16.msra.mxu1 %v4345_v43 }
0x15bb   :  { %v3668_v51 = vadd.f32 %v3640_v60, %v3612_v36  ;;  %v3669_v57 = vadd.f32 %v3640_v60, %v3613_v11 }
0x15bc   :  { %v3589_v53 = vpop.permute.xlu0 %3588 }
0x15bd   :  { %v3684_v25 = vmax.f32 %v3668_v51, 0.0  ;;  %v3685_v0 = vmax.f32 %v3669_v57, 0.0  ;;  %v3614_v50 = vmul.f32 %v3589_v53, %v6414_v45  ;;  %v3615_v27 = vmul.f32 %v3589_v53, %v6416_v29 }
0x15bf   :  { %v4349_v18 = vpack.c.bf16 %v3684_v25, %v3682_v42  ;;  %v4347_v62 = vpack.c.bf16 %v3685_v0, %v3683_v20  ;;  %v3670_v3 = vadd.f32 %v3645_v8, %v3614_v50  ;;  %v3671_v32 = vadd.f32 %v3645_v8, %v3615_v27 }
0x15c0   :  { %v3594_v33 = vpop.permute.xlu1 %3593 }
0x15c1   :  { %v3616_v10 = vmul.f32 %v3594_v33, %v6424_v28  ;;  %v3617_v40 = vmul.f32 %v3594_v33, %v6426_v19  ;;  %4348 = vmatprep.subr.bf16.mxu0 %v4347_v62  ;;  %4360 = vmatprep.subr.bf16.mxu1 %v4347_v62  ;;  %v3686_v30 = vmax.f32 %v3670_v3, 0.0  ;;  %v3687_v45 = vmax.f32 %v3671_v32, 0.0 }
0x15c2   :  { %4350 = vmatpush1.bf16.msra.mxu0 %v4349_v18  ;;  %4364 = vmatpush1.bf16.msra.mxu1 %v4349_v18 }
0x15c3   :  { %v3672_v47 = vadd.f32 %v3650_v55, %v3616_v10  ;;  %v3673_v54 = vadd.f32 %v3650_v55, %v3617_v40 }
0x15c4   :  { %v3599_v21 = vpop.permute.xlu0 %3598 }
0x15c5   :  { %v3688_v61 = vmax.f32 %v3672_v47, 0.0  ;;  %v3689_v29 = vmax.f32 %v3673_v54, 0.0  ;;  %v3618_v13 = vmul.f32 %v3599_v21, %v6435_v49  ;;  %v3619_v28 = vmul.f32 %v3599_v21, %v6438_v44  ;;  %v294_v44 = vld [vmem:[%s6574_s10 + $0x80] sm:$0xff] }
0x15c7   :  { %v4353_v15 = vpack.c.bf16 %v3688_v61, %v3686_v30  ;;  %v4351_v31 = vpack.c.bf16 %v3689_v29, %v3687_v45 }
0x15c8   :  { %v3604_v23 = vpop.permute.xlu1 %3603  ;;  %v3655_v4 = vpop.permute.xlu0 %3654 }
0x15c9   :  { %4352 = vmatprep.subr.bf16.mxu0 %v4351_v31  ;;  %4361 = vmatprep.subr.bf16.mxu1 %v4351_v31  ;;  %v3620_v19 = vmul.f32 %v3604_v23, %v6447_v34  ;;  %v3621_v39 = vmul.f32 %v3604_v23, %v6450_v26  ;;  %v3674_v60 = vadd.f32 %v3655_v4, %v3618_v13  ;;  %v297_v34 = vld [vmem:[%s6574_s10 + $0x98] sm:$0xff]  ;;  %v295_v26 = vld [vmem:[%s6574_s10 + $0x88] sm:$0xff]  ;;  %s4560_s10 = smov [#allocation2]  }
0x15ca   :  { %4354 = vmatpush1.bf16.msra.mxu0 %v4353_v15  ;;  %v3675_v22 = vadd.f32 %v3655_v4, %v3619_v28  ;;  %4365 = vmatpush1.bf16.msra.mxu1 %v4353_v15  ;;  %s3828_s15 = sshll.u32 %s4560_s10, 4  ;;  %s3829_s15 = int_to_ptr.vmem [resolvable:$true] %s3828_s15 }
0x15cb   :  { %v3690_v37 = vmax.f32 %v3674_v60, 0.0  ;;  %s4534_s16 = scalar_lea.vmem %s3829_s15, 1024  ;;  %p4539_p1 = scmp.lt.s32.totalorder %s3829_s15, %s3829_s15 }
0x15cc   :  { %v3660_v55 = vpop.permute.xlu1 %3659  ;;  %v3691_v38 = vmax.f32 %v3675_v22, 0.0  ;;  %v3697_v24 = vpop.permute.xlu0 %3696  ;;  %p4535_p0 = scmp.ne.s32.totalorder %s3829_s15, %s4534_s16  ;;  %p4540_p2 = scmp.lt.s32.totalorder %s4534_s16, %s4534_s16 }
0x15cd   :  { %v3676_v8 = vadd.f32 %v3660_v55, %v3620_v19  ;;  %v3677_v35 = vadd.f32 %v3660_v55, %v3621_v39 }
0x15ce   :  { %p4541_p3 = por %p4540_p2, %p4539_p1 }
0x15cf   :  { %v3692_v58 = vmax.f32 %v3676_v8, 0.0  ;;  %v3693_v2 = vmax.f32 %v3677_v35, 0.0 }
0x15d0   :  { %v3702_v5 = vpop.permute.xlu1 %3701  ;;  %v3707_v59 = vpop.permute.xlu0 %3706  ;;  %p4542_p4 = pnand %p4541_p3, %p4535_p0 }
0x15d1   :  { %v4357_v49 = vpack.c.bf16 %v3692_v58, %v3690_v37  ;;  %v4355_v12 = vpack.c.bf16 %v3693_v2, %v3691_v38 }
0x15d3   :  { %4356 = vmatprep.subr.bf16.mxu0 %v4355_v12  ;;  %4362 = vmatprep.subr.bf16.mxu1 %v4355_v12 }
0x15d4   :  { %4358 = vmatpush1.bf16.msra.mxu0 %v4357_v49  ;;  %4366 = vmatpush1.bf16.msra.mxu1 %v4357_v49  ;;  %v3712_v63 = vpop.permute.xlu1 %3711 }
0x15d7   :  { %3915 = vmatmul.mubr.msk.f32.vlgmr.msra.gmra.mrb[40].mxu0 %vm1237_vm2, %v294_v44  ;;  %3918 = vmatmul.mubr.msk.f32.vlgmr.msra.gmra.mrb[120].mxu1 %vm1237_vm2, %v297_v34 }
0x15d8   :  { %3796 = vmatprep.mubr.f32.mxu0 %v6633_v1 }
0x15db   :  { %3916 = vmatmul.mubr.msk.f32.gmra.mrb[42].mxu0 %vm1237_vm2, %v295_v26 }
0x15dc   :  { %3802 = vmatprep.mubr.f32.mxu0 %v6633_v1 }
0x15df   :  { %3917 = vmatmul.mubr.msk.f32.gmra.mrb[44].mxu0 %vm1237_vm2, %v296_v52 }
0x16aa   :  { %v3792_v16 = vpop.f32.mrb[40].mxu0  ;;  %v3810_v56 = vpop.f32.mrb[120].mxu1 }
0x16ab   :  { %v3793_v17 = vadd.f32 %v3792_v16, %v3697_v24  ;;  %v3811_v14 = vadd.f32 %v3810_v56, %v3712_v63  ;;  %v3794_v7 = vpop.f32.mrb[41].mxu0  ;;  %v3812_v46 = vpop.f32.mrb[121].mxu1 }
0x16ac   :  { %v3795_v41 = vadd.f32 %v3794_v7, %v3697_v24  ;;  %v3813_v43 = vadd.f32 %v3812_v46, %v3712_v63 }
0x16ad   :  { %3815 = vst [vmem:[#allocation2] sm:$0xff] %v3793_v17  ;;  %3821 = vst [vmem:[#allocation2 + $0x30] sm:$0xff] %v3811_v14 }
0x16ae   :  { %3816 = vst [vmem:[#allocation2 + $0x8] sm:$0xff] %v3795_v41  ;;  %3822 = vst [vmem:[#allocation2 + $0x38] sm:$0xff] %v3813_v43  ;;  %v3798_v1 = vpop.f32.mrb[42].mxu0 }
0x16af   :  { %v3799_v48 = vadd.f32 %v3798_v1, %v3702_v5  ;;  %v3800_v6 = vpop.f32.mrb[43].mxu0 }
0x16b0   :  { %v3801_v9 = vadd.f32 %v3800_v6, %v3702_v5 }
0x16b1   :  { %3817 = vst [vmem:[#allocation2 + $0x10] sm:$0xff] %v3799_v48 }
0x16b2   :  { %3818 = vst [vmem:[#allocation2 + $0x18] sm:$0xff] %v3801_v9  ;;  %v3804_v36 = vpop.f32.mrb[44].mxu0 }
0x16b3   :  { %v3805_v11 = vadd.f32 %v3804_v36, %v3707_v59  ;;  %v3806_v51 = vpop.f32.mrb[45].mxu0 }
0x16b4   :  { %v3807_v57 = vadd.f32 %v3806_v51, %v3707_v59 }
0x16b5   :  { %3819 = vst [vmem:[#allocation2 + $0x20] sm:$0xff] %v3805_v11 }
0x16b6   :  { %3820 = vst [vmem:[#allocation2 + $0x28] sm:$0xff] %v3807_v57 }
0x16b7   :  { %4545 = shalt.err (!%p4542_p4)
}
0x16b8   :  { %s4546_s18 = scalar_lea.hbm %s6576_s12, 1024 }
0x16b9   :  { %p4547_p5 = scmp.ne.s32.totalorder %s6576_s12, %s4546_s18  ;;  %p4550_p6 = scmp.lt.u32.totalorder %s4546_s18, %s6576_s12 }
0x16bb   :  { %p4552_p7 = pnand %p4550_p6, %p4547_p5 }
0x16bd   :  { %4555 = shalt.err (!%p4552_p7)
}
0x16be   :  { %s4561_s6 = smov 256   ;;  %s4562_s4 = smov 16  }
0x16bf   :  { %3834 = dma.vmem_to_hbm [thread:$0]  %s3829_s15, 1024, %s6576_s12, [#allocation3], %s4561_s6, %s4561_s6, %s4562_s4  }
0x16c0   :  { %4556 = dma.done.wait [#allocation3], 1024  }
0x16c1   :  { %4557 = vsyncadd [#allocation3], 4294966272 }
0x16c2   :  { %3838 = vsyncpa [#allocation3], 1 }

</bundles_post_ra>
